<compile_context>
chip_gen: v5e
topology: v5e:2x2
jax: 0.10.0
libtpu: 0.0.40
codegen_flags: <defaults>
</compile_context>

<pallas_src>
import functools
import math

import numpy as np
import jax
import jax.numpy as jnp
from jax import lax
from jax.experimental import pallas as pl
from jax.experimental.pallas import tpu as pltpu


def expected_sin(x_means, x_vars):
    """E[sin(y)] with y ~ N(x_means, x_vars) (JAX mirror of the torch helper)."""
    return jnp.exp(-0.5 * x_vars) * jnp.sin(x_means)


# ----------------------------------------------------------------------------
# Compile-time constant matrices for the fused MXU expansion.
# ----------------------------------------------------------------------------
def _build_expansion_consts(freqs, in_dim):
    """
    W  : (D, 2*D*F)  W[d, d*F+f] = W[d, D*F + d*F+f] = pi * freqs[f]
    b  : (1, 2*D*F)  b[d*F+f]        = pi * freqs[f]
                     b[D*F + d*F+f]  = pi * freqs[f] + pi/2
    W2 : (D, D*F)    W2[d, d*F+f]    = freqs[f] ** 2       (mip-NeRF variance)
    so that  x @ W + b  ==  flatten(pi*(x+1)[..., None] * freqs)  (sin|cos halves)
             v @ W2     ==  flatten(diag(cov)[..., None] * freqs**2)
    Each output column has exactly one nonzero, so the matmul sum is exact.
    """
    freqs = np.asarray(freqs, dtype=np.float64)
    F = freqs.shape[0]
    n_half = in_dim * F
    n_enc = 2 * n_half
    W = np.zeros((in_dim, n_enc), dtype=np.float64)
    b = np.zeros((1, n_enc), dtype=np.float64)
    W2 = np.zeros((in_dim, n_half), dtype=np.float64)
    for d in range(in_dim):
        for f in range(F):
            w = math.pi * freqs[f]
            W[d, d * F + f] = w
            W[d, n_half + d * F + f] = w
            b[0, d * F + f] = w
            b[0, n_half + d * F + f] = w + math.pi / 2.0
            W2[d, d * F + f] = freqs[f] ** 2
    return W.astype(np.float32), b.astype(np.float32), W2.astype(np.float32)


# ----------------------------------------------------------------------------
# Pallas kernel: one (row_tile, D) -> (row_tile, out_dim) tile.
# ----------------------------------------------------------------------------
def _nerf_encoding_kernel(*refs, n_half, n_enc, include_input, with_var):
    if with_var:
        x_ref, v_ref, w_ref, b_ref, w2_ref, o_ref = refs
    else:
        x_ref, w_ref, b_ref, o_ref = refs
        v_ref = w2_ref = None

    x = x_ref[...].astype(jnp.float32)                                  # (T, D)

    # MXU expansion: phase[:, d*F+f]       = pi*freqs[f]*(x[:, d] + 1)
    #                phase[:, DF + d*F+f]  = same + pi/2
    phase = jnp.dot(x, w_ref[...],
                    preferred_element_type=jnp.float32,
                    precision=lax.Precision.HIGHEST) + b_ref[...]        # (T, 2DF)
    enc = jnp.sin(phase)                                                 # one wide EUP pass

    if with_var:
        v = v_ref[...].astype(jnp.float32)                               # (T, D)
        var = jnp.dot(v, w2_ref[...],
                      preferred_element_type=jnp.float32,
                      precision=lax.Precision.HIGHEST)                   # (T, DF)
        atten = jnp.exp(-0.5 * var)                                      # half-width exp
        o_ref[:, :n_half] = (atten * enc[:, :n_half]).astype(o_ref.dtype)
        o_ref[:, n_half:n_enc] = (atten * enc[:, n_half:n_enc]).astype(o_ref.dtype)
    else:
        o_ref[:, :n_enc] = enc.astype(o_ref.dtype)

    if include_input:
        o_ref[:, n_enc:] = x.astype(o_ref.dtype)


def _nerf_encoding_2d(x2d, var2d, freqs, include_input, out_dim):
    """x2d: (B, D) [, var2d: (B, D)] -> (B, out_dim) via a tiled Pallas kernel."""
    B, D = x2d.shape
    F = len(freqs)
    n_half = D * F
    n_enc = 2 * n_half
    with_var = var2d is not None

    W, b, W2 = _build_expansion_consts(freqs, D)

    # 8-aligned row tile, capped at 512 (already ~85% of HBM roofline per the
    # tiling measurements).  Small batches are split into >= 2 grid steps so
    # both v7x TensorCores get work under dimension_semantics=("parallel",).
    row_tile = 512
    if B <= row_tile:
        row_tile = max(8, ((pl.cdiv(B, 2) + 7) // 8) * 8)
    grid = (pl.cdiv(B, row_tile),)

    kernel = functools.partial(
        _nerf_encoding_kernel,
        n_half=n_half, n_enc=n_enc,
        include_input=include_input, with_var=with_var)

    args = [x2d]
    in_specs = [pl.BlockSpec((row_tile, D), lambda i: (i, 0))]
    if with_var:
        args.append(var2d)
        in_specs.append(pl.BlockSpec((row_tile, D), lambda i: (i, 0)))
    # Constant expansion matrices passed as (small) kernel inputs — no captured
    # array constants inside the kernel body.
    args.extend([jnp.asarray(W), jnp.asarray(b)])
    in_specs.extend([pl.BlockSpec(W.shape, lambda i: (0, 0)),
                     pl.BlockSpec(b.shape, lambda i: (0, 0))])
    if with_var:
        args.append(jnp.asarray(W2))
        in_specs.append(pl.BlockSpec(W2.shape, lambda i: (0, 0)))

    itemsize = jnp.dtype(x2d.dtype).itemsize
    flops = 2 * B * D * n_enc + 2 * B * n_enc
    transcendentals = B * n_enc
    bytes_accessed = B * D * itemsize + B * out_dim * itemsize + (W.size + b.size) * 4
    if with_var:
        flops += 2 * B * D * n_half + 3 * B * n_enc
        transcendentals += B * n_half
        bytes_accessed += B * D * itemsize + W2.size * 4

    return pl.pallas_call(
        kernel,
        out_shape=jax.ShapeDtypeStruct((B, out_dim), x2d.dtype),
        grid_spec=pltpu.PrefetchScalarGridSpec(
            num_scalar_prefetch=0,
            grid=grid,
            in_specs=in_specs,
            out_specs=pl.BlockSpec((row_tile, out_dim), lambda i: (i, 0)),
        ),
        compiler_params=pltpu.CompilerParams(
            dimension_semantics=("parallel",),
            vmem_limit_bytes=32 * 1024 * 1024,
        ),
        cost_estimate=pl.CostEstimate(
            flops=flops,
            transcendentals=transcendentals,
            bytes_accessed=bytes_accessed),
    )(*args)


# ----------------------------------------------------------------------------
# Python-side modules mirroring the PyTorch API.
# ----------------------------------------------------------------------------
class FieldComponent:
    def __init__(self, in_dim=None, out_dim=None):
        self.in_dim = in_dim
        self.out_dim = out_dim

    def build_nn_modules(self):
        """No nn members in the base class — nothing to build."""

    def set_in_dim(self, in_dim):
        if in_dim <= 0:
            raise ValueError("Input dimension should be greater than zero")
        self.in_dim = in_dim

    def get_out_dim(self):
        if self.out_dim is None:
            raise ValueError("Output dimension has not been set")
        return self.out_dim

    def forward(self, in_tensor):
        raise NotImplementedError

    def __call__(self, *args, **kwargs):
        return self.forward(*args, **kwargs)


class Encoding(FieldComponent):
    def __init__(self, in_dim):
        if in_dim <= 0:
            raise ValueError("Input dimension should be greater than zero")
        super().__init__(in_dim=in_dim)


class NeRFEncoding(Encoding):
    """Multi-scale sinusoidal encoding (optionally integrated / mip-NeRF)."""

    def __init__(self, in_dim, num_frequencies, min_freq_exp, max_freq_exp,
                 include_input=False):
        super().__init__(in_dim)
        self.num_frequencies = num_frequencies
        self.min_freq = min_freq_exp
        self.max_freq = max_freq_exp
        self.include_input = include_input

    def get_out_dim(self):
        if self.in_dim is None:
            raise ValueError("Input dimension has not been set")
        out_dim = self.in_dim * self.num_frequencies * 2
        if self.include_input:
            out_dim += self.in_dim
        return out_dim

    def _freqs(self):
        return 2.0 ** np.linspace(self.min_freq, self.max_freq, self.num_frequencies)

    def forward(self, in_tensor, covs=None):
        *bs, d = in_tensor.shape
        if self.in_dim is not None and d != self.in_dim:
            raise ValueError(f"Expected last dim {self.in_dim}, got {d}")

        x2d = in_tensor.reshape((-1, d))
        var2d = None
        if covs is not None:
            # Only the covariance diagonal enters the encoding; extract it in
            # the wrapper and feed (B, D) to the kernel.
            var2d = jnp.diagonal(covs, axis1=-2, axis2=-1).reshape((-1, d))

        out_dim = self.get_out_dim()
        out2d = _nerf_encoding_2d(x2d, var2d, self._freqs(),
                                  self.include_input, out_dim)
        return out2d.reshape((*bs, out_dim))

    __call__ = forward


# ----------------------------------------------------------------------------
# Pure-JAX reference (mirrors the PyTorch forward) for validation.
# ----------------------------------------------------------------------------
def _nerf_reference(x, freqs, include_input, covs=None):
    scaled = jnp.pi * (x + 1.0)
    si = (scaled[..., None] * freqs).reshape(*x.shape[:-1], -1)
    both = jnp.concatenate([si, si + jnp.pi / 2.0], axis=-1)
    if covs is None:
        enc = jnp.sin(both)
    else:
        var = jnp.diagonal(covs, axis1=-2, axis2=-1)[..., :, None] * freqs[None, :] ** 2
        var = var.reshape(*var.shape[:-2], -1)
        enc = expected_sin(both, jnp.concatenate([var, var], axis=-1))
    if include_input:
        enc = jnp.concatenate([enc, x], axis=-1)
    return enc


if __name__ == "__main__":
    key = jax.random.PRNGKey(0)
    kx, kv, kx2 = jax.random.split(key, 3)

    in_dim, num_freq = 4, 6
    batch_shape = (2, 8, 16)

    enc = NeRFEncoding(in_dim=in_dim, num_frequencies=num_freq,
                       min_freq_exp=0.0, max_freq_exp=5.0, include_input=True)
    freqs = jnp.asarray(enc._freqs(), dtype=jnp.float32)

    x = jax.random.uniform(kx, (*batch_shape, in_dim), dtype=jnp.float32,
                           minval=-1.0, maxval=1.0)

    # --- standard sinusoidal encoding ---
    out = jax.block_until_ready(enc(x))
    assert out.shape == (*batch_shape, enc.get_out_dim())
    assert out.dtype == x.dtype
    ref = _nerf_reference(x, freqs, include_input=True)
    assert bool(jnp.allclose(out, ref, atol=2e-4, rtol=2e-4)), \
        float(jnp.max(jnp.abs(out - ref)))

    # --- integrated (mip-NeRF) encoding with diagonal covariances ---
    diag = jax.random.uniform(kv, (*batch_shape, in_dim), dtype=jnp.float32,
                              minval=0.0, maxval=0.2)
    covs = diag[..., :, None] * jnp.eye(in_dim, dtype=jnp.float32)
    out_c = jax.block_until_ready(enc(x, covs=covs))
    ref_c = _nerf_reference(x, freqs, include_input=True, covs=covs)
    assert out_c.shape == (*batch_shape, enc.get_out_dim())
    assert bool(jnp.allclose(out_c, ref_c, atol=2e-4, rtol=2e-4)), \
        float(jnp.max(jnp.abs(out_c - ref_c)))

    # --- ragged batch (partial last grid block) ---
    x_odd = jax.random.uniform(kx2, (5, 7, in_dim), dtype=jnp.float32,
                               minval=-1.0, maxval=1.0)
    out_odd = jax.block_until_ready(enc(x_odd))
    ref_odd = _nerf_reference(x_odd, freqs, include_input=True)
    assert out_odd.shape == (5, 7, enc.get_out_dim())
    assert bool(jnp.allclose(out_odd, ref_odd, atol=2e-4, rtol=2e-4)), \
        float(jnp.max(jnp.abs(out_odd - ref_odd)))

    print("KERNEL_OK")
</pallas_src>

<mosaic_0001>
module attributes {stable_mosaic.version = 11 : i64} {
  func.func @_nerf_encoding_kernel(%arg0: i32, %arg1: memref<128x4xf32, #tpu.memory_space<vmem>>, %arg2: memref<4x48xf32, #tpu.memory_space<vmem>>, %arg3: memref<1x48xf32, #tpu.memory_space<vmem>>, %arg4: memref<128x52xf32, #tpu.memory_space<vmem>>) attributes {dimension_semantics = [#tpu.dimension_semantics<parallel>], iteration_bounds = array<i64: 2>, scalar_prefetch = 0 : i64, scratch_operands = 0 : i64, tpu.core_type = #tpu.core_type<tc>, window_params = [{transform_indices = @transform_0, window_bounds = array<i64: 128, 4>}, {pipeline_mode = #tpu.pipeline_mode<synchronous>, transform_indices = @transform_1, window_bounds = array<i64: 4, 48>}, {pipeline_mode = #tpu.pipeline_mode<synchronous>, transform_indices = @transform_2, window_bounds = array<i64: 1, 48>}, {transform_indices = @transform_3, window_bounds = array<i64: 128, 52>}]} {
    %c0 = arith.constant 0 : index
    %c0_0 = arith.constant 0 : index
    %0 = vector.load %arg1[%c0, %c0_0] : memref<128x4xf32, #tpu.memory_space<vmem>>, vector<128x4xf32>
    %c0_1 = arith.constant 0 : index
    %c0_2 = arith.constant 0 : index
    %1 = vector.load %arg2[%c0_1, %c0_2] : memref<4x48xf32, #tpu.memory_space<vmem>>, vector<4x48xf32>
    %cst = arith.constant dense<0.000000e+00> : vector<128x48xf32>
    %2 = tpu.matmul %0, %1, %cst {dimension_numbers = #tpu.dot_dimension_numbers<[1], [0], [0], [1], [0, 0, 1, 1], [], []>, precision = #tpu.contract_precision<fp32>} : vector<128x4xf32>, vector<4x48xf32>, vector<128x48xf32> -> vector<128x48xf32>
    %c0_3 = arith.constant 0 : index
    %c0_4 = arith.constant 0 : index
    %3 = vector.load %arg3[%c0_3, %c0_4] : memref<1x48xf32, #tpu.memory_space<vmem>>, vector<1x48xf32>
    %4 = vector.broadcast %3 : vector<1x48xf32> to vector<128x48xf32>
    %5 = arith.addf %2, %4 : vector<128x48xf32>
    %6 = math.sin %5 : vector<128x48xf32>
    %c0_5 = arith.constant 0 : index
    %c0_6 = arith.constant 0 : index
    %7 = vector.load %arg4[%c0_5, %c0_6] : memref<128x52xf32, #tpu.memory_space<vmem>>, vector<128x48xf32>
    tpu.vector_store %arg4[%c0_5, %c0_6], %6 {strides = array<i32>} : memref<128x52xf32, #tpu.memory_space<vmem>>, vector<128x48xf32>,
    %c0_7 = arith.constant 0 : index
    %c48 = arith.constant 48 : index
    %8 = vector.load %arg4[%c0_7, %c48] : memref<128x52xf32, #tpu.memory_space<vmem>>, vector<128x4xf32>
    tpu.vector_store %arg4[%c0_7, %c48], %0 {strides = array<i32>} : memref<128x52xf32, #tpu.memory_space<vmem>>, vector<128x4xf32>,
    return
  }
  func.func @transform_0(%arg0: i32) -> (i32, i32) {
    %c0_i32 = arith.constant 0 : i32
    %c0_i32_0 = arith.constant 0 : i32
    return %arg0, %c0_i32 : i32, i32
  }
  func.func @transform_1(%arg0: i32) -> (i32, i32) {
    %c0_i32 = arith.constant 0 : i32
    %c0_i32_0 = arith.constant 0 : i32
    %c0_i32_1 = arith.constant 0 : i32
    return %c0_i32, %c0_i32_0 : i32, i32
  }
  func.func @transform_2(%arg0: i32) -> (i32, i32) {
    %c0_i32 = arith.constant 0 : i32
    %c0_i32_0 = arith.constant 0 : i32
    %c0_i32_1 = arith.constant 0 : i32
    return %c0_i32, %c0_i32_0 : i32, i32
  }
  func.func @transform_3(%arg0: i32) -> (i32, i32) {
    %c0_i32 = arith.constant 0 : i32
    %c0_i32_0 = arith.constant 0 : i32
    return %arg0, %c0_i32 : i32, i32
  }
}

</mosaic_0001>

<bundles_post_ra>
// kernel: tpu_custom_call.1
= control target key start
LH: loop header
LB: loop body
LE: loop exit
PB: predicated region body
PF: predicated region fallthrough
CT: control target
= control target key end

     0   :  { %s3607_s12 = smov 0   ;;  %s6699_s0 = inlined_call_operand.vmem [shape: f32[256,4], index: 0, kind: input, shape index: {}]   ;;  %s6700_s1 = inlined_call_operand.vmem [shape: f32[4,48], index: 1, kind: input, shape index: {}]   ;;  %s6701_s2 = inlined_call_operand.vmem [shape: f32[1,48], index: 2, kind: input, shape index: {}]   ;;  %s6702_s3 = inlined_call_operand.vmem [shape: f32[256,52], index: 3, kind: output, shape index: {}]  }
   0x1 LB: > { %s3477_s13 = sadd.s32 4294967295, %s3577_s12   ;;  %p3481_p0 = scmp.ge.s32.totalorder %s3577_s12, 1  ;;  %s3577_s12 = sphi %s3607_s12, %s13_s12  }
   0x2   : > { %p138_p1 = scmp.lt.s32.totalorder %s3577_s12, 3 }
   0x4   : > { %p139_p2 = pnand %p3481_p0, %p138_p1 }
   0x6   : > { %142 = sbr.rel (%p139_p2) target bundleno = 861 (0x35d), region = 32 }
   0xb   : > { %v190_v0 = vld [vmem:[%s6700_s1] sm:$0xf]  ;;  %vm244_vm0 = vcmask 1043456   ;;  %s3482_s16 = sshll.u32 %s3477_s13, 4  ;;  %vm195_vm1 = vcmask 31744   ;;  %s3586_s23 = smov 48  }
   0xc   : > { %v246_v1 = vsel %vm244_vm0, %v190_v0, 0  ;;  %p163_p3 = scmp.lt.s32.totalorder %s3482_s16, 31 }
   0xd   : > { %v263_v2 = vand.u32 4294901760, %v246_v1 }
   0xe   : > { %s6998_s16 = smov (!%p163_p3, %s3482_s16), 31 }
   0xf   : > { %3536 = vmatpush.msra.mxu2 %v263_v2  ;;  %v410_v3 = vsub.f32 %v246_v1, %v263_v2  ;;  %264 = vmatpush.msra.mxu0 %v263_v2  ;;  %s3483_s17 = sshll.u32 %s6998_s16, 3 }
  0x10   : > { %s3626_s20 = scalar_lea.vmem %s6699_s0, %s3483_s17  ;;  %s6166_s26 = scalar_lea.vmem %s6702_s3, %s3483_s17 }
  0x11   : > { %497 = vmatpush.msrb.mxu2 %v410_v3  ;;  %v411_v4 = vand.u32 4294901760, %v410_v3  ;;  %v182_v5 = vld [vmem:[%s3626_s20 + $0x40] sm:$0xff]  ;;  %v183_v6 = vld [vmem:[%s3626_s20 + $0x48] sm:$0xff]  ;;  %v184_v12 = vld [vmem:[%s3626_s20 + $0x50] sm:$0xff] }
  0x12   : > { %v174_v7 = vld [vmem:[%s3626_s20] sm:$0xff]  ;;  %v221_v8 = vsel %vm195_vm1, %v182_v5, 0  ;;  %v224_v10 = vsel %vm195_vm1, %v183_v6, 0  ;;  %v175_v13 = vld [vmem:[%s3626_s20 + $0x8] sm:$0xff]  ;;  %v176_v17 = vld [vmem:[%s3626_s20 + $0x10] sm:$0xff]  ;;  %v227_v19 = vsel %vm195_vm1, %v184_v12, 0 }
  0x13   : > { %v412_v9 = vsub.f32 %v410_v3, %v411_v4  ;;  %v197_v11 = vsel %vm195_vm1, %v174_v7, 0  ;;  %711 = vmatpush.msrb.mxu0 %v411_v4  ;;  %v3636_v14 = vand.u32 4294901760, %v221_v8  ;;  %v3638_v15 = vand.u32 4294901760, %v224_v10  ;;  %v185_v35 = vld [vmem:[%s3626_s20 + $0x58] sm:$0xff]  ;;  %v186_v51 = vld [vmem:[%s3626_s20 + $0x60] sm:$0xff]  ;;  %v187_v1 = vld [vmem:[%s3626_s20 + $0x68] sm:$0xff] }
  0x14   : > { %v3640_v16 = vand.u32 4294901760, %v197_v11  ;;  %v200_v20 = vsel %vm195_vm1, %v175_v13, 0  ;;  %v203_v25 = vsel %vm195_vm1, %v176_v17, 0  ;;  %v3665_v30 = vand.u32 4294901760, %v227_v19  ;;  %v177_v38 = vld [vmem:[%s3626_s20 + $0x18] sm:$0xff]  ;;  %v178_v52 = vld [vmem:[%s3626_s20 + $0x20] sm:$0xff] }
  0x15   : > { %v413_v18 = vand.u32 4294901760, %v412_v9  ;;  %v3646_v21 = vsub.f32 %v221_v8, %v3636_v14  ;;  %v3649_v22 = vsub.f32 %v224_v10, %v3638_v15  ;;  %v3654_v24 = vand.u32 4294901760, %v200_v20 }
  0x16   : > { %v3652_v23 = vsub.f32 %v197_v11, %v3640_v16  ;;  %v3674_v34 = vand.u32 4294901760, %v203_v25  ;;  %v3679_v39 = vsub.f32 %v227_v19, %v3665_v30  ;;  %v230_v42 = vsel %vm195_vm1, %v185_v35, 0  ;;  %v180_v19 = vld [vmem:[%s3626_s20 + $0x30] sm:$0xff] }
  0x17   : > { %3537 = vmatpush.msra.mxu3 %v413_v18  ;;  %414 = vmatpush.msra.mxu1 %v413_v18  ;;  %v331_v26 = vand.u32 4294901760, %v3646_v21  ;;  %v3662_v28 = vsub.f32 %v200_v20, %v3654_v24  ;;  %v339_v29 = vand.u32 4294901760, %v3649_v22  ;;  %v206_v44 = vsel %vm195_vm1, %v177_v38, 0  ;;  %v188_v18 = vld [vmem:[%s3626_s20 + $0x70] sm:$0xff] }
  0x18   : > { %448 = vmatmul.f32.vlgmr.msra.gmra.mxu3 %v3636_v14  ;;  %v267_v27 = vand.u32 4294901760, %v3652_v23  ;;  %416 = vmatmul.f32.vlgmr.msra.gmra.mxu1 %v3640_v16  ;;  %v3689_v43 = vsub.f32 %v203_v25, %v3674_v34  ;;  %v347_v45 = vand.u32 4294901760, %v3679_v39  ;;  %v3695_v46 = vand.u32 4294901760, %v230_v42 }
  0x19   : > { %595 = vmatpush.msrb.mxu3 %v263_v2  ;;  %793 = vmatpush.msrb.mxu1 %v263_v2  ;;  %v332_v31 = vsub.f32 %v3646_v21, %v331_v26  ;;  %v275_v33 = vand.u32 4294901760, %v3662_v28  ;;  %v340_v40 = vsub.f32 %v3649_v22, %v339_v29  ;;  %v3698_v50 = vand.u32 4294901760, %v206_v44  ;;  %v179_v2 = vld [vmem:[%s3626_s20 + $0x28] sm:$0xff] }
  0x1a   : > { %v268_v32 = vsub.f32 %v3652_v23, %v267_v27  ;;  %v283_v49 = vand.u32 4294901760, %v3689_v43  ;;  %v3703_v53 = vsub.f32 %v230_v42, %v3695_v46  ;;  %v348_v54 = vsub.f32 %v3679_v39, %v347_v45 }
  0x1b   : > { %v333_v36 = vand.u32 4294901760, %v332_v31  ;;  %v276_v41 = vsub.f32 %v3662_v28, %v275_v33  ;;  %v341_v47 = vand.u32 4294901760, %v340_v40  ;;  %v233_v56 = vsel %vm195_vm1, %v186_v51, 0 }
  0x1c   : > { %v269_v37 = vand.u32 4294901760, %v268_v32  ;;  %v284_v55 = vsub.f32 %v3689_v43, %v283_v49  ;;  %v3713_v57 = vsub.f32 %v206_v44, %v3698_v50  ;;  %v209_v58 = vsel %vm195_vm1, %v178_v52, 0 }
  0x1d   : > { %334 = vmatmul.f32.vlgmr.msra.gmra.mxu2 %v333_v36  ;;  %v277_v48 = vand.u32 4294901760, %v276_v41  ;;  %v355_v59 = vand.u32 4294901760, %v3703_v53  ;;  %v3719_v60 = vand.u32 4294901760, %v233_v56  ;;  %v349_v61 = vand.u32 4294901760, %v348_v54 }
  0x1e   : > { %270 = vmatmul.f32.vlgmr.msra.gmra.mxu0 %v269_v37  ;;  %v285_v62 = vand.u32 4294901760, %v284_v55  ;;  %v291_v63 = vand.u32 4294901760, %v3713_v57  ;;  %v3722_v0 = vand.u32 4294901760, %v209_v58  ;;  %v236_v6 = vsel %vm195_vm1, %v187_v1, 0 }
  0x1f   : > { %v3727_v3 = vsub.f32 %v233_v56, %v3719_v60  ;;  %v356_v4 = vsub.f32 %v3703_v53, %v355_v59  ;;  %v212_v8 = vsel %vm195_vm1, %v179_v2, 0  ;;  %v3743_v10 = vand.u32 4294901760, %v236_v6 }
  0x20   : > { %452 = vmatmul.f32.gmra.mxu3 %v3638_v15  ;;  %420 = vmatmul.f32.gmra.mxu1 %v3654_v24  ;;  %v292_v5 = vsub.f32 %v3713_v57, %v291_v63  ;;  %v3737_v7 = vsub.f32 %v209_v58, %v3722_v0  ;;  %v3746_v17 = vand.u32 4294901760, %v212_v8  ;;  %v239_v32 = vsel %vm195_vm1, %v188_v18, 0 }
  0x21   : > { %v363_v9 = vand.u32 4294901760, %v3727_v3  ;;  %v357_v11 = vand.u32 4294901760, %v356_v4  ;;  %v3751_v20 = vsub.f32 %v236_v6, %v3743_v10  ;;  %v215_v36 = vsel %vm195_vm1, %v180_v19, 0 }
  0x22   : > { %v293_v12 = vand.u32 4294901760, %v292_v5  ;;  %v299_v13 = vand.u32 4294901760, %v3737_v7  ;;  %v3761_v35 = vsub.f32 %v212_v8, %v3746_v17  ;;  %v3767_v38 = vand.u32 4294901760, %v239_v32 }
  0x23   : > { %v364_v25 = vsub.f32 %v3727_v3, %v363_v9  ;;  %v371_v37 = vand.u32 4294901760, %v3751_v20  ;;  %v3770_v44 = vand.u32 4294901760, %v215_v36 }
  0x24   : > { %v300_v31 = vsub.f32 %v3737_v7, %v299_v13  ;;  %v307_v42 = vand.u32 4294901760, %v3761_v35  ;;  %v3778_v52 = vsub.f32 %v239_v32, %v3767_v38 }
  0x25   : > { %342 = vmatmul.f32.gmra.mxu2 %v341_v47  ;;  %v365_v40 = vand.u32 4294901760, %v364_v25  ;;  %v189_v47 = vld [vmem:[%s3626_s20 + $0x78] sm:$0xff]  ;;  %v372_v51 = vsub.f32 %v3751_v20, %v371_v37  ;;  %v314_v55 = vsub.f32 %v215_v36, %v3770_v44 }
  0x26   : > { %278 = vmatmul.f32.gmra.mxu0 %v277_v48  ;;  %v301_v41 = vand.u32 4294901760, %v300_v31  ;;  %v181_v48 = vld [vmem:[%s3626_s20 + $0x38] sm:$0xff]  ;;  %v308_v54 = vsub.f32 %v3761_v35, %v307_v42  ;;  %v242_v56 = vsel %vm195_vm1, %v189_v47, 0 }
  0x27   : > { %v218_v58 = vsel %vm195_vm1, %v181_v48, 0  ;;  %v3787_v2 = vand.u32 4294901760, %v242_v56  ;;  %v315_v4 = vand.u32 4294901760, %v314_v55 }
  0x28   : > { %456 = vmatmul.f32.gmra.mxu3 %v3665_v30  ;;  %424 = vmatmul.f32.gmra.mxu1 %v3674_v34  ;;  %v309_v1 = vand.u32 4294901760, %v308_v54  ;;  %v321_v5 = vand.u32 4294901760, %v218_v58 }
  0x29   : > { %v3793_v8 = vsub.f32 %v242_v56, %v3787_v2 }
  0x2b   : > { %v387_v19 = vand.u32 4294901760, %v3793_v8 }
  0x2d   : > { %350 = vmatmul.f32.gmra.mxu2 %v349_v61  ;;  %v373_v61 = vand.u32 4294901760, %v372_v51  ;;  %v388_v32 = vsub.f32 %v3793_v8, %v387_v19 }
  0x2e   : > { %286 = vmatmul.f32.gmra.mxu0 %v285_v62  ;;  %v379_v62 = vand.u32 4294901760, %v3778_v52 }
  0x30   : > { %460 = vmatmul.f32.gmra.mxu3 %v3695_v46  ;;  %428 = vmatmul.f32.gmra.mxu1 %v3698_v50  ;;  %v380_v6 = vsub.f32 %v3778_v52, %v379_v62 }
  0x32   : > { %v381_v18 = vand.u32 4294901760, %v380_v6 }
  0x35   : > { %358 = vmatmul.f32.gmra.mxu2 %v357_v11  ;;  %v316_v11 = vsub.f32 %v314_v55, %v315_v4 }
  0x36   : > { %294 = vmatmul.f32.gmra.mxu0 %v293_v12  ;;  %v322_v12 = vsub.f32 %v218_v58, %v321_v5 }
  0x37   : > { %v317_v25 = vand.u32 4294901760, %v316_v11 }
  0x38   : > { %464 = vmatmul.f32.gmra.mxu3 %v3719_v60  ;;  %432 = vmatmul.f32.gmra.mxu1 %v3722_v0  ;;  %v323_v31 = vand.u32 4294901760, %v322_v12 }
  0x3a   : > { %v324_v36 = vsub.f32 %v322_v12, %v323_v31 }
  0x3d   : > { %366 = vmatmul.f32.gmra.mxu2 %v365_v40  ;;  %v389_v40 = vand.u32 4294901760, %v388_v32 }
  0x3e   : > { %302 = vmatmul.f32.gmra.mxu0 %v301_v41  ;;  %v325_v41 = vand.u32 4294901760, %v324_v36 }
  0x40   : > { %468 = vmatmul.f32.gmra.mxu3 %v3743_v10  ;;  %436 = vmatmul.f32.gmra.mxu1 %v3746_v17 }
  0x45   : > { %374 = vmatmul.f32.gmra.mxu2 %v373_v61 }
  0x46   : > { %310 = vmatmul.f32.gmra.mxu0 %v309_v1 }
  0x48   : > { %472 = vmatmul.f32.gmra.mxu3 %v3767_v38  ;;  %440 = vmatmul.f32.gmra.mxu1 %v3770_v44 }
  0x4d   : > { %382 = vmatmul.f32.gmra.mxu2 %v381_v18 }
  0x4e   : > { %318 = vmatmul.f32.gmra.mxu0 %v317_v25 }
  0x50   : > { %476 = vmatmul.f32.gmra.mxu3 %v3787_v2  ;;  %444 = vmatmul.f32.gmra.mxu1 %v321_v5 }
  0x55   : > { %390 = vmatmul.f32.gmra.mxu2 %v389_v40 }
  0x56   : > { %326 = vmatmul.f32.gmra.mxu0 %v325_v41 }
  0x58   : > { %599 = vmatmul.f32.vlgmr.msrb.gmra.mxu3 %v267_v27  ;;  %795 = vmatmul.f32.vlgmr.msrb.gmra.mxu1 %v3640_v16 }
  0x5d   : > { %500 = vmatmul.f32.vlgmr.msrb.gmra.mxu2 %v3652_v23 }
  0x5e   : > { %713 = vmatmul.f32.vlgmr.msrb.gmra.mxu0 %v3640_v16 }
  0x60   : > { %605 = vmatmul.f32.gmra.mxu3 %v275_v33  ;;  %799 = vmatmul.f32.gmra.mxu1 %v3654_v24 }
  0x65   : > { %505 = vmatmul.f32.gmra.mxu2 %v3662_v28  ;;  %v3843_v28 = vld [vmem:[%s6701_s2] ss:$0 sm:$0xff] }
  0x66   : > { %717 = vmatmul.f32.gmra.mxu0 %v3654_v24 }
  0x68   : > { %611 = vmatmul.f32.gmra.mxu3 %v283_v49  ;;  %803 = vmatmul.f32.gmra.mxu1 %v3674_v34 }
  0x6d   : > { %510 = vmatmul.f32.gmra.mxu2 %v3689_v43 }
  0x6e   : > { %721 = vmatmul.f32.gmra.mxu0 %v3674_v34 }
  0x70   : > { %617 = vmatmul.f32.gmra.mxu3 %v291_v63  ;;  %807 = vmatmul.f32.gmra.mxu1 %v3698_v50 }
  0x75   : > { %515 = vmatmul.f32.gmra.mxu2 %v3713_v57 }
  0x76   : > { %725 = vmatmul.f32.gmra.mxu0 %v3698_v50 }
  0x78   : > { %623 = vmatmul.f32.gmra.mxu3 %v299_v13  ;;  %811 = vmatmul.f32.gmra.mxu1 %v3722_v0 }
  0x7d   : > { %520 = vmatmul.f32.gmra.mxu2 %v3737_v7 }
  0x7e   : > { %729 = vmatmul.f32.gmra.mxu0 %v3722_v0 }
  0x80   : > { %629 = vmatmul.f32.gmra.mxu3 %v307_v42  ;;  %815 = vmatmul.f32.gmra.mxu1 %v3746_v17 }
  0x85   : > { %525 = vmatmul.f32.gmra.mxu2 %v3761_v35 }
  0x86   : > { %733 = vmatmul.f32.gmra.mxu0 %v3746_v17 }
  0x88   : > { %635 = vmatmul.f32.gmra.mxu3 %v315_v4  ;;  %819 = vmatmul.f32.gmra.mxu1 %v3770_v44 }
  0x8d   : > { %530 = vmatmul.f32.gmra.mxu2 %v314_v55 }
  0x8e   : > { %737 = vmatmul.f32.gmra.mxu0 %v3770_v44 }
  0x90   : > { %641 = vmatmul.f32.gmra.mxu3 %v323_v31  ;;  %823 = vmatmul.f32.gmra.mxu1 %v321_v5 }
  0x95   : > { %v3832_v16 = vpop.f32.mrf.mxu1  ;;  %535 = vmatmul.f32.gmra.mxu2 %v322_v12 }
  0x96   : > { %741 = vmatmul.f32.gmra.mxu0 %v321_v5 }
  0x98   : > { %647 = vmatmul.f32.gmra.mxu3 %v331_v26  ;;  %827 = vmatmul.f32.gmra.mxu1 %v3636_v14 }
  0x9b   : > { %v449_v23 = vpop.f32.mrf.mxu3  ;;  %v3837_v24 = vpop.f32.mrf.mxu0 }
  0x9c   : > { %v272_v40 = vadd.f32 %v3843_v28, %v3837_v24 }
  0x9d   : > { %v421_v27 = vpop.f32.mrf.mxu1  ;;  %540 = vmatmul.f32.gmra.mxu2 %v3646_v21 }
  0x9e   : > { %745 = vmatmul.f32.gmra.mxu0 %v3636_v14 }
  0xa0   : > { %653 = vmatmul.f32.gmra.mxu3 %v339_v29  ;;  %831 = vmatmul.f32.gmra.mxu1 %v3638_v15  ;;  %v335_v26 = vpop.f32.mrf.mxu2 }
  0xa1   : > { %v336_v33 = vadd.f32 %v3843_v28, %v335_v26 }
  0xa3   : > { %v453_v34 = vpop.f32.mrf.mxu3  ;;  %v279_v43 = vpop.f32.mrf.mxu0  ;;  %v3850_v49 = vadd.f32 %v449_v23, %v336_v33 }
  0xa4   : > { %v280_v21 = vadd.f32 %v3843_v28, %v279_v43 }
  0xa5   : > { %6811 = vst [vmem:[#allocation2_spill] sm:$0xff] %v3850_v49  ;;  %v425_v50 = vpop.f32.mrf.mxu1  ;;  %545 = vmatmul.f32.gmra.mxu2 %v3649_v22 }
  0xa6   : > { %v3854_v57 = vadd.f32 %v421_v27, %v280_v21  ;;  %749 = vmatmul.f32.gmra.mxu0 %v3638_v15  ;;  %v418_v27 = vadd.f32 %v3832_v16, %v272_v40 }
  0xa8   : > { %659 = vmatmul.f32.gmra.mxu3 %v347_v45  ;;  %835 = vmatmul.f32.gmra.mxu1 %v3665_v30  ;;  %v343_v14 = vpop.f32.mrf.mxu2 }
  0xa9   : > { %v344_v29 = vadd.f32 %v3843_v28, %v343_v14 }
  0xab   : > { %v457_v63 = vpop.f32.mrf.mxu3  ;;  %v287_v0 = vpop.f32.mrf.mxu0  ;;  %v3861_v7 = vadd.f32 %v453_v34, %v344_v29 }
  0xac   : > { %v288_v13 = vadd.f32 %v3843_v28, %v287_v0 }
  0xad   : > { %6812 = vst [vmem:[#allocation3_spill] sm:$0xff] %v3861_v7  ;;  %v429_v17 = vpop.f32.mrf.mxu1  ;;  %550 = vmatmul.f32.gmra.mxu2 %v3679_v39 }
  0xae   : > { %v3865_v22 = vadd.f32 %v425_v50, %v288_v13  ;;  %753 = vmatmul.f32.gmra.mxu0 %v3665_v30 }
  0xb0   : > { %665 = vmatmul.f32.gmra.mxu3 %v355_v59  ;;  %839 = vmatmul.f32.gmra.mxu1 %v3695_v46  ;;  %v351_v15 = vpop.f32.mrf.mxu2 }
  0xb1   : > { %v352_v45 = vadd.f32 %v3843_v28, %v351_v15 }
  0xb3   : > { %v461_v35 = vpop.f32.mrf.mxu3  ;;  %v295_v42 = vpop.f32.mrf.mxu0  ;;  %v3872_v44 = vadd.f32 %v457_v63, %v352_v45 }
  0xb4   : > { %v296_v47 = vadd.f32 %v3843_v28, %v295_v42 }
  0xb5   : > { %6813 = vst [vmem:[#allocation4_spill] sm:$0xff] %v3872_v44  ;;  %v3875_v48 = vpop.f32.mrf.mxu1  ;;  %555 = vmatmul.f32.gmra.mxu2 %v3703_v53 }
  0xb6   : > { %v3878_v39 = vadd.f32 %v429_v17, %v296_v47  ;;  %757 = vmatmul.f32.gmra.mxu0 %v3695_v46 }
  0xb8   : > { %671 = vmatmul.f32.gmra.mxu3 %v363_v9  ;;  %843 = vmatmul.f32.gmra.mxu1 %v3719_v60  ;;  %v359_v30 = vpop.f32.mrf.mxu2 }
  0xb9   : > { %v360_v59 = vadd.f32 %v3843_v28, %v359_v30 }
  0xbb   : > { %v465_v51 = vpop.f32.mrf.mxu3  ;;  %v3885_v54 = vpop.f32.mrf.mxu0  ;;  %v3887_v55 = vadd.f32 %v461_v35, %v360_v59 }
  0xbd   : > { %6814 = vst [vmem:[#allocation5_spill] sm:$0xff] %v3887_v55  ;;  %560 = vmatmul.f32.gmra.mxu2 %v3727_v3  ;;  %v437_v53 = vpop.f32.mrf.mxu1 }
  0xbe   : > { %761 = vmatmul.f32.gmra.mxu0 %v3719_v60 }
  0xc0   : > { %677 = vmatmul.f32.gmra.mxu3 %v371_v37  ;;  %847 = vmatmul.f32.gmra.mxu1 %v3743_v10  ;;  %v367_v46 = vpop.f32.mrf.mxu2 }
  0xc1   : > { %v368_v9 = vadd.f32 %v3843_v28, %v367_v46 }
  0xc3   : > { %v469_v56 = vpop.f32.mrf.mxu3  ;;  %v311_v58 = vpop.f32.mrf.mxu0  ;;  %v3895_v61 = vadd.f32 %v465_v51, %v368_v9 }
  0xc4   : > { %v312_v1 = vadd.f32 %v3843_v28, %v311_v58 }
  0xc5   : > { %6815 = vst [vmem:[#allocation6_spill] sm:$0xff] %v3895_v61  ;;  %565 = vmatmul.f32.gmra.mxu2 %v3751_v20  ;;  %v441_v37 = vpop.f32.mrf.mxu1 }
  0xc6   : > { %v3899_v3 = vadd.f32 %v437_v53, %v312_v1  ;;  %765 = vmatmul.f32.gmra.mxu0 %v3743_v10  ;;  %v6707_v1 = vmov 2475754826  }
  0xc8   : > { %683 = vmatmul.f32.gmra.mxu3 %v379_v62  ;;  %851 = vmatmul.f32.gmra.mxu1 %v3767_v38  ;;  %v375_v60 = vpop.f32.mrf.mxu2 }
  0xc9   : > { %v376_v4 = vadd.f32 %v3843_v28, %v375_v60 }
  0xcb   : > { %v473_v5 = vpop.f32.mrf.mxu3  ;;  %v319_v6 = vpop.f32.mrf.mxu0  ;;  %v3906_v11 = vadd.f32 %v469_v56, %v376_v4  ;;  %v6719_v56 = vmov 683565275   ;;  %v6705_v4 = vmov 2131351028  }
  0xcc   : > { %v320_v12 = vadd.f32 %v3843_v28, %v319_v6 }
  0xcd   : > { %6816 = vst [vmem:[#allocation7_spill] sm:$0xff] %v3906_v11  ;;  %570 = vmatmul.f32.gmra.mxu2 %v3778_v52  ;;  %v445_v25 = vpop.f32.mrf.mxu1 }
  0xce   : > { %v3910_v20 = vadd.f32 %v441_v37, %v320_v12  ;;  %769 = vmatmul.f32.gmra.mxu0 %v3767_v38  ;;  %v6714_v12 = vmov 2102212464  }
  0xd0   : > { %689 = vmatmul.f32.gmra.mxu3 %v387_v19  ;;  %855 = vmatmul.f32.gmra.mxu1 %v3787_v2  ;;  %v383_v10 = vpop.f32.mrf.mxu2 }
  0xd1   : > { %v384_v62 = vadd.f32 %v3843_v28, %v383_v10 }
  0xd3   : > { %v327_v18 = vpop.f32.mrf.mxu0  ;;  %v3917_v31 = vadd.f32 %v473_v5, %v384_v62  ;;  %v477_v36 = vpop.f32.mrf.mxu3 }
  0xd4   : > { %v328_v32 = vadd.f32 %v3843_v28, %v327_v18  ;;  %v6717_v18 = vmov 920167782  }
  0xd5   : > { %6817 = vst [vmem:[#allocation8_spill] sm:$0xff] %v3917_v31  ;;  %575 = vmatmul.f32.gmra.mxu2 %v3793_v8  ;;  %v796_v43 = vpop.f32.mrf.mxu1 }
  0xd6   : > { %v3921_v52 = vadd.f32 %v445_v25, %v328_v32  ;;  %773 = vmatmul.f32.gmra.mxu0 %v3787_v2 }
  0xd8   : > { %v391_v38 = vpop.f32.mrf.mxu2 }
  0xd9   : > { %v392_v19 = vadd.f32 %v3843_v28, %v391_v38 }
  0xdb   : > { %v3927_v41 = vadd.f32 %v477_v36, %v392_v19  ;;  %v600_v23 = vpop.f32.mrf.mxu3  ;;  %v714_v33 = vpop.f32.mrf.mxu0  ;;  %v6709_v36 = vmov 1326507024  }
  0xdd   : > { %6818 = vst [vmem:[#allocation9_spill] sm:$0xff] %v3927_v41  ;;  %v800_v17 = vpop.f32.mrf.mxu1  ;;  %v6828_v41 = vmov 920167782  }
  0xe0   : > { %v501_v26 = vpop.f32.mrf.mxu2 }
  0xe1   : > { %v502_v34 = vadd.f32 %v501_v26, %v418_v27 }
  0xe3   : > { %v601_v8 = vadd.f32 %v600_v23, %v502_v34  ;;  %v606_v14 = vpop.f32.mrf.mxu3  ;;  %v718_v24 = vpop.f32.mrf.mxu0 }
  0xe5   : > { %v715_v21 = vadd.f32 %v714_v33, %v601_v8 }
  0xe7   : > { %v3930_v50 = vadd.f32 %v796_v43, %v715_v21 }
  0xe8   : > { %v506_v2 = vpop.f32.mrf.mxu2 }
  0xe9   : > { %6819 = vst [vmem:[#allocation10_spill] sm:$0xff] %v3930_v50  ;;  %v862_v29 = vand.u32 2139095040, %v3930_v50  ;;  %v507_v63 = vadd.f32 %v506_v2, %v3854_v57  ;;  %v6704_v45 = vand.u32 2147483647, %v3930_v50 }
  0xeb   : > { %v863_v0 = vshrl.u32 %v862_v29, 23  ;;  %v607_v13 = vadd.f32 %v606_v14, %v507_v63  ;;  %v866_v47 = vand.u32 8388607, %v6704_v45 }
  0xed   : > { %v3486_v15 = vadd.s32 4294967169, %v863_v0  ;;  %v719_v16 = vadd.f32 %v718_v24, %v607_v13  ;;  %v867_v46 = vor.u32 8388608, %v866_v47 }
  0xef   : > { %v869_v35 = vadd.s32 1, %v3486_v15  ;;  %v3935_v42 = vadd.f32 %v800_v17, %v719_v16  ;;  %v3975_v8 = vshll.u32 %v867_v46, 8 }
  0xf0   : > { %v511_v47 = vpop.f32.mrf.mxu2 }
  0xf1   : > { %6820 = vst [vmem:[#allocation11_spill] sm:$0xff] %v3935_v42  ;;  %vm870_vm2 = vcmp.gt.s32.totalorder %v869_v35, 0  ;;  %v1017_v59 = vand.u32 2139095040, %v3935_v42  ;;  %v908_v13 = vand.u32 65535, %v3975_v8 }
  0xf2   : > { %v871_v30 = vsel %vm870_vm2, %v869_v35, 0  ;;  %v6703_v35 = vand.u32 2147483647, %v3935_v42 }
  0xf3   : > { %v873_v51 = vand.u32 31, %v871_v30  ;;  %v1018_v53 = vshrl.u32 %v1017_v59, 23  ;;  %v3942_v9 = vshrl.u32 %v871_v30, 5 }
  0xf5   : > { %v3940_v57 = vsub.s32 32, %v873_v51  ;;  %v876_v58 = vshll.u32 %v6719_v56, %v873_v51  ;;  %v879_v60 = vshll.u32 %v6707_v1, %v873_v51  ;;  %v882_v6 = vshll.u32 %v6705_v4, %v873_v51 }
  0xf6   : > { %v885_v62 = vshll.u32 %v6714_v12, %v873_v51  ;;  %v888_v32 = vshll.u32 %v6717_v18, %v873_v51  ;;  %v3489_v27 = vadd.s32 4294967169, %v1018_v53  ;;  %vm891_vm3 = vcmp.lt.s32.totalorder %v3942_v9, 1 }
  0xf7   : > { %v877_v37 = vshrl.u32 %v6707_v1, %v3940_v57  ;;  %v880_v5 = vshrl.u32 %v6705_v4, %v3940_v57  ;;  %v883_v10 = vshrl.u32 %v6714_v12, %v3940_v57  ;;  %v886_v25 = vshrl.u32 %v6717_v18, %v3940_v57 }
  0xf8   : > { %v889_v38 = vshrl.u32 %v6709_v36, %v3940_v57  ;;  %vm894_vm4 = vcmp.lt.s32.totalorder %v3942_v9, 4  ;;  %vm893_vm5 = vcmp.lt.s32.totalorder %v3942_v9, 3  ;;  %v1024_v14 = vadd.s32 1, %v3489_v27 }
  0xf9   : > { %v3959_v19 = vor.u32 %v877_v37, %v876_v58  ;;  %v3961_v40 = vor.u32 %v880_v5, %v879_v60  ;;  %v3963_v23 = vor.u32 %v883_v10, %v882_v6  ;;  %v887_v26 = vor.u32 %v886_v25, %v885_v62  ;;  %v612_v6 = vpop.f32.mrf.mxu3 }
  0xfa   : > { %v890_v33 = vor.u32 %v889_v38, %v888_v32  ;;  %vm892_vm6 = vcmp.lt.s32.totalorder %v3942_v9, 2  ;;  %vm1025_vm7 = vcmp.gt.s32.totalorder %v1024_v14, 0  ;;  %v909_v51 = vshrl.u32 %v3975_v8, 16 }
  0xfb   : > { %v899_v34 = vsel %vm891_vm3, %v3959_v19, %v3961_v40  ;;  %v903_v43 = vsel %vm891_vm3, %v3961_v40, %v3963_v23  ;;  %v900_v21 = vsel %vm894_vm4, %v887_v26, 920167782  ;;  %v1026_v59 = vsel %vm1025_vm7, %v1024_v14, 0 }
  0xfc   : > { %v904_v2 = vsel %vm894_vm4, %v890_v33, 1326507024  ;;  %v901_v29 = vsel %vm893_vm5, %v3963_v23, %v900_v21  ;;  %v512_v58 = vadd.f32 %v511_v47, %v3865_v22  ;;  %v1021_v5 = vand.u32 8388607, %v6703_v35 }
  0xfd   : > { %v905_v63 = vsel %vm893_vm5, %v887_v26, %v904_v2  ;;  %v902_v24 = vsel %vm892_vm6, %v899_v34, %v901_v29  ;;  %v1028_v62 = vand.u32 31, %v1026_v59  ;;  %v4012_v14 = vshrl.u32 %v1026_v59, 5 }
  0xfe   : > { %v906_v0 = vsel %vm892_vm6, %v903_v43, %v905_v63  ;;  %v933_v15 = vshrl.u32 %v902_v24, 16  ;;  %v932_v37 = vand.u32 65535, %v902_v24  ;;  %v613_v38 = vadd.f32 %v612_v6, %v512_v58 }
  0xff   : > { %v911_v17 = vshrl.u32 %v906_v0, 16  ;;  %v910_v16 = vand.u32 65535, %v906_v0  ;;  %v4006_v32 = vsub.s32 32, %v1028_v62  ;;  %v1022_v22 = vor.u32 8388608, %v1021_v5 }
 0x100   : > { %v3998_v46 = vmul.u32 %v933_v15, %v908_v13  ;;  %v934_v26 = vmul.u32 %v932_v37, %v908_v13  ;;  %v4008_v33 = vmul.u32 %v932_v37, %v909_v51  ;;  %v6712_v43 = vmov 0  }
 0x101   : > { %v3994_v30 = vmul.u32 %v911_v17, %v908_v13  ;;  %v912_v60 = vmul.u32 %v910_v16, %v908_v13  ;;  %v4003_v10 = vmul.u32 %v910_v16, %v909_v51  ;;  %v915_v27 = vmul.u32 %v911_v17, %v909_v51 }
 0x102   : > { %v938_v25 = vshll.u32 %v3998_v46, 16  ;;  %v1031_v29 = vshll.u32 %v6719_v56, %v1028_v62  ;;  %v1032_v63 = vshrl.u32 %v6707_v1, %v4006_v32  ;;  %v1034_v24 = vshll.u32 %v6707_v1, %v1028_v62 }
 0x103   : > { %v916_v53 = vshll.u32 %v3994_v30, 16  ;;  %v918_v34 = vshll.u32 %v4003_v10, 16  ;;  %v1035_v0 = vshrl.u32 %v6705_v4, %v4006_v32  ;;  %v1037_v16 = vshll.u32 %v6705_v4, %v1028_v62 }
 0x104   : > { %vm4020_vm9 = vc.u32 %v934_v26, %v938_v25  ;;  %v4024_v17 = vadd.s32 %v938_v25, %v934_v26  ;;  %v1038_v47 = vshrl.u32 %v6714_v12, %v4006_v32  ;;  %v4029_v59 = vor.u32 %v1032_v63, %v1031_v29 }
 0x105   : > { %vm920_vm8 = vc.u32 %v912_v60, %v916_v53  ;;  %v922_v2 = vadd.s32 %v916_v53, %v912_v60  ;;  %v4031_v53 = vor.u32 %v1035_v0, %v1034_v24  ;;  %v1040_v58 = vshll.u32 %v6714_v12, %v1028_v62 }
 0x106   : > { %v921_v21 = vsel %vm920_vm8, 1, %v6712_v43  ;;  %v1041_v60 = vshrl.u32 %v6717_v18, %v4006_v32  ;;  %v4036_v37 = vor.u32 %v1038_v47, %v1037_v16  ;;  %v1043_v5 = vshll.u32 %v6717_v18, %v1028_v62 }
 0x107   : > { %vm924_vm10 = vc.u32 %v922_v2, %v918_v34  ;;  %v1044_v6 = vshrl.u32 %v6709_v36, %v4006_v32  ;;  %v937_v25 = vmul.u32 %v933_v15, %v909_v51  ;;  %v940_v26 = vshll.u32 %v4008_v33, 16 }
 0x108   : > { %v1042_v29 = vor.u32 %v1041_v60, %v1040_v58  ;;  %v4042_v63 = vshll.u32 %v1022_v22, 8  ;;  %v923_v24 = vadd.s32 %v921_v21, %v915_v27  ;;  %v943_v0 = vsel %vm4020_vm9, 1, %v6712_v43  ;;  %v722_v58 = vpop.f32.mrf.mxu0 }
 0x109   : > { %v1045_v35 = vor.u32 %v1044_v6, %v1043_v5  ;;  %vm1046_vm11 = vcmp.lt.s32.totalorder %v4012_v14, 1  ;;  %v925_v34 = vsel %vm924_vm10, 1, %v6712_v43  ;;  %vm946_vm12 = vc.u32 %v4024_v17, %v940_v26 }
 0x10a   : > { %vm1049_vm13 = vcmp.lt.s32.totalorder %v4012_v14, 4  ;;  %v1054_v15 = vsel %vm1046_vm11, %v4029_v59, %v4031_v53  ;;  %vm1048_vm14 = vcmp.lt.s32.totalorder %v4012_v14, 3  ;;  %v1058_v62 = vsel %vm1046_vm11, %v4031_v53, %v4036_v37 }
 0x10b   : > { %v1055_v51 = vsel %vm1049_vm13, %v1042_v29, 920167782  ;;  %v1059_v27 = vsel %vm1049_vm13, %v1045_v35, 1326507024  ;;  %v945_v22 = vadd.s32 %v943_v0, %v937_v25  ;;  %vm1047_vm15 = vcmp.lt.s32.totalorder %v4012_v14, 2 }
 0x10c   : > { %v1056_v21 = vsel %vm1048_vm14, %v4036_v37, %v1055_v51  ;;  %v1060_v2 = vsel %vm1048_vm14, %v1042_v29, %v1059_v27  ;;  %v947_v13 = vsel %vm946_vm12, 1, %v6712_v43  ;;  %v927_v5 = vadd.s32 %v925_v34, %v923_v24  ;;  %v804_v29 = vpop.f32.mrf.mxu1 }
 0x10d   : > { %v1057_v16 = vsel %vm1047_vm15, %v1054_v15, %v1056_v21  ;;  %v1061_v47 = vsel %vm1047_vm15, %v1058_v62, %v1060_v2  ;;  %v1063_v6 = vand.u32 65535, %v4042_v63  ;;  %v949_v25 = vadd.s32 %v947_v13, %v945_v22 }
 0x10e   : > { %v1066_v35 = vshrl.u32 %v1061_v47, 16  ;;  %v1088_v60 = vshrl.u32 %v1057_v16, 16  ;;  %v723_v0 = vadd.f32 %v722_v58, %v613_v38  ;;  %v917_v51 = vshrl.u32 %v3994_v30, 16 }
 0x10f   : > { %v939_v27 = vshrl.u32 %v3998_v46, 16  ;;  %v1087_v21 = vand.u32 65535, %v1057_v16  ;;  %v1065_v62 = vand.u32 65535, %v1061_v47  ;;  %v919_v24 = vshrl.u32 %v4003_v10, 16 }
 0x110   : > { %v1090_v45 = vmul.u32 %v1088_v60, %v1063_v6  ;;  %v4078_v4 = vmul.u32 %v1066_v35, %v1063_v6  ;;  %v928_v15 = vadd.s32 %v927_v5, %v917_v51  ;;  %v4080_v2 = vadd.f32 %v804_v29, %v723_v0 }
 0x111   : > { %v950_v1 = vadd.s32 %v949_v25, %v939_v27  ;;  %v1064_v34 = vshrl.u32 %v4042_v63, 16  ;;  %v941_v38 = vshrl.u32 %v4008_v33, 16  ;;  %v896_v46 = vsel %vm894_vm4, %v3963_v23, 2102212464 }
 0x112   : > { %6823 = vst [vmem:[#allocation12_spill] sm:$0xff] %v4080_v2  ;;  %v1093_v22 = vshll.u32 %v1090_v45, 16  ;;  %v1071_v30 = vshll.u32 %v4078_v4, 16  ;;  %v4089_v13 = vadd.s32 %v928_v15, %v919_v24  ;;  %v1089_v16 = vmul.u32 %v1087_v21, %v1063_v6 }
 0x113   : > { %v4091_v58 = vmul.u32 %v1087_v21, %v1064_v34  ;;  %v951_v47 = vadd.s32 %v950_v1, %v941_v38  ;;  %v1067_v5 = vmul.u32 %v1065_v62, %v1063_v6  ;;  %v1069_v25 = vmul.u32 %v1065_v62, %v1064_v34 }
 0x114   : > { %v1172_v10 = vand.u32 2139095040, %v4080_v2  ;;  %v875_v0 = vshrl.u32 %v6719_v56, %v3940_v57  ;;  %vm1097_vm0 = vc.u32 %v1089_v16, %v1093_v22  ;;  %v1099_v33 = vadd.s32 %v1093_v22, %v1089_v16 }
 0x115   : > { %v4097_v51 = vadd.s32 %v4024_v17, %v940_v26  ;;  %vm1075_vm1 = vc.u32 %v1067_v5, %v1071_v30  ;;  %v1077_v23 = vadd.s32 %v1071_v30, %v1067_v5  ;;  %v897_v1 = vsel %vm893_vm5, %v3961_v40, %v896_v46 }
 0x116   : > { %v895_v29 = vsel %vm891_vm3, %v875_v0, %v3959_v19  ;;  %v1095_v6 = vshll.u32 %v4091_v58, 16  ;;  %v1173_v27 = vshrl.u32 %v1172_v10, 23  ;;  %v955_v57 = vadd.s32 1, %v951_v47 }
 0x117   : > { %vm954_vm2 = vc.u32 %v4089_v13, %v4097_v51  ;;  %v1073_v15 = vshll.u32 %v1069_v25, 16  ;;  %v1098_v17 = vsel %vm1097_vm0, 1, %v6712_v43  ;;  %v1076_v26 = vsel %vm1075_vm1, 1, %v6712_v43 }
 0x118   : > { %v1092_v21 = vmul.u32 %v1088_v60, %v1064_v34  ;;  %vm1101_vm4 = vc.u32 %v1099_v33, %v1095_v6  ;;  %v3492_v62 = vadd.s32 4294967169, %v1173_v27  ;;  %v898_v19 = vsel %vm892_vm6, %v895_v29, %v897_v1 }
 0x119   : > { %v1070_v24 = vmul.u32 %v1066_v35, %v1064_v34  ;;  %vm1079_vm3 = vc.u32 %v1077_v23, %v1073_v15  ;;  %v956_v38 = vsel %vm954_vm2, %v955_v57, %v951_v47  ;;  %v1102_v46 = vsel %vm1101_vm4, 1, %v6712_v43 }
 0x11a   : > { %v1100_v40 = vadd.s32 %v1098_v17, %v1092_v21  ;;  %v1179_v22 = vadd.s32 1, %v3492_v62  ;;  %v952_v16 = vmul.u32 %v3975_v8, %v898_v19  ;;  %v1080_v5 = vsel %vm1079_vm3, 1, %v6712_v43 }
 0x11b   : > { %v1078_v30 = vadd.s32 %v1076_v26, %v1070_v24  ;;  %v1094_v9 = vshrl.u32 %v1090_v45, 16  ;;  %v1030_v35 = vshrl.u32 %v6719_v56, %v4006_v32  ;;  %v1072_v34 = vshrl.u32 %v4078_v4, 16 }
 0x11c   : > { %vm1180_vm5 = vcmp.gt.s32.totalorder %v1179_v22, 0  ;;  %v957_v60 = vadd.s32 %v956_v38, %v952_v16  ;;  %v1104_v0 = vadd.s32 %v1102_v46, %v1100_v40  ;;  %v6711_v8 = vand.u32 2147483647, %v4080_v2 }
 0x11d   : > { %v1181_v10 = vsel %vm1180_vm5, %v1179_v22, 0  ;;  %v1082_v36 = vadd.s32 %v1080_v5, %v1078_v30  ;;  %v1050_v1 = vsel %vm1046_vm11, %v1030_v35, %v4029_v59  ;;  %v1051_v57 = vsel %vm1049_vm13, %v4036_v37, 2102212464 }
 0x11e   : > { %v1183_v27 = vand.u32 31, %v1181_v10  ;;  %v958_v47 = vadd.s32 536870912, %v957_v60  ;;  %v1105_v23 = vadd.s32 %v1104_v0, %v1094_v9  ;;  %v1074_v17 = vshrl.u32 %v1069_v25, 16 }
 0x11f   : > { %v1083_v45 = vadd.s32 %v1082_v36, %v1072_v34  ;;  %v1096_v32 = vshrl.u32 %v4091_v58, 16  ;;  %v6824_v26 = vmov 1326507024   ;;  %v4133_v62 = vshrl.u32 %v1181_v10, 5 }
 0x120   : > { %v4115_v29 = vsub.s32 32, %v1183_v27  ;;  %v1195_v4 = vshll.u32 %v6714_v12, %v1183_v27  ;;  %v6825_v59 = vmov 2475754826   ;;  %v6826_v24 = vmov 2131351028  }
 0x121   : > { %v4141_v40 = vshrl.u32 %v958_v47, 30  ;;  %v1106_v25 = vadd.s32 %v1105_v23, %v1096_v32  ;;  %v1198_v22 = vshll.u32 %v6717_v18, %v1183_v27  ;;  %v4144_v38 = vadd.s32 %v1083_v45, %v1074_v17  ;;  %v516_v23 = vpop.f32.mrf.mxu2 }
 0x122   : > { %v1196_v15 = vshrl.u32 %v6717_v18, %v4115_v29  ;;  %v1199_v21 = vshrl.u32 %v6824_v26, %v4115_v29  ;;  %v1187_v19 = vshrl.u32 %v6825_v59, %v4115_v29  ;;  %v1190_v37 = vshrl.u32 %v6826_v24, %v4115_v29 }
 0x123   : > { %v1193_v36 = vshrl.u32 %v6714_v12, %v4115_v29  ;;  %v1186_v30 = vshll.u32 %v6719_v56, %v1183_v27  ;;  %v1189_v46 = vshll.u32 %v6825_v59, %v1183_v27  ;;  %v1192_v16 = vshll.u32 %v6826_v24, %v1183_v27 }
 0x124   : > { %v1197_v58 = vor.u32 %v1196_v15, %v1195_v4  ;;  %v1052_v5 = vsel %vm1048_vm14, %v4031_v53, %v1051_v57  ;;  %v4152_v10 = vadd.s32 %v1099_v33, %v1095_v6  ;;  %v1176_v0 = vand.u32 8388607, %v6711_v8 }
 0x125   : > { %v1200_v9 = vor.u32 %v1199_v21, %v1198_v22  ;;  %v4156_v35 = vor.u32 %v1187_v19, %v1186_v30  ;;  %v4158_v34 = vor.u32 %v1190_v37, %v1189_v46  ;;  %v4160_v47 = vor.u32 %v1193_v36, %v1192_v16  ;;  %v726_v46 = vpop.f32.mrf.mxu0 }
 0x126   : > { %vm1204_vm6 = vcmp.lt.s32.totalorder %v4133_v62, 4  ;;  %v1110_v27 = vadd.s32 1, %v1106_v25  ;;  %v960_v53 = vshll.u32 %v4141_v40, 30  ;;  %v1053_v33 = vsel %vm1047_vm15, %v1050_v1, %v1052_v5  ;;  %v618_v1 = vpop.f32.mrf.mxu3 }
 0x127   : > { %v1210_v45 = vsel %vm1204_vm6, %v1197_v58, 920167782  ;;  %vm1109_vm7 = vc.u32 %v4144_v38, %v4152_v10  ;;  %vm1201_vm8 = vcmp.lt.s32.totalorder %v4133_v62, 1  ;;  %vm1203_vm9 = vcmp.lt.s32.totalorder %v4133_v62, 3 }
 0x128   : > { %v1214_v6 = vsel %vm1204_vm6, %v1200_v9, 1326507024  ;;  %v517_v57 = vadd.f32 %v516_v23, %v3878_v39  ;;  %v1177_v15 = vor.u32 8388608, %v1176_v0  ;;  %v1209_v17 = vsel %vm1201_vm8, %v4156_v35, %v4158_v34  ;;  %v808_v9 = vpop.f32.mrf.mxu1 }
 0x129   : > { %v1211_v14 = vsel %vm1203_vm9, %v4160_v47, %v1210_v45  ;;  %v1111_v32 = vsel %vm1109_vm7, %v1110_v27, %v1106_v25  ;;  %v1213_v4 = vsel %vm1201_vm8, %v4158_v34, %v4160_v47  ;;  %v1215_v39 = vsel %vm1203_vm9, %v1197_v58, %v1214_v6 }
 0x12a   : > { %v4188_v21 = vsub.s32 %v957_v60, %v960_v53  ;;  %v1107_v19 = vmul.u32 %v4042_v63, %v1053_v33  ;;  %vm1202_vm10 = vcmp.lt.s32.totalorder %v4133_v62, 2  ;;  %v619_v36 = vadd.f32 %v618_v1, %v517_v57 }
 0x12b   : > { %v1212_v37 = vsel %vm1202_vm10, %v1209_v17, %v1211_v14  ;;  %v1216_v25 = vsel %vm1202_vm10, %v1213_v4, %v1215_v39  ;;  %v4196_v30 = vshll.u32 %v1177_v15, 8 }
 0x12c   : > { %v1112_v22 = vadd.s32 %v1111_v32, %v1107_v19  ;;  %v963_v16 = vsub.s32 0, %v4188_v21  ;;  %v1243_v58 = vshrl.u32 %v1212_v37, 16  ;;  %vm962_vm11 = vcmp.lt.s32.totalorder %v4188_v21, 0 }
 0x12d   : > { %v1221_v60 = vshrl.u32 %v1216_v25, 16  ;;  %v727_v63 = vadd.f32 %v726_v46, %v619_v36  ;;  %v1218_v0 = vand.u32 65535, %v4196_v30  ;;  %v1242_v6 = vand.u32 65535, %v1212_v37 }
 0x12e   : > { %v1113_v5 = vadd.s32 536870912, %v1112_v22  ;;  %v964_v23 = vsel %vm962_vm11, %v963_v16, %v4188_v21  ;;  %v1220_v15 = vand.u32 65535, %v1216_v25  ;;  %v1219_v17 = vshrl.u32 %v4196_v30, 16 }
 0x12f   : > { %v4202_v27 = vmul.u32 %v1243_v58, %v1218_v0  ;;  %v4204_v45 = vmul.u32 %v1221_v60, %v1218_v0  ;;  %v4206_v53 = vadd.f32 %v808_v9, %v727_v63  ;;  %v965_v57 = vclz %v964_v23 }
 0x130   : > { %v4208_v33 = vshrl.u32 %v1113_v5, 30  ;;  %v1244_v39 = vmul.u32 %v1242_v6, %v1218_v0  ;;  %v4215_v19 = vmul.u32 %v1242_v6, %v1219_v17  ;;  %v1222_v46 = vmul.u32 %v1220_v15, %v1218_v0 }
 0x131   : > { %6827 = vst [vmem:[#allocation13_spill] sm:$0xff] %v4206_v53  ;;  %v1248_v14 = vshll.u32 %v4202_v27, 16  ;;  %v1226_v1 = vshll.u32 %v4204_v45, 16  ;;  %v1327_v32 = vand.u32 2139095040, %v4206_v53  ;;  %v3487_v36 = vadd.s32 4294967294, %v965_v57 }
 0x132   : > { %v1115_v4 = vshll.u32 %v4208_v33, 30  ;;  %v4217_v16 = vmul.u32 %v1220_v15, %v1219_v17  ;;  %v6716_v23 = vshll.u32 %v4215_v19, 16  ;;  %v304_v0 = vadd.f32 %v3843_v28, %v3885_v54 }
 0x133   : > { %v1328_v37 = vshrl.u32 %v1327_v32, 23  ;;  %vm1252_vm12 = vc.u32 %v1244_v39, %v1248_v14  ;;  %v4219_v25 = vadd.s32 %v1248_v14, %v1244_v39  ;;  %vm1230_vm13 = vc.u32 %v1222_v46, %v1226_v1 }
 0x134   : > { %v1232_v63 = vadd.s32 %v1226_v1, %v1222_v46  ;;  %v4221_v9 = vsub.s32 %v1112_v22, %v1115_v4  ;;  %vm3488_vm14 = vcmp.lt.s32.totalorder %v3487_v36, 0  ;;  %v1228_v8 = vshll.u32 %v4217_v16, 16 }
 0x135   : > { %v3495_v5 = vadd.s32 4294967169, %v1328_v37  ;;  %v1253_v6 = vsel %vm1252_vm12, 1, %v6712_v43  ;;  %v1231_v15 = vsel %vm1230_vm13, 1, %v6712_v43  ;;  %v1247_v14 = vmul.u32 %v1243_v58, %v1219_v17 }
 0x136   : > { %vm1256_vm15 = vc.u32 %v4219_v25, %v6716_v23  ;;  %v1225_v22 = vmul.u32 %v1221_v60, %v1219_v17  ;;  %vm1234_vm0 = vc.u32 %v1232_v63, %v1228_v8  ;;  %v4232_v1 = vsel %vm3488_vm14, 0, %v3487_v36 }
 0x137   : > { %v1334_v57 = vadd.s32 1, %v3495_v5  ;;  %v1118_v32 = vsub.s32 0, %v4221_v9  ;;  %v1255_v4 = vadd.s32 %v1253_v6, %v1247_v14  ;;  %vm1117_vm2 = vcmp.lt.s32.totalorder %v4221_v9, 0  ;;  %v521_v5 = vpop.f32.mrf.mxu2 }
 0x138   : > { %v1233_v46 = vadd.s32 %v1231_v15, %v1225_v22  ;;  %v1257_v28 = vsel %vm1256_vm15, 1, %v6712_v43  ;;  %v434_v58 = vadd.f32 %v3875_v48, %v304_v0  ;;  %v1235_v37 = vsel %vm1234_vm0, 1, %v6712_v43 }
 0x139   : > { %vm1335_vm1 = vcmp.gt.s32.totalorder %v1334_v57, 0  ;;  %v953_v8 = vadd.s32 %v4097_v51, %v4089_v13  ;;  %v969_v60 = vsub.s32 32, %v4232_v1  ;;  %v973_v17 = vsub.s32 4294967266, %v4232_v1 }
 0x13a   : > { %v1336_v39 = vsel %vm1335_vm1, %v1334_v57, 0  ;;  %v1119_v63 = vsel %vm1117_vm2, %v1118_v32, %v4221_v9  ;;  %v1249_v6 = vshrl.u32 %v4202_v27, 16  ;;  %v1259_v57 = vadd.s32 %v1257_v28, %v1255_v4 }
 0x13b   : > { %v1338_v54 = vand.u32 31, %v1336_v39  ;;  %v6721_v15 = vand.u32 2147483647, %v4206_v53  ;;  %v1237_v48 = vadd.s32 %v1235_v37, %v1233_v46  ;;  %v522_v51 = vadd.f32 %v521_v5, %v434_v58 }
 0x13c   : > { %v4252_v14 = vshrl.u32 %v1336_v39, 5  ;;  %v1227_v39 = vshrl.u32 %v4204_v45, 16  ;;  %v1260_v58 = vadd.s32 %v1259_v57, %v1249_v6  ;;  %v974_v11 = vadd.s32 127, %v973_v17  ;;  %v730_v17 = vpop.f32.mrf.mxu0 }
 0x13d   : > { %v4243_v36 = vsub.s32 32, %v1338_v54  ;;  %v1350_v32 = vshll.u32 %v6714_v12, %v1338_v54  ;;  %v1341_v4 = vshll.u32 %v6719_v56, %v1338_v54  ;;  %v1344_v46 = vshll.u32 %v6825_v59, %v1338_v54 }
 0x13e   : > { %v1347_v28 = vshll.u32 %v6826_v24, %v1338_v54  ;;  %v1331_v5 = vand.u32 8388607, %v6721_v15  ;;  %v1353_v31 = vshll.u32 %v6828_v41, %v1338_v54  ;;  %v1120_v61 = vclz %v1119_v63 }
 0x13f   : > { %v1342_v0 = vshrl.u32 %v6825_v59, %v4243_v36  ;;  %v1345_v13 = vshrl.u32 %v6826_v24, %v4243_v36  ;;  %v1348_v22 = vshrl.u32 %v6714_v12, %v4243_v36  ;;  %v1351_v27 = vshrl.u32 %v6717_v18, %v4243_v36  ;;  %v624_v12 = vpop.f32.mrf.mxu3 }
 0x140   : > { %v1354_v37 = vshrl.u32 %v6824_v26, %v4243_v36  ;;  %v1206_v45 = vsel %vm1204_vm6, %v4160_v47, 2102212464  ;;  %v1238_v6 = vadd.s32 %v1237_v48, %v1227_v39  ;;  %v1251_v57 = vshrl.u32 %v4215_v19, 16 }
 0x141   : > { %v1352_v43 = vor.u32 %v1351_v27, %v1350_v32  ;;  %v4267_v23 = vor.u32 %v1342_v0, %v1341_v4  ;;  %v4269_v18 = vor.u32 %v1345_v13, %v1344_v46  ;;  %v4271_v56 = vor.u32 %v1348_v22, %v1347_v28 }
 0x142   : > { %v1355_v15 = vor.u32 %v1354_v37, %v1353_v31  ;;  %vm1359_vm4 = vcmp.lt.s32.totalorder %v4252_v14, 4  ;;  %v625_v0 = vadd.f32 %v624_v12, %v522_v51  ;;  %v1229_v13 = vshrl.u32 %v4217_v16, 16 }
 0x143   : > { %vm1356_vm3 = vcmp.lt.s32.totalorder %v4252_v14, 1  ;;  %vm1358_vm5 = vcmp.lt.s32.totalorder %v4252_v14, 3  ;;  %v1365_v54 = vsel %vm1359_vm4, %v1352_v43, 920167782  ;;  %v1261_v63 = vadd.s32 %v1260_v58, %v1251_v57 }
 0x144   : > { %v1332_v22 = vor.u32 8388608, %v1331_v5  ;;  %v1364_v31 = vsel %vm1356_vm3, %v4267_v23, %v4269_v18  ;;  %v1366_v12 = vsel %vm1358_vm5, %v4271_v56, %v1365_v54  ;;  %v975_v47 = vshll.u32 %v974_v11, 23 }
 0x145   : > { %v3490_v16 = vadd.s32 4294967294, %v1120_v61  ;;  %v6829_v48 = vmov 683565275   ;;  %v4293_v32 = vadd.s32 %v1238_v6, %v1229_v13  ;;  %v971_v27 = vshrl.u32 %v953_v8, %v969_v60  ;;  %v812_v60 = vpop.f32.mrf.mxu1 }
 0x146   : > { %v1185_v51 = vshrl.u32 %v6829_v48, %v4115_v29  ;;  %vm1357_vm6 = vcmp.lt.s32.totalorder %v4252_v14, 2  ;;  %v1369_v4 = vsel %vm1359_vm4, %v1355_v15, 1326507024  ;;  %v731_v46 = vadd.f32 %v730_v17, %v625_v0  ;;  %v3562_v14 = vld [vmem:[%s3626_s20 + $0x38] sm:$0xff] }
 0x147   : > { %v1207_v61 = vsel %vm1203_vm9, %v4158_v34, %v1206_v45  ;;  %v6830_v11 = vshll.u32 %v4215_v19, 16  ;;  %v1367_v8 = vsel %vm1357_vm6, %v1364_v31, %v1366_v12  ;;  %v1265_v37 = vadd.s32 1, %v1261_v63 }
 0x148   : > { %v1205_v28 = vsel %vm1201_vm8, %v1185_v51, %v4156_v35  ;;  %v1368_v15 = vsel %vm1356_vm3, %v4269_v18, %v4271_v56  ;;  %v1370_v35 = vsel %vm1358_vm5, %v1352_v43, %v1369_v4  ;;  %v4317_v39 = vshll.u32 %v1332_v22, 8 }
 0x149   : > { %v4307_v29 = vadd.s32 %v4219_v25, %v6830_v11  ;;  %v970_v34 = vshll.u32 %v4188_v21, %v4232_v1  ;;  %v976_v19 = vor.u32 4788187, %v975_v47  ;;  %vm3491_vm7 = vcmp.lt.s32.totalorder %v3490_v16, 0 }
 0x14a   : > { %v1208_v25 = vsel %vm1202_vm10, %v1205_v28, %v1207_v61  ;;  %v1398_v58 = vshrl.u32 %v1367_v8, 16  ;;  %v4325_v5 = vadd.f32 %v812_v60, %v731_v46  ;;  %v1371_v43 = vsel %vm1357_vm6, %v1368_v15, %v1370_v35 }
 0x14b   : > { %vm1264_vm8 = vc.u32 %v4293_v32, %v4307_v29  ;;  %v972_v45 = vor.u32 %v971_v27, %v970_v34  ;;  %v4329_v6 = vsel %vm3491_vm7, 0, %v3490_v16  ;;  %v1373_v21 = vand.u32 65535, %v4317_v39 }
 0x14c   : > { %6831 = vst [vmem:[#allocation14_spill] sm:$0xff] %v4325_v5  ;;  %v1266_v57 = vsel %vm1264_vm8, %v1265_v37, %v1261_v63  ;;  %v977_v1 = vand.u32 2147483647, %v976_v19  ;;  %v1262_v0 = vmul.u32 %v4196_v30, %v1208_v25  ;;  %v1376_v13 = vshrl.u32 %v1371_v43, 16 }
 0x14d   : > { %v4333_v54 = vmul.u32 %v1398_v58, %v1373_v21  ;;  %v1482_v62 = vand.u32 2139095040, %v4325_v5  ;;  %v979_v17 = vcvt.s32.f32 %v972_v45  ;;  %v1128_v22 = vsub.s32 4294967266, %v4329_v6 }
 0x14e   : > { %v4337_v31 = vadd.s32 %v1266_v57, %v1262_v0  ;;  %v1397_v12 = vand.u32 65535, %v1367_v8  ;;  %v1374_v16 = vshrl.u32 %v4317_v39, 16  ;;  %v4340_v63 = vmul.u32 %v1376_v13, %v1373_v21 }
 0x14f   : > { %v980_v47 = vmul.f32 %v979_v17, %v977_v1  ;;  %v1403_v51 = vshll.u32 %v4333_v54, 16  ;;  %v1483_v27 = vshrl.u32 %v1482_v62, 23  ;;  %v1129_v30 = vadd.s32 127, %v1128_v22 }
 0x150   : > { %v1268_v4 = vadd.s32 536870912, %v4337_v31  ;;  %v1375_v46 = vand.u32 65535, %v1371_v43  ;;  %v1399_v28 = vmul.u32 %v1397_v12, %v1373_v21  ;;  %v4344_v61 = vmul.u32 %v1397_v12, %v1374_v16 }
 0x151   : > { %v3498_v11 = vadd.s32 4294967169, %v1483_v27  ;;  %v981_v60 = vxor.u32 2147483648, %v980_v47  ;;  %vm861_vm9 = vcmp.lt.s32.totalorder %v3930_v50, 0  ;;  %v1381_v8 = vshll.u32 %v4340_v63, 16 }
 0x152   : > { %v4348_v37 = vadd.s32 %v1403_v51, %v1399_v28  ;;  %v1124_v35 = vsub.s32 32, %v4329_v6  ;;  %v1130_v34 = vshll.u32 %v1129_v30, 23  ;;  %v4351_v19 = vshrl.u32 %v1268_v4, 30 }
 0x153   : > { %v1489_v15 = vadd.s32 1, %v3498_v11  ;;  %vm1407_vm10 = vc.u32 %v1399_v28, %v1403_v51  ;;  %v1377_v25 = vmul.u32 %v1375_v46, %v1373_v21  ;;  %v4353_v45 = vmul.u32 %v1375_v46, %v1374_v16 }
 0x154   : > { %v6723_v43 = vshll.u32 %v4344_v61, 16  ;;  %v4358_v57 = vsel %vm861_vm9, %v981_v60, %v980_v47  ;;  %v1108_v1 = vadd.s32 %v4152_v10, %v4144_v38  ;;  %v6722_v0 = vand.u32 2147483647, %v4325_v5  ;;  %v526_v5 = vpop.f32.mrf.mxu2 }
 0x155   : > { %vm1490_vm11 = vcmp.gt.s32.totalorder %v1489_v15, 0  ;;  %v1125_v17 = vshll.u32 %v4221_v9, %v4329_v6  ;;  %v1387_v22 = vadd.s32 %v1381_v8, %v1377_v25  ;;  %v6832_v21 = vmov 0  }
 0x156   : > { %v1491_v62 = vsel %vm1490_vm11, %v1489_v15, 0  ;;  %v1408_v12 = vsel %vm1407_vm10, 1, %v6832_v21  ;;  %vm1411_vm12 = vc.u32 %v4348_v37, %v6723_v43  ;;  %v1126_v51 = vshrl.u32 %v1108_v1, %v1124_v35 }
 0x157   : > { %vm1385_vm13 = vc.u32 %v1377_v25, %v1381_v8  ;;  %v1402_v47 = vmul.u32 %v1398_v58, %v1374_v16  ;;  %v1493_v27 = vand.u32 31, %v1491_v62  ;;  %v4369_v30 = vor.u32 4788187, %v1130_v34  ;;  %v3557_v58 = vld [vmem:[%s3626_s20 + $0x20] sm:$0xff] }
 0x158   : > { %v1270_v38 = vshll.u32 %v4351_v19, 30  ;;  %v1380_v10 = vmul.u32 %v1376_v13, %v1374_v16  ;;  %v1383_v4 = vshll.u32 %v4353_v45, 16  ;;  %v1412_v9 = vsel %vm1411_vm12, 1, %v6832_v21  ;;  %3364 = vrot.lane.b32.xlu2 %v3557_v58, %s3586_s23 }
 0x159   : > { %v1410_v46 = vadd.s32 %v1408_v12, %v1402_v47  ;;  %v1486_v6 = vand.u32 8388607, %v6722_v0  ;;  %v4376_v28 = vsub.s32 32, %v1493_v27  ;;  %v1386_v11 = vsel %vm1385_vm13, 1, %v6832_v21 }
 0x15a   : > { %vm4379_vm14 = vc.u32 %v1387_v22, %v1383_v4  ;;  %v4383_v60 = vshrl.u32 %v1491_v62, 5  ;;  %v1496_v13 = vshll.u32 %v6829_v48, %v1493_v27  ;;  %v1499_v8 = vshll.u32 %v6825_v59, %v1493_v27 }
 0x15b   : > { %v1497_v16 = vshrl.u32 %v6825_v59, %v4376_v28  ;;  %v1500_v15 = vshrl.u32 %v6826_v24, %v4376_v28  ;;  %v1502_v35 = vshll.u32 %v6826_v24, %v1493_v27  ;;  %v6835_v34 = vmov 2102212464  }
 0x15c   : > { %v1503_v25 = vshrl.u32 %v6835_v34, %v4376_v28  ;;  %v1505_v1 = vshll.u32 %v6835_v34, %v1493_v27  ;;  %v1506_v62 = vshrl.u32 %v6828_v41, %v4376_v28  ;;  %v1509_v22 = vshrl.u32 %v6824_v26, %v4376_v28 }
 0x15d   : > { %v1487_v12 = vor.u32 8388608, %v1486_v6  ;;  %v4399_v47 = vor.u32 %v1497_v16, %v1496_v13  ;;  %v4401_v4 = vor.u32 %v1500_v15, %v1499_v8  ;;  %v1508_v0 = vshll.u32 %v6828_v41, %v1493_v27 }
 0x15e   : > { %v1388_v43 = vadd.s32 %v1386_v11, %v1380_v10  ;;  %v1414_v55 = vadd.s32 %v1412_v9, %v1410_v46  ;;  %v4404_v44 = vor.u32 %v1503_v25, %v1502_v35  ;;  %v1507_v7 = vor.u32 %v1506_v62, %v1505_v1  ;;  %v3555_v46 = vld [vmem:[%s3626_s20] sm:$0xff] }
 0x15f   : > { %v1390_v53 = vsel %vm4379_vm14, 1, %v6832_v21  ;;  %v1510_v49 = vor.u32 %v1509_v22, %v1508_v0  ;;  %vm1511_vm15 = vcmp.lt.s32.totalorder %v4383_v60, 1  ;;  %vm1514_vm0 = vcmp.lt.s32.totalorder %v4383_v60, 4  ;;  %3356 = vrot.lane.b32.xlu0 %v3555_v46, %s3586_s23  ;;  %v3556_v0 = vld [vmem:[%s3626_s20 + $0x10] sm:$0xff] }
 0x160   : > { %v4411_v6 = vor.u32 %v1126_v51, %v1125_v17  ;;  %vm1513_vm1 = vcmp.lt.s32.totalorder %v4383_v60, 3  ;;  %v1519_v27 = vsel %vm1511_vm15, %v4399_v47, %v4401_v4  ;;  %v1520_v10 = vsel %vm1514_vm0, %v1507_v7, 920167782  ;;  %3360 = vrot.lane.b32.xlu1 %v3556_v0, %s3586_s23 }
 0x161   : > { %v1404_v17 = vshrl.u32 %v4333_v54, 16  ;;  %v1521_v51 = vsel %vm1513_vm1, %v4404_v44, %v1520_v10  ;;  %v4428_v9 = vshll.u32 %v1487_v12, 8  ;;  %v527_v11 = vadd.f32 %v526_v5, %v3899_v3  ;;  %v630_v54 = vpop.f32.mrf.mxu3 }
 0x162   : > { %v1132_v13 = vand.u32 2147483647, %v4369_v30  ;;  %v4435_v16 = vsub.s32 %v4337_v31, %v1270_v38  ;;  %v1392_v8 = vadd.s32 %v1390_v53, %v1388_v43  ;;  %vm1512_vm2 = vcmp.lt.s32.totalorder %v4383_v60, 2 }
 0x163   : > { %v1415_v15 = vadd.s32 %v1414_v55, %v1404_v17  ;;  %v1522_v35 = vsel %vm1512_vm2, %v1519_v27, %v1521_v51  ;;  %v1523_v3 = vsel %vm1511_vm15, %v4401_v4, %v4404_v44  ;;  %v1524_v5 = vsel %vm1514_vm0, %v1510_v49, 1326507024 }
 0x164   : > { %v1340_v31 = vshrl.u32 %v6829_v48, %v4243_v36  ;;  %v1382_v53 = vshrl.u32 %v4340_v63, 16  ;;  %v1406_v43 = vshrl.u32 %v4344_v61, 16  ;;  %v1525_v55 = vsel %vm1513_vm1, %v1507_v7, %v1524_v5  ;;  %v734_v63 = vpop.f32.mrf.mxu0 }
 0x165   : > { %v1526_v38 = vsel %vm1512_vm2, %v1523_v3, %v1525_v55  ;;  %v1528_v25 = vand.u32 65535, %v4428_v9  ;;  %v1553_v1 = vshrl.u32 %v1522_v35, 16  ;;  %v631_v62 = vadd.f32 %v630_v54, %v527_v11  ;;  %v3558_v11 = vld [vmem:[%s3626_s20 + $0x8] sm:$0xff]  ;;  %v816_v55 = vpop.f32.mrf.mxu1 }
 0x166   : > { %v1529_v49 = vshrl.u32 %v4428_v9, 16  ;;  %v1530_v22 = vand.u32 65535, %v1526_v38  ;;  %v1531_v12 = vshrl.u32 %v1526_v38, 16  ;;  %v1552_v36 = vand.u32 65535, %v1522_v35  ;;  %v3559_v35 = vld [vmem:[%s3626_s20 + $0x18] sm:$0xff] }
 0x167   : > { %vm1272_vm7 = vcmp.lt.s32.totalorder %v4435_v16, 0  ;;  %v1393_v27 = vadd.s32 %v1392_v8, %v1382_v53  ;;  %v1416_v7 = vadd.s32 %v1415_v15, %v1406_v43  ;;  %v4457_v10 = vmul.u32 %v1553_v1, %v1528_v25  ;;  %3358 = vrot.lane.b32.xlu0 %v3558_v11, %s3586_s23 }
 0x168   : > { %v1273_v46 = vsub.s32 0, %v4435_v16  ;;  %v1361_v0 = vsel %vm1359_vm4, %v4271_v56, 2102212464  ;;  %v4463_v17 = vmul.u32 %v1531_v12, %v1528_v25  ;;  %v4465_v51 = vmul.u32 %v1530_v22, %v1529_v49  ;;  %3362 = vrot.lane.b32.xlu1 %v3559_v35, %s3586_s23  ;;  %v3560_v56 = vld [vmem:[%s3626_s20 + $0x28] sm:$0xff] }
 0x169   : > { %v1360_v58 = vsel %vm1356_vm3, %v1340_v31, %v4267_v23  ;;  %v1384_v8 = vshrl.u32 %v4353_v45, 16  ;;  %v1558_v54 = vshll.u32 %v4457_v10, 16  ;;  %v735_v15 = vadd.f32 %v734_v63, %v631_v62  ;;  %3366 = vrot.lane.b32.xlu2 %v3560_v56, %s3586_s23 }
 0x16a   : > { %v1532_v3 = vmul.u32 %v1530_v22, %v1528_v25  ;;  %v1536_v5 = vshll.u32 %v4463_v17, 16  ;;  %v1554_v53 = vmul.u32 %v1552_v36, %v1528_v25  ;;  %v4479_v43 = vmul.u32 %v1552_v36, %v1529_v49 }
 0x16b   : > { %v1362_v23 = vsel %vm1358_vm5, %v4269_v18, %v1361_v0  ;;  %v4484_v45 = vadd.s32 %v1393_v27, %v1384_v8  ;;  %v6836_v31 = vshll.u32 %v4344_v61, 16  ;;  %v1420_v62 = vadd.s32 1, %v1416_v7 }
 0x16c   : > { %v1538_v22 = vshll.u32 %v4465_v51, 16  ;;  %vm1540_vm4 = vc.u32 %v1532_v3, %v1536_v5  ;;  %v1542_v63 = vadd.s32 %v1536_v5, %v1532_v3  ;;  %vm1562_vm3 = vc.u32 %v1554_v53, %v1558_v54 }
 0x16d   : > { %v4489_v38 = vadd.s32 %v4348_v37, %v6836_v31  ;;  %v1535_v25 = vmul.u32 %v1531_v12, %v1529_v49  ;;  %v1541_v36 = vsel %vm1540_vm4, 1, %v6832_v21  ;;  %v1563_v11 = vsel %vm1562_vm3, 1, %v6832_v21 }
 0x16e   : > { %v4494_v18 = vadd.f32 %v816_v55, %v735_v15  ;;  %vm1544_vm5 = vc.u32 %v1542_v63, %v1538_v22  ;;  %v1557_v61 = vmul.u32 %v1553_v1, %v1529_v49  ;;  %v1560_v37 = vshll.u32 %v4479_v43, 16 }
 0x16f   : > { %v4497_v27 = vadd.s32 %v1558_v54, %v1554_v53  ;;  %v1134_v0 = vcvt.s32.f32 %v4411_v6  ;;  %v1274_v12 = vsel %vm1272_vm7, %v1273_v46, %v4435_v16  ;;  %vm1419_vm8 = vc.u32 %v4484_v45, %v4489_v38  ;;  %v3561_v54 = vld [vmem:[%s3626_s20 + $0x30] sm:$0xff] }
 0x170   : > { %6837 = vst [vmem:[#allocation15_spill] sm:$0xff] %v4494_v18  ;;  %v1543_v8 = vadd.s32 %v1541_v36, %v1535_v25  ;;  %v1363_v15 = vsel %vm1357_vm6, %v1360_v58, %v1362_v23  ;;  %v1545_v1 = vsel %vm1544_vm5, 1, %v6832_v21  ;;  %v1565_v49 = vadd.s32 %v1563_v11, %v1557_v61  ;;  %3368 = vrot.lane.b32.xlu0 %v3561_v54, %s3586_s23  ;;  %v3563_v58 = vld [vmem:[%s3626_s20 + $0x40] sm:$0xff] }
 0x171   : > { %vm1566_vm10 = vc.u32 %v4497_v27, %v1560_v37  ;;  %v6838_v6 = vand.u32 2147483647, %v3930_v50  ;;  %3370 = vrot.lane.b32.xlu1 %v3562_v14, %s3586_s23  ;;  %3372 = vrot.lane.b32.xlu2 %v3563_v58, %s3586_s23  ;;  %v1135_v3 = vmul.f32 %v1134_v0, %v1132_v13  ;;  %v1421_v5 = vsel %vm1419_vm8, %v1420_v62, %v1416_v7  ;;  %v3564_v0 = vld [vmem:[%s3626_s20 + $0x48] sm:$0xff] }
 0x172   : > { %v1567_v35 = vsel %vm1566_vm10, 1, %v6832_v21  ;;  %v1637_v53 = vand.u32 2139095040, %v4494_v18  ;;  %v1275_v55 = vclz %v1274_v12  ;;  %v1417_v23 = vmul.u32 %v4317_v39, %v1363_v15  ;;  %v3565_v15 = vld [vmem:[%s3626_s20 + $0x50] sm:$0xff] }
 0x173   : > { %vm4515_vm11 = vcmp.le.f32.partialorder %v6838_v6, 0.7853982  ;;  %v1547_v31 = vadd.s32 %v1545_v1, %v1543_v8  ;;  %v1569_v22 = vadd.s32 %v1567_v35, %v1565_v49  ;;  %v1537_v30 = vshrl.u32 %v4463_v17, 16  ;;  %v3566_v1 = vld [vmem:[%s3626_s20 + $0x58] sm:$0xff] }
 0x174   : > { %v4528_v56 = vsel %vm4515_vm11, %v3930_v50, %v4358_v57  ;;  %v1638_v63 = vshrl.u32 %v1637_v53, 23  ;;  %v4541_v25 = vadd.s32 %v1421_v5, %v1417_v23  ;;  %v1136_v13 = vxor.u32 2147483648, %v1135_v3 }
 0x175   : > { %v4539_v57 = vmul.f32 %v4528_v56, %v4528_v56  ;;  %v1559_v7 = vshrl.u32 %v4457_v10, 16  ;;  %v3493_v36 = vadd.s32 4294967294, %v1275_v55  ;;  %v1548_v11 = vadd.s32 %v1547_v31, %v1537_v30 }
 0x176   : > { %v3501_v62 = vadd.s32 4294967169, %v1638_v63  ;;  %vm1016_vm6 = vcmp.lt.s32.totalorder %v3935_v42, 0  ;;  %v1423_v8 = vadd.s32 536870912, %v4541_v25  ;;  %v1516_v17 = vsel %vm1514_vm0, %v4404_v44, 2102212464 }
 0x177   : > { %6841 = vst [vmem:[#allocation16_spill] sm:$0xff] %v4539_v57  ;;  %v1570_v39 = vadd.s32 %v1569_v22, %v1559_v7  ;;  %v995_v12 = vmul.f32 -0.00019511016, %v4539_v57  ;;  %v1539_v10 = vshrl.u32 %v4465_v51, 16  ;;  %v1137_v49 = vsel %vm1016_vm6, %v1136_v13, %v1135_v3 }
 0x178   : > { %v1644_v61 = vadd.s32 1, %v3501_v62  ;;  %3374 = vrot.lane.b32.xlu0 %v3564_v0, %s3586_s23  ;;  %v1495_v54 = vshrl.u32 %v6829_v48, %v4376_v28  ;;  %v1561_v6 = vshrl.u32 %v4479_v43, 16  ;;  %vm3494_vm13 = vcmp.lt.s32.totalorder %v3493_v36, 0  ;;  %v531_v28 = vpop.f32.mrf.mxu2 }
 0x179   : > { %3376 = vrot.lane.b32.xlu1 %v3565_v15, %s3586_s23  ;;  %3378 = vrot.lane.b32.xlu2 %v3566_v1, %s3586_s23  ;;  %v4563_v35 = vadd.s32 %v1548_v11, %v1539_v10  ;;  %v6728_v44 = vand.u32 2147483647, %v4494_v18  ;;  %v1517_v58 = vsel %vm1513_vm1, %v4401_v4, %v1516_v17  ;;  %v983_v53 = vsub.s32 4, %v4141_v40  ;;  %v3567_v11 = vld [vmem:[%s3626_s20 + $0x60] sm:$0xff] }
 0x17a   : > { %vm1645_vm12 = vcmp.gt.s32.totalorder %v1644_v61, 0  ;;  %v1515_v14 = vsel %vm1511_vm15, %v1495_v54, %v4399_v47  ;;  %v1571_v3 = vadd.s32 %v1570_v39, %v1561_v6  ;;  %v6842_v55 = vand.u32 2147483647, %v3935_v42 }
 0x17b   : > { %v1646_v51 = vsel %vm1645_vm12, %v1644_v61, 0  ;;  %v4579_v31 = vshrl.u32 %v1423_v8, 30  ;;  %v4584_v47 = vadd.s32 %v4497_v27, %v1560_v37  ;;  %v996_v4 = vadd.f32 0.008332121, %v995_v12  ;;  %v3568_v12 = vld [vmem:[%s3626_s20 + $0x68] sm:$0xff]  ;;  %v3569_v8 = vld [vmem:[%s3626_s20 + $0x70] sm:$0xff] }
 0x17c   : > { %v1648_v5 = vand.u32 31, %v1646_v51  ;;  %vm4575_vm14 = vcmp.le.f32.partialorder %v6842_v55, 0.7853982  ;;  %v4591_v63 = vsel %vm3494_vm13, 0, %v3493_v36  ;;  %v1518_v13 = vsel %vm1512_vm2, %v1515_v14, %v1517_v58  ;;  %v636_v36 = vpop.f32.mrf.mxu3 }
 0x17d   : > { %v4589_v22 = vsel %vm4575_vm14, %v3935_v42, %v1137_v49  ;;  %vm1574_vm15 = vc.u32 %v4563_v35, %v4584_v47  ;;  %v1641_v43 = vand.u32 8388607, %v6728_v44  ;;  %v532_v37 = vadd.f32 %v531_v28, %v3910_v20 }
 0x17e   : > { %v4593_v30 = vsub.s32 32, %v1648_v5  ;;  %v1575_v27 = vadd.s32 1, %v1571_v3  ;;  %v1425_v39 = vshll.u32 %v4579_v31, 30  ;;  %v1651_v61 = vshll.u32 %v6829_v48, %v1648_v5 }
 0x17f   : > { %v1654_v20 = vshll.u32 %v6825_v59, %v1648_v5  ;;  %v4619_v17 = vshrl.u32 %v1646_v51, 5  ;;  %v1657_v10 = vshll.u32 %v6826_v24, %v1648_v5  ;;  %v1660_v15 = vshll.u32 %v6835_v34, %v1648_v5 }
 0x180   : > { %v1652_v7 = vshrl.u32 %v6825_v59, %v4593_v30  ;;  %v1655_v62 = vshrl.u32 %v6826_v24, %v4593_v30  ;;  %v1658_v60 = vshrl.u32 %v6835_v34, %v4593_v30  ;;  %3380 = vrot.lane.b32.xlu0 %v3567_v11, %s3586_s23  ;;  %v1661_v0 = vshrl.u32 %v6828_v41, %v4593_v30  ;;  %v738_v11 = vpop.f32.mrf.mxu0 }
 0x181   : > { %3382 = vrot.lane.b32.xlu1 %v3568_v12, %s3586_s23  ;;  %3384 = vrot.lane.b32.xlu2 %v3569_v8, %s3586_s23  ;;  %v1664_v1 = vshrl.u32 %v6824_v26, %v4593_v30  ;;  %v1663_v6 = vshll.u32 %v6828_v41, %v1648_v5  ;;  %v637_v14 = vadd.f32 %v636_v36, %v532_v37  ;;  %v1642_v51 = vor.u32 8388608, %v1641_v43 }
 0x182   : > { %v4625_v49 = vor.u32 %v1652_v7, %v1651_v61  ;;  %v4627_v54 = vor.u32 %v1655_v62, %v1654_v20  ;;  %v1576_v58 = vsel %vm1574_vm15, %v1575_v27, %v1571_v3  ;;  %v4633_v28 = vor.u32 %v1658_v60, %v1657_v10  ;;  %v3570_v60 = vld [vmem:[%s3626_s20 + $0x78] sm:$0xff] }
 0x183   : > { %v1662_v55 = vor.u32 %v1661_v0, %v1660_v15  ;;  %v984_v12 = vsel %vm861_vm9, %v983_v53, %v4141_v40  ;;  %v4640_v7 = vmul.f32 %v4589_v22, %v4589_v22  ;;  %v1572_v5 = vmul.u32 %v4428_v9, %v1518_v13  ;;  %v820_v13 = vpop.f32.mrf.mxu1 }
 0x184   : > { %v1665_v37 = vor.u32 %v1664_v1, %v1663_v6  ;;  %v997_v62 = vmul.f32 %v996_v4, %v4539_v57  ;;  %v1283_v3 = vsub.s32 4294967266, %v4591_v63  ;;  %v4646_v43 = vsub.s32 %v4541_v25, %v1425_v39 }
 0x185   : > { %6845 = vst [vmem:[#allocation17_spill] sm:$0xff] %v4640_v7  ;;  %vm1666_vm0 = vcmp.lt.s32.totalorder %v4619_v17, 1  ;;  %v4649_v27 = vadd.s32 %v1576_v58, %v1572_v5  ;;  %vm1669_vm9 = vcmp.lt.s32.totalorder %v4619_v17, 4  ;;  %v739_v9 = vadd.f32 %v738_v11, %v637_v14 }
 0x186   : > { %v1674_v40 = vsel %vm1666_vm0, %v4625_v49, %v4627_v54  ;;  %vm1668_vm1 = vcmp.lt.s32.totalorder %v4619_v17, 3  ;;  %v1675_v53 = vsel %vm1669_vm9, %v1662_v55, 920167782  ;;  %v1678_v25 = vsel %vm1666_vm0, %v4627_v54, %v4633_v28 }
 0x187   : > { %v4663_v4 = vshll.u32 %v1642_v51, 8  ;;  %v1150_v36 = vmul.f32 -0.00019511016, %v4640_v7  ;;  %vm1667_vm2 = vcmp.lt.s32.totalorder %v4619_v17, 2  ;;  %v1676_v39 = vsel %vm1668_vm1, %v4633_v28, %v1675_v53 }
 0x188   : > { %3386 = vrot.lane.b32.xlu0 %v3570_v60, %s3586_s23  ;;  %v1679_v61 = vsel %vm1669_vm9, %v1665_v37, 1326507024  ;;  %v986_v20 = vsel %vm4515_vm11, 0, %v984_v12  ;;  %v1284_v0 = vadd.s32 127, %v1283_v3  ;;  %v1677_v8 = vsel %vm1667_vm2, %v1674_v40, %v1676_v39 }
 0x189   : > { %v1680_v10 = vsel %vm1668_vm1, %v1662_v55, %v1679_v61  ;;  %v1578_v15 = vadd.s32 536870912, %v4649_v27  ;;  %v1708_v6 = vshrl.u32 %v1677_v8, 16  ;;  %v4683_v14 = vadd.f32 %v820_v13, %v739_v9 }
 0x18a   : > { %v1681_v1 = vsel %vm1667_vm2, %v1678_v25, %v1680_v10  ;;  %v1138_v58 = vsub.s32 4, %v4208_v33  ;;  %v1428_v46 = vsub.s32 0, %v4646_v43  ;;  %v1683_v51 = vand.u32 65535, %v4663_v4 }
 0x18b   : > { %6846 = vst [vmem:[#allocation18_spill] sm:$0xff] %v4683_v14  ;;  %v1686_v11 = vshrl.u32 %v1681_v1, 16  ;;  %v998_v12 = vadd.f32 -0.16666654, %v997_v62  ;;  %v1151_v5 = vadd.f32 0.008332121, %v1150_v36  ;;  %v1263_v55 = vadd.s32 %v4307_v29, %v4293_v32 }
 0x18c   : > { %v1279_v37 = vsub.s32 32, %v4591_v63  ;;  %vm1427_vm7 = vcmp.lt.s32.totalorder %v4646_v43, 0  ;;  %v4692_v3 = vmul.u32 %v1708_v6, %v1683_v51  ;;  %v1285_v40 = vshll.u32 %v1284_v0, 23 }
 0x18d   : > { %v4694_v9 = vshrl.u32 %v1578_v15, 30  ;;  %v4696_v53 = vmul.u32 %v1686_v11, %v1683_v51  ;;  %v1792_v25 = vand.u32 2139095040, %v4683_v14  ;;  %v1003_v13 = vadd.s32 3, %v986_v20 }
 0x18e   : > { %v1429_v62 = vsel %vm1427_vm7, %v1428_v46, %v4646_v43  ;;  %v1685_v60 = vand.u32 65535, %v1681_v1  ;;  %v1707_v36 = vand.u32 65535, %v1677_v8  ;;  %v999_v39 = vmul.f32 %v998_v12, %v4539_v57 }
 0x18f   : > { %v1139_v32 = vsel %vm1016_vm6, %v1138_v58, %v4208_v33  ;;  %v1152_v29 = vmul.f32 %v1151_v5, %v4640_v7  ;;  %v1281_v61 = vshrl.u32 %v1263_v55, %v1279_v37  ;;  %v1280_v0 = vshll.u32 %v4435_v16, %v4591_v63 }
 0x190   : > { %v1684_v10 = vshrl.u32 %v4663_v4, 16  ;;  %v1691_v20 = vshll.u32 %v4696_v53, 16  ;;  %v1713_v15 = vshll.u32 %v4692_v3, 16  ;;  %v1286_v1 = vor.u32 4788187, %v1285_v40 }
 0x191   : > { %v1430_v8 = vclz %v1429_v62  ;;  %v1580_v46 = vshll.u32 %v4694_v9, 30  ;;  %v1793_v12 = vshrl.u32 %v1792_v25, 23  ;;  %v1687_v44 = vmul.u32 %v1685_v60, %v1683_v51 }
 0x192   : > { %v4711_v42 = vmul.u32 %v1685_v60, %v1684_v10  ;;  %v1709_v33 = vmul.u32 %v1707_v36, %v1683_v51  ;;  %v4713_v58 = vmul.u32 %v1707_v36, %v1684_v10  ;;  %v4715_v5 = vand.u32 3, %v1003_v13 }
 0x193   : > { %v1141_v16 = vsel %vm4575_vm14, 0, %v1139_v32  ;;  %v1282_v63 = vor.u32 %v1281_v61, %v1280_v0  ;;  %vm1695_vm4 = vc.u32 %v1687_v44, %v1691_v20  ;;  %v1697_v37 = vadd.s32 %v1691_v20, %v1687_v44 }
 0x194   : > { %6847 = vst [vmem:[#allocation19_spill] sm:$0xff] %v4715_v5  ;;  %vm1717_vm3 = vc.u32 %v1709_v33, %v1713_v15  ;;  %v4719_v55 = vadd.s32 %v1713_v15, %v1709_v33  ;;  %v1000_v40 = vadd.f32 1.0, %v999_v39  ;;  %v1287_v62 = vand.u32 2147483647, %v1286_v1 }
 0x195   : > { %v3496_v25 = vadd.s32 4294967294, %v1430_v8  ;;  %v3504_v50 = vadd.s32 4294967169, %v1793_v12  ;;  %v1153_v60 = vadd.f32 -0.16666654, %v1152_v29  ;;  %v4722_v51 = vsub.s32 %v4649_v27, %v1580_v46  ;;  %v536_v29 = vpop.f32.mrf.mxu2 }
 0x196   : > { %v1693_v13 = vshll.u32 %v4711_v42, 16  ;;  %v6734_v36 = vshll.u32 %v4713_v58, 16  ;;  %v1289_v23 = vcvt.s32.f32 %v1282_v63  ;;  %v1696_v32 = vsel %vm1695_vm4, 1, %v6832_v21 }
 0x197   : > { %v1718_v44 = vsel %vm1717_vm3, 1, %v6832_v21  ;;  %v1799_v61 = vadd.s32 1, %v3504_v50  ;;  %v1690_v0 = vmul.u32 %v1686_v11, %v1684_v10  ;;  %v1712_v39 = vmul.u32 %v1708_v6, %v1684_v10 }
 0x198   : > { %vm1699_vm5 = vc.u32 %v1697_v37, %v1693_v13  ;;  %vm1721_vm8 = vc.u32 %v4719_v55, %v6734_v36  ;;  %v4731_v27 = vmul.f32 %v1289_v23, %v1287_v62  ;;  %vm3497_vm10 = vcmp.lt.s32.totalorder %v3496_v25, 0  ;;  %v642_v37 = vpop.f32.mrf.mxu3 }
 0x199   : > { %v6733_v20 = vand.u32 2147483647, %v4683_v14  ;;  %vm1800_vm11 = vcmp.gt.s32.totalorder %v1799_v61, 0  ;;  %v1583_v15 = vsub.s32 0, %v4722_v51  ;;  %v1698_v1 = vadd.s32 %v1696_v32, %v1690_v0 }
 0x19a   : > { %v1720_v8 = vadd.s32 %v1718_v44, %v1712_v39  ;;  %v1801_v46 = vsel %vm1800_vm11, %v1799_v61, 0  ;;  %vm1582_vm6 = vcmp.lt.s32.totalorder %v4722_v51, 0  ;;  %v1700_v50 = vsel %vm1699_vm5, 1, %v6832_v21 }
 0x19b   : > { %v1722_v6 = vsel %vm1721_vm8, 1, %v6832_v21  ;;  %v537_v11 = vadd.f32 %v536_v29, %v3921_v52  ;;  %v4740_v10 = vmul.f32 %v1000_v40, %v4528_v56  ;;  %v4742_v12 = vadd.s32 3, %v1141_v16 }
 0x19c   : > { %v1293_v33 = vsub.s32 4, %v4351_v19  ;;  %v1803_v63 = vand.u32 31, %v1801_v46  ;;  %v4746_v62 = vmul.f32 %v1153_v60, %v4640_v7  ;;  %v1291_v13 = vxor.u32 2147483648, %v4731_v27 }
 0x19d   : > { %6848 = vst [vmem:[#allocation20_spill] sm:$0xff] %v4740_v10  ;;  %v4750_v23 = vsel %vm3497_vm10, 0, %v3496_v25  ;;  %v1650_v52 = vshrl.u32 %v6829_v48, %v4593_v30  ;;  %v1584_v56 = vsel %vm1582_vm6, %v1583_v15, %v4722_v51  ;;  %v1702_v40 = vadd.s32 %v1700_v50, %v1698_v1 }
 0x19e   : > { %v1724_v16 = vadd.s32 %v1722_v6, %v1720_v8  ;;  %v4755_v32 = vsub.s32 32, %v1803_v63  ;;  %v1692_v44 = vshrl.u32 %v4696_v53, 16  ;;  %v1714_v61 = vshrl.u32 %v4692_v3, 16 }
 0x19f   : > { %v1796_v60 = vand.u32 8388607, %v6733_v20  ;;  %v643_v0 = vadd.f32 %v642_v37, %v537_v11  ;;  %v1806_v25 = vshll.u32 %v6829_v48, %v1803_v63  ;;  %v1809_v30 = vshll.u32 %v6825_v59, %v1803_v63 }
 0x1a0   : > { %v1807_v39 = vshrl.u32 %v6825_v59, %v4755_v32  ;;  %v1815_v29 = vshll.u32 %v6835_v34, %v1803_v63  ;;  %vm1171_vm12 = vcmp.lt.s32.totalorder %v4080_v2, 0  ;;  %v1810_v53 = vshrl.u32 %v6826_v24, %v4755_v32 }
 0x1a1   : > { %v1813_v3 = vshrl.u32 %v6835_v34, %v4755_v32  ;;  %v1816_v15 = vshrl.u32 %v6828_v41, %v4755_v32  ;;  %v1819_v1 = vshrl.u32 %v6824_v26, %v4755_v32  ;;  %v1703_v8 = vadd.s32 %v1702_v40, %v1692_v44 }
 0x1a2   : > { %v1725_v50 = vadd.s32 %v1724_v16, %v1714_v61  ;;  %v4775_v6 = vshrl.u32 %v1801_v46, 5  ;;  %v1812_v11 = vshll.u32 %v6826_v24, %v1803_v63  ;;  %v4778_v37 = vor.u32 %v1807_v39, %v1806_v25  ;;  %v742_v61 = vpop.f32.mrf.mxu0 }
 0x1a3   : > { %v4780_v20 = vor.u32 %v1810_v53, %v1809_v30  ;;  %v1817_v36 = vor.u32 %v1816_v15, %v1815_v29  ;;  %v1818_v7 = vshll.u32 %v6828_v41, %v1803_v63  ;;  %v6849_v5 = vand.u32 2147483647, %v4080_v2 }
 0x1a4   : > { %v1438_v40 = vsub.s32 4294967266, %v4750_v23  ;;  %v1670_v46 = vsel %vm1666_vm0, %v1650_v52, %v4625_v49  ;;  %v1716_v16 = vshrl.u32 %v4713_v58, 16  ;;  %v1797_v44 = vor.u32 8388608, %v1796_v60 }
 0x1a5   : > { %vm4785_vm13 = vcmp.le.f32.partialorder %v6849_v5, 0.7853982  ;;  %v1671_v63 = vsel %vm1669_vm9, %v4633_v28, 2102212464  ;;  %v1694_v25 = vshrl.u32 %v4711_v42, 16  ;;  %v4798_v5 = vor.u32 %v1813_v3, %v1812_v11  ;;  %v824_v3 = vpop.f32.mrf.mxu1 }
 0x1a6   : > { %v1820_v39 = vor.u32 %v1819_v1, %v1818_v7  ;;  %v1585_v30 = vclz %v1584_v56  ;;  %v1726_v29 = vadd.s32 %v1725_v50, %v1716_v16  ;;  %vm1821_vm14 = vcmp.lt.s32.totalorder %v4775_v6, 1 }
 0x1a7   : > { %vm1824_vm15 = vcmp.lt.s32.totalorder %v4775_v6, 4  ;;  %v4802_v49 = vadd.s32 %v1703_v8, %v1694_v25  ;;  %v1829_v52 = vsel %vm1821_vm14, %v4778_v37, %v4780_v20  ;;  %v743_v42 = vadd.f32 %v742_v61, %v643_v0 }
 0x1a8   : > { %v1830_v28 = vsel %vm1824_vm15, %v1817_v36, 920167782  ;;  %v1672_v7 = vsel %vm1668_vm1, %v4627_v54, %v1671_v63  ;;  %v6852_v56 = vshll.u32 %v4713_v58, 16  ;;  %vm1823_vm0 = vcmp.lt.s32.totalorder %v4775_v6, 3 }
 0x1a9   : > { %v4819_v53 = vshll.u32 %v1797_v44, 8  ;;  %vm1822_vm9 = vcmp.lt.s32.totalorder %v4775_v6, 2  ;;  %v1831_v0 = vsel %vm1823_vm0, %v4798_v5, %v1830_v28  ;;  %v1833_v54 = vsel %vm1821_vm14, %v4780_v20, %v4798_v5 }
 0x1aa   : > { %v4816_v60 = vadd.s32 %v4719_v55, %v6852_v56  ;;  %v1834_v58 = vsel %vm1824_vm15, %v1820_v39, 1326507024  ;;  %v1292_v55 = vsel %vm1171_vm12, %v1291_v13, %v4731_v27  ;;  %v1294_v15 = vsel %vm1171_vm12, %v1293_v33, %v4351_v19 }
 0x1ab   : > { %v1730_v1 = vadd.s32 1, %v1726_v29  ;;  %v1832_v8 = vsel %vm1822_vm9, %v1829_v52, %v1831_v0  ;;  %v1835_v50 = vsel %vm1823_vm0, %v1817_v36, %v1834_v58  ;;  %v4843_v16 = vadd.f32 %v824_v3, %v743_v42 }
 0x1ac   : > { %vm1729_vm1 = vc.u32 %v4802_v49, %v4816_v60  ;;  %v1863_v11 = vshrl.u32 %v1832_v8, 16  ;;  %v3499_v44 = vadd.s32 4294967294, %v1585_v30  ;;  %v1673_v27 = vsel %vm1667_vm2, %v1670_v46, %v1672_v7 }
 0x1ad   : > { %6853 = vst [vmem:[#allocation21_spill] sm:$0xff] %v4843_v16  ;;  %v1836_v19 = vsel %vm1822_vm9, %v1833_v54, %v1835_v50  ;;  %v1838_v33 = vand.u32 65535, %v4819_v53  ;;  %v1155_v13 = vadd.f32 1.0, %v4746_v62  ;;  %v4854_v61 = vsel %vm4785_vm13, %v4080_v2, %v1292_v55 }
 0x1ae   : > { %v1439_v36 = vadd.s32 127, %v1438_v40  ;;  %v1841_v63 = vshrl.u32 %v1836_v19, 16  ;;  %v1731_v25 = vsel %vm1729_vm1, %v1730_v1, %v1726_v29  ;;  %v1840_v39 = vand.u32 65535, %v1836_v19 }
 0x1af   : > { %v1862_v30 = vand.u32 65535, %v1832_v8  ;;  %v4856_v52 = vmul.u32 %v1863_v11, %v1838_v33  ;;  %v1296_v17 = vsel %vm4785_vm13, 0, %v1294_v15  ;;  %v1727_v46 = vmul.u32 %v4663_v4, %v1673_v27 }
 0x1b0   : > { %v4861_v28 = vmul.u32 %v1841_v63, %v1838_v33  ;;  %v1947_v62 = vand.u32 2139095040, %v4843_v16  ;;  %v4866_v42 = vmul.f32 %v4854_v61, %v4854_v61  ;;  %vm3500_vm2 = vcmp.lt.s32.totalorder %v3499_v44, 0 }
 0x1b1   : > { %v1839_v40 = vshrl.u32 %v4819_v53, 16  ;;  %v1868_v29 = vshll.u32 %v4856_v52, 16  ;;  %v1434_v7 = vsub.s32 32, %v4750_v23  ;;  %v1440_v56 = vshll.u32 %v1439_v36, 23 }
 0x1b2   : > { %6854 = vst [vmem:[#allocation22_spill] sm:$0xff] %v4866_v42  ;;  %v4871_v57 = vadd.s32 %v1731_v25, %v1727_v46  ;;  %v1846_v4 = vshll.u32 %v4861_v28, 16  ;;  %v1842_v3 = vmul.u32 %v1840_v39, %v1838_v33  ;;  %v1864_v54 = vmul.u32 %v1862_v30, %v1838_v33 }
 0x1b3   : > { %v4874_v0 = vmul.u32 %v1840_v39, %v1839_v40  ;;  %v4876_v58 = vmul.u32 %v1862_v30, %v1839_v40  ;;  %v1313_v55 = vadd.s32 3, %v1296_v17  ;;  %v1418_v15 = vadd.s32 %v4489_v38, %v4484_v45 }
 0x1b4   : > { %v4880_v1 = vsel %vm3500_vm2, 0, %v3499_v44  ;;  %v1948_v8 = vshrl.u32 %v1947_v62, 23  ;;  %vm1850_vm7 = vc.u32 %v1842_v3, %v1846_v4  ;;  %v1852_v50 = vadd.s32 %v1846_v4, %v1842_v3 }
 0x1b5   : > { %vm1872_vm4 = vc.u32 %v1864_v54, %v1868_v29  ;;  %v4882_v27 = vadd.s32 %v1868_v29, %v1864_v54  ;;  %v4885_v19 = vmul.f32 %v1155_v13, %v4589_v22  ;;  %v1305_v36 = vmul.f32 -0.00019511016, %v4866_v42 }
 0x1b6   : > { %v1436_v33 = vshrl.u32 %v1418_v15, %v1434_v7  ;;  %v1733_v25 = vadd.s32 536870912, %v4871_v57  ;;  %v1435_v39 = vshll.u32 %v4646_v43, %v4750_v23  ;;  %v1441_v45 = vor.u32 4788187, %v1440_v56 }
 0x1b7   : > { %6855 = vst [vmem:[#allocation23_spill] sm:$0xff] %v4885_v19  ;;  %v1848_v38 = vshll.u32 %v4874_v0, 16  ;;  %v1870_v44 = vshll.u32 %v4876_v58, 16  ;;  %v1593_v30 = vsub.s32 4294967266, %v4880_v1  ;;  %v1851_v17 = vsel %vm1850_vm7, 1, %v6832_v21 }
 0x1b8   : > { %v1867_v46 = vmul.u32 %v1863_v11, %v1839_v40  ;;  %v1873_v22 = vsel %vm1872_vm4, 1, %v6832_v21  ;;  %v1845_v13 = vmul.u32 %v1841_v63, %v1839_v40  ;;  %v3507_v62 = vadd.s32 4294967169, %v1948_v8 }
 0x1b9   : > { %vm1854_vm3 = vc.u32 %v1852_v50, %v1848_v38  ;;  %vm1876_vm5 = vc.u32 %v4882_v27, %v1870_v44  ;;  %v4900_v43 = vand.u32 3, %v4742_v12  ;;  %v1306_v23 = vadd.f32 0.008332121, %v1305_v36 }
 0x1ba   : > { %v1437_v29 = vor.u32 %v1436_v33, %v1435_v39  ;;  %v4902_v7 = vshrl.u32 %v1733_v25, 30  ;;  %v1853_v4 = vadd.s32 %v1851_v17, %v1845_v13  ;;  %v1875_v11 = vadd.s32 %v1873_v22, %v1867_v46 }
 0x1bb   : > { %6856 = vst [vmem:[#allocation24_spill] sm:$0xff] %v4900_v43  ;;  %v1954_v3 = vadd.s32 1, %v3507_v62  ;;  %v4905_v54 = vand.u32 3, %v1313_v55  ;;  %v1442_v63 = vand.u32 2147483647, %v1441_v45  ;;  %v1855_v40 = vsel %vm1854_vm3, 1, %v6832_v21  ;;  %v541_v62 = vpop.f32.mrf.mxu2 }
 0x1bc   : > { %v1877_v15 = vsel %vm1876_vm5, 1, %v6832_v21  ;;  %v1589_v12 = vsub.s32 32, %v4880_v1  ;;  %v4911_v50 = vadd.s32 127, %v1593_v30  ;;  %v4914_v36 = vmul.f32 %v1306_v23, %v4866_v42 }
 0x1bd   : > { %6857 = vst [vmem:[#allocation25_spill] sm:$0xff] %v4905_v54  ;;  %vm1955_vm8 = vcmp.gt.s32.totalorder %v1954_v3, 0  ;;  %v1444_v33 = vcvt.s32.f32 %v1437_v29  ;;  %v1735_v25 = vshll.u32 %v4902_v7, 30  ;;  %v6740_v55 = vand.u32 2147483647, %v4843_v16 }
 0x1be   : > { %v1573_v39 = vadd.s32 %v4584_v47, %v4563_v35  ;;  %v1857_v45 = vadd.s32 %v1855_v40, %v1853_v4  ;;  %v1879_v38 = vadd.s32 %v1877_v15, %v1875_v11  ;;  %v1956_v17 = vsel %vm1955_vm8, %v1954_v3, 0 }
 0x1bf   : > { %v4920_v46 = vmul.f32 %v1444_v33, %v1442_v63  ;;  %v1448_v30 = vsub.s32 4, %v4579_v31  ;;  %v1590_v22 = vshll.u32 %v4722_v51, %v4880_v1  ;;  %v1958_v13 = vand.u32 31, %v1956_v17  ;;  %v6858_v63 = vld [vmem:[#allocation2_spill] sm:$0xff] }
 0x1c0   : > { %v1591_v23 = vshrl.u32 %v1573_v39, %v1589_v12  ;;  %v1595_v29 = vshll.u32 %v4911_v50, 23  ;;  %v1847_v8 = vshrl.u32 %v4861_v28, 16  ;;  %v1869_v56 = vshrl.u32 %v4856_v52, 16  ;;  %v648_v50 = vpop.f32.mrf.mxu3 }
 0x1c1   : > { %v4929_v35 = vsub.s32 %v4871_v57, %v1735_v25  ;;  %v1805_v47 = vshrl.u32 %v6829_v48, %v4755_v32  ;;  %v1951_v4 = vand.u32 8388607, %v6740_v55  ;;  %v4935_v11 = vsub.s32 32, %v1958_v13 }
 0x1c2   : > { %v1858_v51 = vadd.s32 %v1857_v45, %v1847_v8  ;;  %v1880_v1 = vadd.s32 %v1879_v38, %v1869_v56  ;;  %v4937_v3 = vshrl.u32 %v1956_v17, 5  ;;  %v542_v40 = vadd.f32 %v541_v62, %v6858_v63 }
 0x1c3   : > { %v1961_v28 = vshll.u32 %v6829_v48, %v1958_v13  ;;  %v1962_v52 = vshrl.u32 %v6825_v59, %v4935_v11  ;;  %v1964_v57 = vshll.u32 %v6825_v59, %v1958_v13  ;;  %v1965_v32 = vshrl.u32 %v6826_v24, %v4935_v11 }
 0x1c4   : > { %v1967_v15 = vshll.u32 %v6826_v24, %v1958_v13  ;;  %v1968_v8 = vshrl.u32 %v6835_v34, %v4935_v11  ;;  %v1970_v56 = vshll.u32 %v6835_v34, %v1958_v13  ;;  %v1971_v12 = vshrl.u32 %v6828_v41, %v4935_v11 }
 0x1c5   : > { %v1849_v33 = vshrl.u32 %v4874_v0, 16  ;;  %v4953_v25 = vor.u32 %v1962_v52, %v1961_v28  ;;  %v4955_v39 = vor.u32 %v1965_v32, %v1964_v57  ;;  %v1974_v45 = vshrl.u32 %v6824_v26, %v4935_v11 }
 0x1c6   : > { %v1871_v38 = vshrl.u32 %v4876_v58, 16  ;;  %v1952_v17 = vor.u32 8388608, %v1951_v4  ;;  %v4960_v62 = vor.u32 %v1968_v8, %v1967_v15  ;;  %v1972_v63 = vor.u32 %v1971_v12, %v1970_v56  ;;  %v6859_v4 = vld [vmem:[#allocation13_spill] sm:$0xff] }
 0x1c7   : > { %v1825_v55 = vsel %vm1821_vm14, %v1805_v47, %v4778_v37  ;;  %v1826_v0 = vsel %vm1824_vm15, %v4798_v5, 2102212464  ;;  %v1973_v28 = vshll.u32 %v6828_v41, %v1958_v13  ;;  %v649_v52 = vadd.f32 %v648_v50, %v542_v40 }
 0x1c8   : > { %v4969_v57 = vadd.s32 %v1858_v51, %v1849_v33  ;;  %v1881_v32 = vadd.s32 %v1880_v1, %v1871_v38  ;;  %vm1976_vm10 = vcmp.lt.s32.totalorder %v4937_v3, 1  ;;  %vm1979_vm11 = vcmp.lt.s32.totalorder %v4937_v3, 4  ;;  %v746_v1 = vpop.f32.mrf.mxu0 }
 0x1c9   : > { %vm1326_vm6 = vcmp.lt.s32.totalorder %v6859_v4, 0  ;;  %v1975_v15 = vor.u32 %v1974_v45, %v1973_v28  ;;  %vm1978_vm12 = vcmp.lt.s32.totalorder %v4937_v3, 3  ;;  %v1984_v37 = vsel %vm1976_vm10, %v4953_v25, %v4955_v39 }
 0x1ca   : > { %v1985_v5 = vsel %vm1979_vm11, %v1972_v63, 920167782  ;;  %v1738_v13 = vsub.s32 0, %v4929_v35  ;;  %vm1977_vm13 = vcmp.lt.s32.totalorder %v4937_v3, 2  ;;  %v4986_v51 = vshll.u32 %v1952_v17, 8  ;;  %v828_v17 = vpop.f32.mrf.mxu1 }
 0x1cb   : > { %v1986_v47 = vsel %vm1978_vm12, %v4960_v62, %v1985_v5  ;;  %vm1737_vm14 = vcmp.lt.s32.totalorder %v4929_v35, 0  ;;  %v1827_v40 = vsel %vm1823_vm0, %v4780_v20, %v1826_v0  ;;  %v4995_v8 = vadd.s32 %v4882_v27, %v1870_v44 }
 0x1cc   : > { %v1987_v56 = vsel %vm1977_vm13, %v1984_v37, %v1986_v47  ;;  %v1446_v12 = vxor.u32 2147483648, %v4920_v46  ;;  %v1592_v50 = vor.u32 %v1591_v23, %v1590_v22  ;;  %v1885_v33 = vadd.s32 1, %v1881_v32 }
 0x1cd   : > { %v1988_v45 = vsel %vm1976_vm10, %v4955_v39, %v4960_v62  ;;  %vm1884_vm15 = vc.u32 %v4969_v57, %v4995_v8  ;;  %v1989_v20 = vsel %vm1979_vm11, %v1975_v15, 1326507024  ;;  %v2018_v58 = vshrl.u32 %v1987_v56, 16 }
 0x1ce   : > { %v747_v27 = vadd.f32 %v746_v1, %v649_v52  ;;  %v1739_v44 = vsel %vm1737_vm14, %v1738_v13, %v4929_v35  ;;  %v1828_v38 = vsel %vm1822_vm9, %v1825_v55, %v1827_v40  ;;  %v1990_v22 = vsel %vm1978_vm12, %v1972_v63, %v1989_v20 }
 0x1cf   : > { %v1993_v23 = vand.u32 65535, %v4986_v51  ;;  %v1596_v0 = vor.u32 4788187, %v1595_v29  ;;  %v1991_v28 = vsel %vm1977_vm13, %v1988_v45, %v1990_v22  ;;  %v1994_v37 = vshrl.u32 %v4986_v51, 16 }
 0x1d0   : > { %v2017_v15 = vand.u32 65535, %v1987_v56  ;;  %v6860_v52 = vand.u32 2147483647, %v6859_v4  ;;  %v1886_v6 = vsel %vm1884_vm15, %v1885_v33, %v1881_v32  ;;  %v1995_v55 = vand.u32 65535, %v1991_v28 }
 0x1d1   : > { %v1996_v13 = vshrl.u32 %v1991_v28, 16  ;;  %v2020_v63 = vmul.u32 %v2018_v58, %v1993_v23  ;;  %v1308_v47 = vadd.f32 -0.16666654, %v4914_v36  ;;  %v1740_v1 = vclz %v1739_v44 }
 0x1d2   : > { %vm5019_vm0 = vcmp.le.f32.partialorder %v6860_v52, 0.7853982  ;;  %v1882_v29 = vmul.u32 %v4819_v53, %v1828_v38  ;;  %v5025_v40 = vadd.f32 %v828_v17, %v747_v27  ;;  %v1447_v56 = vsel %vm1326_vm6, %v1446_v12, %v4920_v46 }
 0x1d3   : > { %v1449_v32 = vsel %vm1326_vm6, %v1448_v30, %v4579_v31  ;;  %v1998_v33 = vmul.u32 %v1996_v13, %v1993_v23  ;;  %v1999_v45 = vmul.u32 %v1995_v55, %v1994_v37  ;;  %v1599_v20 = vcvt.s32.f32 %v1592_v50 }
 0x1d4   : > { %6863 = vst [vmem:[#allocation2_spill] sm:$0xff] %v5025_v40  ;;  %v5035_v22 = vadd.s32 %v1886_v6, %v1882_v29  ;;  %v5037_v36 = vmul.u32 %v2017_v15, %v1994_v37  ;;  %v2023_v53 = vshll.u32 %v2020_v63, 16  ;;  %v1597_v27 = vand.u32 2147483647, %v1596_v0  ;;  %v6864_v29 = vld [vmem:[#allocation14_spill] sm:$0xff] }
 0x1d5   : > { %v1997_v44 = vmul.u32 %v1995_v55, %v1993_v23  ;;  %v2001_v38 = vshll.u32 %v1998_v33, 16  ;;  %v2019_v17 = vmul.u32 %v2017_v15, %v1993_v23  ;;  %v3502_v28 = vadd.s32 4294967294, %v1740_v1 }
 0x1d6   : > { %v2000_v46 = vmul.u32 %v1996_v13, %v1994_v37  ;;  %v2022_v12 = vmul.u32 %v2018_v58, %v1994_v37  ;;  %v2102_v52 = vand.u32 2139095040, %v5025_v40  ;;  %v2003_v19 = vshll.u32 %v1999_v45, 16 }
 0x1d7   : > { %vm2005_vm9 = vc.u32 %v1997_v44, %v2001_v38  ;;  %v2007_v31 = vadd.s32 %v2001_v38, %v1997_v44  ;;  %vm2027_vm1 = vc.u32 %v2019_v17, %v2023_v53  ;;  %v1888_v30 = vadd.s32 536870912, %v5035_v22 }
 0x1d8   : > { %v2006_v50 = vsel %vm2005_vm9, 1, %v6832_v21  ;;  %v2025_v6 = vshll.u32 %v5037_v36, 16  ;;  %v2028_v0 = vsel %vm2027_vm1, 1, %v6832_v21  ;;  %v2029_v23 = vadd.s32 %v2023_v53, %v2019_v17 }
 0x1d9   : > { %v2008_v55 = vadd.s32 %v2006_v50, %v2000_v46  ;;  %vm2009_vm2 = vc.u32 %v2007_v31, %v2003_v19  ;;  %v2030_v15 = vadd.s32 %v2028_v0, %v2022_v12  ;;  %v1451_v58 = vsel %vm5019_vm0, 0, %v1449_v32 }
 0x1da   : > { %vm3503_vm7 = vcmp.lt.s32.totalorder %v3502_v28, 0  ;;  %v2010_v37 = vsel %vm2009_vm2, 1, %v6832_v21  ;;  %v2103_v13 = vshrl.u32 %v2102_v52, 23  ;;  %v5050_v1 = vsel %vm5019_vm0, %v6859_v4, %v1447_v56 }
 0x1db   : > { %vm1481_vm4 = vcmp.lt.s32.totalorder %v6864_v29, 0  ;;  %v1600_v44 = vmul.f32 %v1599_v20, %v1597_v27  ;;  %v2012_v38 = vadd.s32 %v2010_v37, %v2008_v55  ;;  %vm2031_vm3 = vc.u32 %v2029_v23, %v2025_v6 }
 0x1dc   : > { %v1309_v19 = vmul.f32 %v1308_v47, %v4866_v42  ;;  %v2002_v53 = vshrl.u32 %v1998_v33, 16  ;;  %v2032_v17 = vsel %vm2031_vm3, 1, %v6832_v21  ;;  %v3510_v32 = vadd.s32 4294967169, %v2103_v13 }
 0x1dd   : > { %v5055_v46 = vsel %vm3503_vm7, 0, %v3502_v28  ;;  %v5057_v12 = vshrl.u32 %v1888_v30, 30  ;;  %v2024_v52 = vshrl.u32 %v2020_v63, 16  ;;  %v2034_v31 = vadd.s32 %v2032_v17, %v2030_v15 }
 0x1de   : > { %v5061_v5 = vmul.f32 %v5050_v1, %v5050_v1  ;;  %v1468_v56 = vadd.s32 3, %v1451_v58  ;;  %v2013_v20 = vadd.s32 %v2012_v38, %v2002_v53  ;;  %v2109_v27 = vadd.s32 1, %v3510_v32 }
 0x1df   : > { %v1601_v50 = vxor.u32 2147483648, %v1600_v44  ;;  %v1981_v47 = vsel %vm1979_vm11, %v4960_v62, 2102212464  ;;  %v2026_v33 = vshrl.u32 %v5037_v36, 16  ;;  %v2035_v28 = vadd.s32 %v2034_v31, %v2024_v52 }
 0x1e0   : > { %6865 = vst [vmem:[#allocation26_spill] sm:$0xff] %v5061_v5  ;;  %v1748_v30 = vsub.s32 4294967266, %v5055_v46  ;;  %v1960_v63 = vshrl.u32 %v6829_v48, %v4935_v11  ;;  %v2004_v0 = vshrl.u32 %v1999_v45, 16  ;;  %vm2110_vm5 = vcmp.gt.s32.totalorder %v2109_v27, 0 }
 0x1e1   : > { %v1890_v55 = vshll.u32 %v5057_v12, 30  ;;  %v2036_v15 = vadd.s32 %v2035_v28, %v2026_v33  ;;  %v6743_v58 = vand.u32 2147483647, %v5025_v40  ;;  %v2111_v37 = vsel %vm2110_vm5, %v2109_v27, 0 }
 0x1e2   : > { %v1980_v62 = vsel %vm1976_vm10, %v1960_v63, %v4953_v25  ;;  %v1982_v36 = vsel %vm1978_vm12, %v4955_v39, %v1981_v47  ;;  %v5078_v13 = vadd.s32 %v2013_v20, %v2004_v0  ;;  %v2113_v38 = vand.u32 31, %v2111_v37 }
 0x1e3   : > { %v1310_v11 = vadd.f32 1.0, %v1309_v19  ;;  %v1460_v45 = vmul.f32 -0.00019511016, %v5061_v5  ;;  %v5081_v53 = vand.u32 3, %v1468_v56  ;;  %v6867_v17 = vand.u32 2147483647, %v6864_v29 }
 0x1e4   : > { %v1602_v25 = vsel %vm1481_vm4, %v1601_v50, %v1600_v44  ;;  %v1749_v52 = vadd.s32 127, %v1748_v30  ;;  %v5091_v31 = vadd.s32 %v2029_v23, %v2025_v6  ;;  %v5093_v39 = vsub.s32 32, %v2113_v38 }
 0x1e5   : > { %6866 = vst [vmem:[#allocation27_spill] sm:$0xff] %v5081_v53  ;;  %vm5085_vm8 = vcmp.le.f32.partialorder %v6867_v17, 0.7853982  ;;  %v5096_v19 = vsub.s32 %v5035_v22, %v1890_v55  ;;  %v1983_v56 = vsel %vm1977_vm13, %v1980_v62, %v1982_v36  ;;  %v2040_v20 = vadd.s32 1, %v2036_v15 }
 0x1e6   : > { %v2106_v27 = vand.u32 8388607, %v6743_v58  ;;  %vm2039_vm10 = vc.u32 %v5078_v13, %v5091_v31  ;;  %v5104_v47 = vshrl.u32 %v2111_v37, 5  ;;  %v2116_v6 = vshll.u32 %v6829_v48, %v2113_v38 }
 0x1e7   : > { %v2117_v23 = vshrl.u32 %v6825_v59, %v5093_v39  ;;  %v2120_v22 = vshrl.u32 %v6826_v24, %v5093_v39  ;;  %v2123_v3 = vshrl.u32 %v6835_v34, %v5093_v39  ;;  %v2125_v44 = vshll.u32 %v6835_v34, %v2113_v38 }
 0x1e8   : > { %v2126_v50 = vshrl.u32 %v6828_v41, %v5093_v39  ;;  %v2119_v33 = vshll.u32 %v6825_v59, %v2113_v38  ;;  %v2122_v28 = vshll.u32 %v6826_v24, %v2113_v38  ;;  %v2128_v30 = vshll.u32 %v6828_v41, %v2113_v38 }
 0x1e9   : > { %v2129_v63 = vshrl.u32 %v6824_v26, %v5093_v39  ;;  %v5122_v0 = vmul.f32 %v1310_v11, %v4854_v61  ;;  %v1461_v55 = vadd.f32 0.008332121, %v1460_v45  ;;  %v2041_v37 = vsel %vm2039_vm10, %v2040_v20, %v2036_v15 }
 0x1ea   : > { %v2127_v62 = vor.u32 %v2126_v50, %v2125_v44  ;;  %v5124_v36 = vor.u32 %v2117_v23, %v2116_v6  ;;  %v5126_v17 = vor.u32 %v2120_v22, %v2119_v33  ;;  %v5128_v58 = vor.u32 %v2123_v3, %v2122_v28  ;;  %v546_v6 = vpop.f32.mrf.mxu2  ;;  %v654_v33 = vpop.f32.mrf.mxu3 }
 0x1eb   : > { %6870 = vst [vmem:[#allocation28_spill] sm:$0xff] %v5122_v0  ;;  %v2130_v4 = vor.u32 %v2129_v63, %v2128_v30  ;;  %v5133_v38 = vsel %vm5085_vm8, %v6864_v29, %v1602_v25  ;;  %v1728_v53 = vadd.s32 %v4816_v60, %v4802_v49  ;;  %v2037_v61 = vmul.u32 %v4986_v51, %v1983_v56 }
 0x1ec   : > { %v2107_v11 = vor.u32 8388608, %v2106_v27  ;;  %v1744_v15 = vsub.s32 32, %v5055_v46  ;;  %v1750_v45 = vshll.u32 %v1749_v52, 23  ;;  %v1893_v20 = vsub.s32 0, %v5096_v19  ;;  %v6871_v27 = vld [vmem:[#allocation3_spill] sm:$0xff] }
 0x1ed   : > { %vm2134_vm11 = vcmp.lt.s32.totalorder %v5104_v47, 4  ;;  %v5141_v23 = vadd.s32 %v2041_v37, %v2037_v61  ;;  %vm2131_vm6 = vcmp.lt.s32.totalorder %v5104_v47, 1  ;;  %vm1892_vm12 = vcmp.lt.s32.totalorder %v5096_v19, 0 }
 0x1ee   : > { %v2140_v25 = vsel %vm2134_vm11, %v2127_v62, 920167782  ;;  %v2144_v49 = vsel %vm2134_vm11, %v2130_v4, 1326507024  ;;  %vm2133_vm13 = vcmp.lt.s32.totalorder %v5104_v47, 3  ;;  %v2139_v60 = vsel %vm2131_vm6, %v5124_v36, %v5126_v17 }
 0x1ef   : > { %v2143_v51 = vsel %vm2131_vm6, %v5126_v17, %v5128_v58  ;;  %v2141_v52 = vsel %vm2133_vm13, %v5128_v58, %v2140_v25  ;;  %v2145_v4 = vsel %vm2133_vm13, %v2127_v62, %v2144_v49  ;;  %v5163_v56 = vshll.u32 %v2107_v11, 8 }
 0x1f0   : > { %v547_v22 = vadd.f32 %v546_v6, %v6871_v27  ;;  %v1462_v3 = vmul.f32 %v1461_v55, %v5061_v5  ;;  %v1603_v44 = vsub.s32 4, %v4694_v9  ;;  %v1746_v50 = vshrl.u32 %v1728_v53, %v1744_v15 }
 0x1f1   : > { %vm2132_vm14 = vcmp.lt.s32.totalorder %v5104_v47, 2  ;;  %v1894_v28 = vsel %vm1892_vm12, %v1893_v20, %v5096_v19  ;;  %v2043_v30 = vadd.s32 536870912, %v5141_v23  ;;  %v5177_v62 = vmul.f32 %v5133_v38, %v5133_v38 }
 0x1f2   : > { %v2142_v63 = vsel %vm2132_vm14, %v2139_v60, %v2141_v52  ;;  %v2146_v37 = vsel %vm2132_vm14, %v2143_v51, %v2145_v4  ;;  %v1745_v53 = vshll.u32 %v4929_v35, %v5055_v46  ;;  %v1751_v55 = vor.u32 4788187, %v1750_v45  ;;  %v750_v51 = vpop.f32.mrf.mxu0 }
 0x1f3   : > { %6872 = vst [vmem:[#allocation3_spill] sm:$0xff] %v5177_v62  ;;  %v2150_v61 = vand.u32 65535, %v2146_v37  ;;  %v2148_v11 = vand.u32 65535, %v5163_v56  ;;  %v2151_v15 = vshrl.u32 %v2146_v37, 16  ;;  %v2173_v20 = vshrl.u32 %v2142_v63, 16 }
 0x1f4   : > { %v655_v6 = vadd.f32 %v654_v33, %v547_v22  ;;  %v1747_v25 = vor.u32 %v1746_v50, %v1745_v53  ;;  %v1895_v49 = vclz %v1894_v28  ;;  %v2149_v60 = vshrl.u32 %v5163_v56, 16 }
 0x1f5   : > { %v2172_v52 = vand.u32 65535, %v2142_v63  ;;  %v1463_v27 = vadd.f32 -0.16666654, %v1462_v3  ;;  %v5184_v43 = vshrl.u32 %v2043_v30, 30  ;;  %v2153_v2 = vmul.u32 %v2151_v15, %v2148_v11  ;;  %v832_v3 = vpop.f32.mrf.mxu1 }
 0x1f6   : > { %v1604_v35 = vsel %vm1481_vm4, %v1603_v44, %v4694_v9  ;;  %v1752_v46 = vand.u32 2147483647, %v1751_v55  ;;  %v2154_v45 = vmul.u32 %v2150_v61, %v2149_v60  ;;  %v2175_v37 = vmul.u32 %v2173_v20, %v2148_v11 }
 0x1f7   : > { %v1615_v22 = vmul.f32 -0.00019511016, %v5177_v62  ;;  %v2152_v50 = vmul.u32 %v2150_v61, %v2148_v11  ;;  %v2156_v33 = vshll.u32 %v2153_v2, 16  ;;  %v751_v28 = vadd.f32 %v750_v51, %v655_v6 }
 0x1f8   : > { %v1754_v63 = vcvt.s32.f32 %v1747_v25  ;;  %v3505_v53 = vadd.s32 4294967294, %v1895_v49  ;;  %v2176_v54 = vmul.u32 %v2172_v52, %v2149_v60  ;;  %v2178_v4 = vshll.u32 %v2175_v37, 16 }
 0x1f9   : > { %v2045_v30 = vshll.u32 %v5184_v43, 30  ;;  %v2155_v0 = vmul.u32 %v2151_v15, %v2149_v60  ;;  %vm2160_vm15 = vc.u32 %v2152_v50, %v2156_v33  ;;  %v2174_v42 = vmul.u32 %v2172_v52, %v2148_v11 }
 0x1fa   : > { %v1755_v29 = vmul.f32 %v1754_v63, %v1752_v46  ;;  %v2158_v9 = vshll.u32 %v2154_v45, 16  ;;  %v2161_v44 = vsel %vm2160_vm15, 1, %v6832_v21  ;;  %v2162_v55 = vadd.s32 %v2156_v33, %v2152_v50 }
 0x1fb   : > { %v2163_v10 = vadd.s32 %v2161_v44, %v2155_v0  ;;  %v2177_v40 = vmul.u32 %v2173_v20, %v2149_v60  ;;  %vm2182_vm0 = vc.u32 %v2174_v42, %v2178_v4  ;;  %v5192_v61 = vadd.f32 %v832_v3, %v751_v28 }
 0x1fc   : > { %vm2164_vm9 = vc.u32 %v2162_v55, %v2158_v9  ;;  %v2180_v6 = vshll.u32 %v2176_v54, 16  ;;  %v2183_v25 = vsel %vm2182_vm0, 1, %v6832_v21  ;;  %v2184_v49 = vadd.s32 %v2178_v4, %v2174_v42  ;;  %v551_v55 = vpop.f32.mrf.mxu2 }
 0x1fd   : > { %6873 = vst [vmem:[#allocation29_spill] sm:$0xff] %v5192_v61  ;;  %vm1636_vm1 = vcmp.lt.s32.totalorder %v4494_v18, 0  ;;  %vm3506_vm2 = vcmp.lt.s32.totalorder %v3505_v53, 0  ;;  %v5197_v11 = vsub.s32 %v5141_v23, %v2045_v30  ;;  %v2165_v15 = vsel %vm2164_vm9, 1, %v6832_v21 }
 0x1fe   : > { %v2185_v52 = vadd.s32 %v2183_v25, %v2177_v40  ;;  %v1606_v0 = vsel %vm5085_vm8, 0, %v1604_v35  ;;  %v2157_v20 = vshrl.u32 %v2153_v2, 16  ;;  %v2167_v60 = vadd.s32 %v2165_v15, %v2163_v10 }
 0x1ff   : > { %vm2186_vm7 = vc.u32 %v2184_v49, %v2180_v6  ;;  %v1616_v51 = vadd.f32 0.008332121, %v1615_v22  ;;  %v1756_v46 = vxor.u32 2147483648, %v1755_v29  ;;  %v2257_v42 = vand.u32 2139095040, %v5192_v61 }
 0x200   : > { %v2187_v50 = vsel %vm2186_vm7, 1, %v6832_v21  ;;  %v5204_v4 = vsel %vm3506_vm2, 0, %v3505_v53  ;;  %v2168_v33 = vadd.s32 %v2167_v60, %v2157_v20  ;;  %v2179_v23 = vshrl.u32 %v2175_v37, 16 }
 0x201   : > { %v2189_v28 = vadd.s32 %v2187_v50, %v2185_v52  ;;  %v2048_v63 = vsub.s32 0, %v5197_v11  ;;  %v2115_v40 = vshrl.u32 %v6829_v48, %v5093_v39  ;;  %v2159_v32 = vshrl.u32 %v2154_v45, 16 }
 0x202   : > { %v2258_v2 = vshrl.u32 %v2257_v42, 23  ;;  %vm2047_vm4 = vcmp.lt.s32.totalorder %v5197_v11, 0  ;;  %v2136_v10 = vsel %vm2134_vm11, %v5128_v58, 2102212464  ;;  %v2181_v35 = vshrl.u32 %v2176_v54, 16 }
 0x203   : > { %v2190_v22 = vadd.s32 %v2189_v28, %v2179_v23  ;;  %v1464_v53 = vmul.f32 %v1463_v27, %v5061_v5  ;;  %v1903_v37 = vsub.s32 4294967266, %v5204_v4  ;;  %v5215_v3 = vadd.s32 %v2168_v33, %v2159_v32  ;;  %v660_v33 = vpop.f32.mrf.mxu3 }
 0x204   : > { %v3513_v30 = vadd.s32 4294967169, %v2258_v2  ;;  %v1617_v9 = vmul.f32 %v1616_v51, %v5177_v62  ;;  %v1623_v39 = vadd.s32 3, %v1606_v0  ;;  %v2135_v45 = vsel %vm2131_vm6, %v2115_v40, %v5124_v36 }
 0x205   : > { %v2191_v44 = vadd.s32 %v2190_v22, %v2181_v35  ;;  %v2049_v58 = vsel %vm2047_vm4, %v2048_v63, %v5197_v11  ;;  %v2137_v54 = vsel %vm2133_vm13, %v5126_v17, %v2136_v10  ;;  %v5225_v27 = vadd.s32 %v2184_v49, %v2180_v6  ;;  %v6877_v17 = vld [vmem:[#allocation4_spill] sm:$0xff] }
 0x206   : > { %v2264_v25 = vadd.s32 1, %v3513_v30  ;;  %v6874_v15 = vand.u32 2147483647, %v4494_v18  ;;  %v1757_v36 = vsel %vm1636_vm1, %v1756_v46, %v1755_v29  ;;  %v1899_v0 = vsub.s32 32, %v5204_v4 }
 0x207   : > { %v2195_v20 = vadd.s32 1, %v2191_v44  ;;  %v1904_v60 = vadd.s32 127, %v1903_v37  ;;  %vm2194_vm5 = vc.u32 %v5215_v3, %v5225_v27  ;;  %v552_v6 = vadd.f32 %v551_v55, %v6877_v17  ;;  %v836_v17 = vpop.f32.mrf.mxu1 }
 0x208   : > { %vm5229_vm3 = vcmp.le.f32.partialorder %v6874_v15, 0.7853982  ;;  %vm2265_vm8 = vcmp.gt.s32.totalorder %v2264_v25, 0  ;;  %v2050_v49 = vclz %v2049_v58  ;;  %v2138_v51 = vsel %vm2132_vm14, %v2135_v45, %v2137_v54 }
 0x209   : > { %v6758_v50 = vand.u32 2147483647, %v5192_v61  ;;  %v2266_v42 = vsel %vm2265_vm8, %v2264_v25, 0  ;;  %v5242_v23 = vadd.f32 1.0, %v1464_v53  ;;  %v1618_v29 = vadd.f32 -0.16666654, %v1617_v9 }
 0x20a   : > { %v5244_v46 = vand.u32 3, %v1623_v39  ;;  %v2268_v28 = vand.u32 31, %v2266_v42  ;;  %v1758_v63 = vsub.s32 4, %v4902_v7  ;;  %v5250_v40 = vsel %vm5229_vm3, %v4494_v18, %v1757_v36  ;;  %v754_v39 = vpop.f32.mrf.mxu0 }
 0x20b   : > { %v1883_v47 = vadd.s32 %v4995_v8, %v4969_v57  ;;  %v2196_v32 = vsel %vm2194_vm5, %v2195_v20, %v2191_v44  ;;  %v1905_v2 = vshll.u32 %v1904_v60, 23  ;;  %v2192_v10 = vmul.u32 %v5163_v56, %v2138_v51 }
 0x20c   : > { %6878 = vst [vmem:[#allocation4_spill] sm:$0xff] %v5244_v46  ;;  %v5255_v35 = vsub.s32 32, %v2268_v28  ;;  %v661_v22 = vadd.f32 %v660_v33, %v552_v6  ;;  %v1900_v53 = vshll.u32 %v5096_v19, %v5204_v4  ;;  %v3508_v30 = vadd.s32 4294967294, %v2050_v49 }
 0x20d   : > { %v1901_v37 = vshrl.u32 %v1883_v47, %v1899_v0  ;;  %v2261_v9 = vand.u32 8388607, %v6758_v50  ;;  %v5261_v45 = vadd.s32 %v2196_v32, %v2192_v10  ;;  %v2271_v57 = vshll.u32 %v6829_v48, %v2268_v28 }
 0x20e   : > { %v2272_v8 = vshrl.u32 %v6825_v59, %v5255_v35  ;;  %v2274_v56 = vshll.u32 %v6825_v59, %v2268_v28  ;;  %v2275_v44 = vshrl.u32 %v6826_v24, %v5255_v35  ;;  %v2278_v19 = vshrl.u32 %v6835_v34, %v5255_v35 }
 0x20f   : > { %v2280_v4 = vshll.u32 %v6835_v34, %v2268_v28  ;;  %v2281_v55 = vshrl.u32 %v6828_v41, %v5255_v35  ;;  %v1906_v58 = vor.u32 4788187, %v1905_v2  ;;  %v5274_v54 = vshrl.u32 %v2266_v42, 5 }
 0x210   : > { %v2284_v25 = vshrl.u32 %v6824_v26, %v5255_v35  ;;  %v755_v15 = vadd.f32 %v754_v39, %v661_v22  ;;  %v5278_v36 = vor.u32 %v2272_v8, %v2271_v57  ;;  %v5280_v0 = vor.u32 %v2275_v44, %v2274_v56 }
 0x211   : > { %v2277_v20 = vshll.u32 %v6826_v24, %v2268_v28  ;;  %v2282_v60 = vor.u32 %v2281_v55, %v2280_v4  ;;  %v1619_v6 = vmul.f32 %v1618_v29, %v5177_v62  ;;  %v1902_v49 = vor.u32 %v1901_v37, %v1900_v53 }
 0x212   : > { %v2262_v51 = vor.u32 8388608, %v2261_v9  ;;  %v2283_v33 = vshll.u32 %v6828_v41, %v2268_v28  ;;  %v5287_v42 = vmul.f32 %v5250_v40, %v5250_v40  ;;  %vm3509_vm10 = vcmp.lt.s32.totalorder %v3508_v30, 0 }
 0x213   : > { %v2198_v47 = vadd.s32 536870912, %v5261_v45  ;;  %v5290_v32 = vor.u32 %v2278_v19, %v2277_v20  ;;  %vm2286_vm11 = vcmp.lt.s32.totalorder %v5274_v54, 1  ;;  %vm2289_vm6 = vcmp.lt.s32.totalorder %v5274_v54, 4 }
 0x214   : > { %6879 = vst [vmem:[#allocation30_spill] sm:$0xff] %v5287_v42  ;;  %v2285_v2 = vor.u32 %v2284_v25, %v2283_v33  ;;  %v5294_v10 = vadd.f32 %v836_v17, %v755_v15  ;;  %v5299_v29 = vsel %vm1636_vm1, %v1758_v63, %v4902_v7  ;;  %v1907_v28 = vand.u32 2147483647, %v1906_v58 }
 0x215   : > { %v2294_v22 = vsel %vm2286_vm11, %v5278_v36, %v5280_v0  ;;  %v2295_v53 = vsel %vm2289_vm6, %v2282_v60, 920167782  ;;  %v1909_v37 = vcvt.s32.f32 %v1902_v49  ;;  %v5307_v9 = vsel %vm3509_vm10, 0, %v3508_v30 }
 0x216   : > { %6880 = vst [vmem:[#allocation31_spill] sm:$0xff] %v5294_v10  ;;  %vm2288_vm12 = vcmp.lt.s32.totalorder %v5274_v54, 3  ;;  %v5310_v39 = vshll.u32 %v2262_v51, 8  ;;  %v5312_v57 = vshrl.u32 %v2198_v47, 30  ;;  %vm2287_vm13 = vcmp.lt.s32.totalorder %v5274_v54, 2  ;;  %v6889_v54 = vld [vmem:[#allocation5_spill] sm:$0xff] }
 0x217   : > { %v2296_v7 = vsel %vm2288_vm12, %v5290_v32, %v2295_v53  ;;  %v2298_v63 = vsel %vm2286_vm11, %v5280_v0, %v5290_v32  ;;  %v1770_v30 = vmul.f32 -0.00019511016, %v5287_v42  ;;  %v2299_v56 = vsel %vm2289_vm6, %v2285_v2, 1326507024 }
 0x218   : > { %v2297_v8 = vsel %vm2287_vm13, %v2294_v22, %v2296_v7  ;;  %v2412_v44 = vand.u32 2139095040, %v5294_v10  ;;  %v1910_v19 = vmul.f32 %v1909_v37, %v1907_v28  ;;  %v2300_v4 = vsel %vm2288_vm12, %v2282_v60, %v2299_v56 }
 0x219   : > { %v2327_v55 = vand.u32 65535, %v2297_v8  ;;  %v2328_v58 = vshrl.u32 %v2297_v8, 16  ;;  %v2054_v25 = vsub.s32 32, %v5307_v9  ;;  %v2058_v15 = vsub.s32 4294967266, %v5307_v9 }
 0x21a   : > { %v2301_v20 = vsel %vm2287_vm13, %v2298_v63, %v2300_v4  ;;  %v2303_v17 = vand.u32 65535, %v5310_v39  ;;  %v2200_v49 = vshll.u32 %v5312_v57, 30  ;;  %v2304_v51 = vshrl.u32 %v5310_v39, 16 }
 0x21b   : > { %v2305_v33 = vand.u32 65535, %v2301_v20  ;;  %v2306_v47 = vshrl.u32 %v2301_v20, 16  ;;  %v5339_v60 = vmul.f32 %v5242_v23, %v5050_v1  ;;  %v1761_v2 = vsel %vm5229_vm3, 0, %v5299_v29 }
 0x21c   : > { %v2330_v28 = vmul.u32 %v2328_v58, %v2303_v17  ;;  %v2413_v22 = vshrl.u32 %v2412_v44, 23  ;;  %v5344_v53 = vadd.f32 1.0, %v1619_v6  ;;  %v1771_v37 = vadd.f32 0.008332121, %v1770_v30 }
 0x21d   : > { %6881 = vst [vmem:[#allocation32_spill] sm:$0xff] %v5339_v60  ;;  %v2038_v7 = vadd.s32 %v5091_v31, %v5078_v13  ;;  %v5348_v63 = vmul.u32 %v2327_v55, %v2304_v51  ;;  %vm1791_vm14 = vcmp.lt.s32.totalorder %v4683_v14, 0  ;;  %v1911_v8 = vxor.u32 2147483648, %v1910_v19 }
 0x21e   : > { %v2308_v56 = vmul.u32 %v2306_v47, %v2303_v17  ;;  %v5351_v1 = vmul.u32 %v2305_v33, %v2304_v51  ;;  %v2333_v23 = vshll.u32 %v2330_v28, 16  ;;  %v2059_v52 = vadd.s32 127, %v2058_v15 }
 0x21f   : > { %v2056_v4 = vshrl.u32 %v2038_v7, %v2054_v25  ;;  %v5354_v29 = vsub.s32 %v5261_v45, %v2200_v49  ;;  %v2329_v6 = vmul.u32 %v2327_v55, %v2303_v17  ;;  %v2307_v44 = vmul.u32 %v2305_v33, %v2303_v17 }
 0x220   : > { %v2311_v30 = vshll.u32 %v2308_v56, 16  ;;  %v2332_v20 = vmul.u32 %v2328_v58, %v2304_v51  ;;  %v3516_v50 = vadd.s32 4294967169, %v2413_v22  ;;  %v6882_v13 = vand.u32 2147483647, %v4683_v14 }
 0x221   : > { %v2310_v18 = vmul.u32 %v2306_v47, %v2304_v51  ;;  %v2313_v5 = vshll.u32 %v5351_v1, 16  ;;  %v2335_v25 = vshll.u32 %v5348_v63, 16  ;;  %vm2337_vm0 = vc.u32 %v2329_v6, %v2333_v23 }
 0x222   : > { %vm5358_vm15 = vcmp.le.f32.partialorder %v6882_v13, 0.7853982  ;;  %vm2315_vm9 = vc.u32 %v2307_v44, %v2311_v30  ;;  %v2317_v45 = vadd.s32 %v2311_v30, %v2307_v44  ;;  %v2338_v55 = vsel %vm2337_vm0, 1, %v6832_v21 }
 0x223   : > { %v2339_v15 = vadd.s32 %v2333_v23, %v2329_v6  ;;  %v2055_v58 = vshll.u32 %v5197_v11, %v5307_v9  ;;  %v2060_v17 = vshll.u32 %v2059_v52, 23  ;;  %v2316_v49 = vsel %vm2315_vm9, 1, %v6832_v21 }
 0x224   : > { %v2340_v33 = vadd.s32 %v2338_v55, %v2332_v20  ;;  %v2318_v22 = vadd.s32 %v2316_v49, %v2310_v18  ;;  %vm2319_vm1 = vc.u32 %v2317_v45, %v2313_v5  ;;  %v6763_v51 = vand.u32 2147483647, %v5294_v10 }
 0x225   : > { %vm2341_vm2 = vc.u32 %v2339_v15, %v2335_v25  ;;  %v2203_v47 = vsub.s32 0, %v5354_v29  ;;  %v2320_v7 = vsel %vm2319_vm1, 1, %v6832_v21  ;;  %v2419_v6 = vadd.s32 1, %v3516_v50 }
 0x226   : > { %v2342_v23 = vsel %vm2341_vm2, 1, %v6832_v21  ;;  %v1772_v11 = vmul.f32 %v1771_v37, %v5287_v42  ;;  %v2057_v9 = vor.u32 %v2056_v4, %v2055_v58  ;;  %vm2202_vm7 = vcmp.lt.s32.totalorder %v5354_v29, 0 }
 0x227   : > { %v2344_v52 = vadd.s32 %v2342_v23, %v2340_v33  ;;  %v1912_v18 = vsel %vm1791_vm14, %v1911_v8, %v1910_v19  ;;  %v2061_v5 = vor.u32 4788187, %v2060_v17  ;;  %v2322_v44 = vadd.s32 %v2320_v7, %v2318_v22 }
 0x228   : > { %vm2420_vm4 = vcmp.gt.s32.totalorder %v2419_v6, 0  ;;  %v5378_v30 = vadd.s32 3, %v1761_v2  ;;  %v2334_v20 = vshrl.u32 %v2330_v28, 16  ;;  %v2416_v13 = vand.u32 8388607, %v6763_v51 }
 0x229   : > { %v2421_v45 = vsel %vm2420_vm4, %v2419_v6, 0  ;;  %v1913_v50 = vsub.s32 4, %v5057_v12  ;;  %v2204_v37 = vsel %vm2202_vm7, %v2203_v47, %v5354_v29  ;;  %v2312_v4 = vshrl.u32 %v2308_v56, 16 }
 0x22a   : > { %v2423_v55 = vand.u32 31, %v2421_v45  ;;  %v5384_v58 = vadd.f32 -0.16666654, %v1772_v11  ;;  %v5389_v19 = vsel %vm5358_vm15, %v4683_v14, %v1912_v18  ;;  %v2064_v2 = vcvt.s32.f32 %v2057_v9 }
 0x22b   : > { %v2345_v8 = vadd.s32 %v2344_v52, %v2334_v20  ;;  %v2062_v28 = vand.u32 2147483647, %v2061_v5  ;;  %v2270_v17 = vshrl.u32 %v6829_v48, %v5255_v35  ;;  %v2323_v49 = vadd.s32 %v2322_v44, %v2312_v4 }
 0x22c   : > { %v5393_v33 = vsub.s32 32, %v2423_v55  ;;  %v2205_v22 = vclz %v2204_v37  ;;  %v2291_v56 = vsel %vm2289_vm6, %v5290_v32, 2102212464  ;;  %v2336_v47 = vshrl.u32 %v5348_v63, 16 }
 0x22d   : > { %v2417_v7 = vor.u32 8388608, %v2416_v13  ;;  %v2314_v23 = vshrl.u32 %v5351_v1, 16  ;;  %v2426_v6 = vshll.u32 %v6829_v48, %v2423_v55  ;;  %v5405_v52 = vshrl.u32 %v2421_v45, 5 }
 0x22e   : > { %v2427_v11 = vshrl.u32 %v6825_v59, %v5393_v33  ;;  %v2430_v35 = vshrl.u32 %v6826_v24, %v5393_v33  ;;  %v2346_v9 = vadd.s32 %v2345_v8, %v2336_v47  ;;  %v2429_v18 = vshll.u32 %v6825_v59, %v2423_v55 }
 0x22f   : > { %v2433_v32 = vshrl.u32 %v6835_v34, %v5393_v33  ;;  %v5410_v5 = vadd.s32 %v2323_v49, %v2314_v23  ;;  %v2432_v1 = vshll.u32 %v6826_v24, %v2423_v55  ;;  %v2435_v20 = vshll.u32 %v6835_v34, %v2423_v55 }
 0x230   : > { %v5412_v44 = vor.u32 %v2427_v11, %v2426_v6  ;;  %v5416_v13 = vor.u32 %v2430_v35, %v2429_v18  ;;  %v2436_v37 = vshrl.u32 %v6828_v41, %v5393_v33  ;;  %v2438_v45 = vshll.u32 %v6828_v41, %v2423_v55 }
 0x231   : > { %v2439_v4 = vshrl.u32 %v6824_v26, %v5393_v33  ;;  %v3511_v8 = vadd.s32 4294967294, %v2205_v22  ;;  %v2290_v49 = vsel %vm2286_vm11, %v2270_v17, %v5278_v36  ;;  %v2292_v47 = vsel %vm2288_vm12, %v5280_v0, %v2291_v56  ;;  %v556_v22 = vpop.f32.mrf.mxu2 }
 0x232   : > { %v5431_v23 = vadd.s32 %v2339_v15, %v2335_v25  ;;  %vm1946_vm3 = vcmp.lt.s32.totalorder %v4843_v16, 0  ;;  %v2350_v6 = vadd.s32 1, %v2346_v9  ;;  %v5434_v55 = vor.u32 %v2433_v32, %v2432_v1 }
 0x233   : > { %v2437_v11 = vor.u32 %v2436_v37, %v2435_v20  ;;  %v2440_v35 = vor.u32 %v2439_v4, %v2438_v45  ;;  %v2065_v18 = vmul.f32 %v2064_v2, %v2062_v28  ;;  %vm2441_vm8 = vcmp.lt.s32.totalorder %v5405_v52, 1  ;;  %v666_v45 = vpop.f32.mrf.mxu3 }
 0x234   : > { %vm2349_vm5 = vc.u32 %v5410_v5, %v5431_v23  ;;  %vm2444_vm10 = vcmp.lt.s32.totalorder %v5405_v52, 4  ;;  %v2293_v36 = vsel %vm2287_vm13, %v2290_v49, %v2292_v47  ;;  %v2449_v0 = vsel %vm2441_vm8, %v5412_v44, %v5416_v13 }
 0x235   : > { %v2450_v63 = vsel %vm2444_vm10, %v2437_v11, 920167782  ;;  %v5448_v25 = vshll.u32 %v2417_v7, 8  ;;  %v5452_v15 = vmul.f32 %v5389_v19, %v5389_v19  ;;  %v6886_v2 = vand.u32 2147483647, %v4843_v16 }
 0x236   : > { %vm3512_vm6 = vcmp.lt.s32.totalorder %v3511_v8, 0  ;;  %vm2443_vm12 = vcmp.lt.s32.totalorder %v5405_v52, 3  ;;  %v557_v17 = vadd.f32 %v556_v22, %v6889_v54  ;;  %v2351_v56 = vsel %vm2349_vm5, %v2350_v6, %v2346_v9 }
 0x237   : > { %6885 = vst [vmem:[#allocation33_spill] sm:$0xff] %v5452_v15  ;;  %vm5456_vm11 = vcmp.le.f32.partialorder %v6886_v2, 0.7853982  ;;  %vm2442_vm13 = vcmp.lt.s32.totalorder %v5405_v52, 2  ;;  %v2451_v7 = vsel %vm2443_vm12, %v5434_v55, %v2450_v63  ;;  %v2454_v32 = vsel %vm2444_vm10, %v2440_v35, 1326507024 }
 0x238   : > { %v2066_v1 = vxor.u32 2147483648, %v2065_v18  ;;  %v2347_v20 = vmul.u32 %v5310_v39, %v2293_v36  ;;  %v2452_v37 = vsel %vm2442_vm13, %v2449_v0, %v2451_v7  ;;  %v2453_v9 = vsel %vm2441_vm8, %v5416_v13, %v5434_v55 }
 0x239   : > { %v5475_v4 = vsel %vm3512_vm6, 0, %v3511_v8  ;;  %v2455_v49 = vsel %vm2443_vm12, %v2437_v11, %v2454_v32  ;;  %v2458_v47 = vand.u32 65535, %v5448_v25  ;;  %v2483_v6 = vshrl.u32 %v2452_v37, 16 }
 0x23a   : > { %v5485_v39 = vsel %vm1791_vm14, %v1913_v50, %v5057_v12  ;;  %v1925_v35 = vmul.f32 -0.00019511016, %v5452_v15  ;;  %v5488_v22 = vadd.s32 %v2351_v56, %v2347_v20  ;;  %v2482_v36 = vand.u32 65535, %v2452_v37  ;;  %v758_v56 = vpop.f32.mrf.mxu0 }
 0x23b   : > { %v5492_v8 = vmul.f32 %v5344_v53, %v5133_v38  ;;  %v2456_v11 = vsel %vm2442_vm13, %v2453_v9, %v2455_v49  ;;  %v2485_v0 = vmul.u32 %v2483_v6, %v2458_v47  ;;  %v667_v63 = vadd.f32 %v666_v45, %v557_v17 }
 0x23c   : > { %v2067_v2 = vsel %vm1946_vm3, %v2066_v1, %v2065_v18  ;;  %v2213_v12 = vsub.s32 4294967266, %v5475_v4  ;;  %v2459_v50 = vshrl.u32 %v5448_v25, 16  ;;  %v2460_v54 = vand.u32 65535, %v2456_v11 }
 0x23d   : > { %v5502_v7 = vmul.f32 %v5384_v58, %v5287_v42  ;;  %v2461_v53 = vshrl.u32 %v2456_v11, 16  ;;  %v2488_v32 = vshll.u32 %v2485_v0, 16  ;;  %v1926_v17 = vadd.f32 0.008332121, %v1925_v35  ;;  %v840_v11 = vpop.f32.mrf.mxu1 }
 0x23e   : > { %v2353_v20 = vadd.s32 536870912, %v5488_v22  ;;  %v2484_v18 = vmul.u32 %v2482_v36, %v2458_v47  ;;  %v2486_v1 = vmul.u32 %v2482_v36, %v2459_v50  ;;  %v5511_v37 = vsel %vm5456_vm11, %v4843_v16, %v2067_v2 }
 0x23f   : > { %v2193_v58 = vadd.s32 %v5225_v27, %v5215_v3  ;;  %v2463_v9 = vmul.u32 %v2461_v53, %v2458_v47  ;;  %v759_v45 = vadd.f32 %v758_v56, %v667_v63  ;;  %v2214_v49 = vadd.s32 127, %v2213_v12 }
 0x240   : > { %v2464_v51 = vmul.u32 %v2460_v54, %v2459_v50  ;;  %v2487_v38 = vmul.u32 %v2483_v6, %v2459_v50  ;;  %vm2492_vm14 = vc.u32 %v2484_v18, %v2488_v32  ;;  %v2425_v35 = vshrl.u32 %v6829_v48, %v5393_v33 }
 0x241   : > { %v2462_v14 = vmul.u32 %v2460_v54, %v2458_v47  ;;  %v2466_v36 = vshll.u32 %v2463_v9, 16  ;;  %v2493_v42 = vsel %vm2492_vm14, 1, %v6832_v21  ;;  %v5518_v46 = vshrl.u32 %v2353_v20, 30 }
 0x242   : > { %v2490_v2 = vshll.u32 %v2486_v1, 16  ;;  %v2494_v62 = vadd.s32 %v2488_v32, %v2484_v18  ;;  %v2495_v10 = vadd.s32 %v2493_v42, %v2487_v38  ;;  %v2446_v3 = vsel %vm2444_vm10, %v5434_v55, 2102212464 }
 0x243   : > { %v2465_v27 = vmul.u32 %v2461_v53, %v2459_v50  ;;  %vm2470_vm0 = vc.u32 %v2462_v14, %v2466_v36  ;;  %v5523_v6 = vadd.f32 %v840_v11, %v759_v45  ;;  %v2468_v63 = vshll.u32 %v2464_v51, 16 }
 0x244   : > { %v2471_v33 = vsel %vm2470_vm0, 1, %v6832_v21  ;;  %v2472_v47 = vadd.s32 %v2466_v36, %v2462_v14  ;;  %vm2496_vm9 = vc.u32 %v2494_v62, %v2490_v2  ;;  %v2209_v12 = vsub.s32 32, %v5475_v4 }
 0x245   : > { %v2215_v54 = vshll.u32 %v2214_v49, 23  ;;  %v2473_v56 = vadd.s32 %v2471_v33, %v2465_v27  ;;  %v2497_v32 = vsel %vm2496_vm9, 1, %v6832_v21  ;;  %v2445_v42 = vsel %vm2441_vm8, %v2425_v35, %v5412_v44 }
 0x246   : > { %vm2474_vm1 = vc.u32 %v2472_v47, %v2468_v63  ;;  %v2489_v55 = vshrl.u32 %v2485_v0, 16  ;;  %v2499_v50 = vadd.s32 %v2497_v32, %v2495_v10  ;;  %v2355_v38 = vshll.u32 %v5518_v46, 30 }
 0x247   : > { %v2447_v14 = vsel %vm2443_vm12, %v5416_v13, %v2446_v3  ;;  %v2475_v53 = vsel %vm2474_vm1, 1, %v6832_v21  ;;  %v2567_v20 = vand.u32 2139095040, %v5523_v6  ;;  %v2467_v18 = vshrl.u32 %v2463_v9, 16 }
 0x248   : > { %v2477_v45 = vadd.s32 %v2475_v53, %v2473_v56  ;;  %v2491_v49 = vshrl.u32 %v2486_v1, 16  ;;  %v2500_v11 = vadd.s32 %v2499_v50, %v2489_v55  ;;  %v1927_v36 = vmul.f32 %v1926_v17, %v5452_v15 }
 0x249   : > { %v2068_v44 = vsub.s32 4, %v5184_v43  ;;  %v5541_v10 = vmul.f32 %v5511_v37, %v5511_v37  ;;  %v2568_v0 = vshrl.u32 %v2567_v20, 23  ;;  %v2211_v35 = vshrl.u32 %v2193_v58, %v2209_v12 }
 0x24a   : > { %v2469_v27 = vshrl.u32 %v2464_v51, 16  ;;  %v2478_v13 = vadd.s32 %v2477_v45, %v2467_v18  ;;  %v2501_v3 = vadd.s32 %v2500_v11, %v2491_v49  ;;  %v2210_v63 = vshll.u32 %v5354_v29, %v5475_v4  ;;  %v561_v18 = vpop.f32.mrf.mxu2 }
 0x24b   : > { %6890 = vst [vmem:[#allocation5_spill] sm:$0xff] %v5541_v10  ;;  %v2216_v9 = vor.u32 4788187, %v2215_v54  ;;  %v2448_v1 = vsel %vm2442_vm13, %v2445_v42, %v2447_v14  ;;  %v3519_v33 = vadd.s32 4294967169, %v2568_v0  ;;  %v5548_v17 = vsub.s32 %v5488_v22, %v2355_v38 }
 0x24c   : > { %v5550_v47 = vadd.s32 %v2478_v13, %v2469_v27  ;;  %v5552_v56 = vadd.s32 %v2494_v62, %v2490_v2  ;;  %v2505_v32 = vadd.s32 1, %v2501_v3  ;;  %v1775_v51 = vadd.f32 1.0, %v5502_v7  ;;  %v6895_v13 = vld [vmem:[#allocation6_spill] sm:$0xff] }
 0x24d   : > { %v1928_v58 = vadd.f32 -0.16666654, %v1927_v36  ;;  %v6891_v29 = vsel %vm5358_vm15, 0, %v5485_v39  ;;  %v2574_v12 = vadd.s32 1, %v3519_v33  ;;  %v2069_v52 = vsel %vm1946_vm3, %v2068_v44, %v5184_v43 }
 0x24e   : > { %v1933_v4 = vadd.s32 3, %v6891_v29  ;;  %v2212_v22 = vor.u32 %v2211_v35, %v2210_v63  ;;  %v2502_v54 = vmul.u32 %v5448_v25, %v2448_v1  ;;  %vm2504_vm2 = vc.u32 %v5550_v47, %v5552_v56 }
 0x24f   : > { %v2080_v62 = vmul.f32 -0.00019511016, %v5541_v10  ;;  %v2506_v7 = vsel %vm2504_vm2, %v2505_v32, %v2501_v3  ;;  %v6773_v2 = vand.u32 2147483647, %v5523_v6  ;;  %vm2575_vm7 = vcmp.gt.s32.totalorder %v2574_v12, 0  ;;  %v6896_v32 = vld [vmem:[#allocation2_spill] sm:$0xff] }
 0x250   : > { %v2217_v31 = vand.u32 2147483647, %v2216_v9  ;;  %v2358_v39 = vsub.s32 0, %v5548_v17  ;;  %v2507_v42 = vadd.s32 %v2506_v7, %v2502_v54  ;;  %v2576_v55 = vsel %vm2575_vm7, %v2574_v12, 0 }
 0x251   : > { %v5570_v43 = vand.u32 3, %v5378_v30  ;;  %vm2357_vm15 = vcmp.lt.s32.totalorder %v5548_v17, 0  ;;  %v2578_v25 = vand.u32 31, %v2576_v55  ;;  %v5574_v14 = vand.u32 3, %v1933_v4 }
 0x252   : > { %v2219_v53 = vcvt.s32.f32 %v2212_v22  ;;  %v2508_v20 = vadd.s32 536870912, %v2507_v42  ;;  %v5577_v45 = vmul.f32 %v1775_v51, %v5250_v40  ;;  %v2071_v49 = vsel %vm5456_vm11, 0, %v2069_v52 }
 0x253   : > { %6892 = vst [vmem:[#allocation34_spill] sm:$0xff] %v5570_v43  ;;  %v2571_v30 = vand.u32 8388607, %v6773_v2  ;;  %v5583_v11 = vsub.s32 32, %v2578_v25  ;;  %v1929_v36 = vmul.f32 %v1928_v58, %v5452_v15  ;;  %v2081_v44 = vadd.f32 0.008332121, %v2080_v62  ;;  %v672_v62 = vpop.f32.mrf.mxu3 }
 0x254   : > { %6893 = vst [vmem:[#allocation35_spill] sm:$0xff] %v5574_v14  ;;  %v2220_v0 = vmul.f32 %v2219_v53, %v2217_v31  ;;  %v2359_v35 = vsel %vm2357_vm15, %v2358_v39, %v5548_v17  ;;  %v5587_v27 = vshrl.u32 %v2508_v20, 30  ;;  %v562_v3 = vadd.f32 %v561_v18, %v6895_v13 }
 0x255   : > { %6894 = vst [vmem:[#allocation36_spill] sm:$0xff] %v5577_v45  ;;  %v2582_v40 = vshrl.u32 %v6825_v59, %v5583_v11  ;;  %v2585_v28 = vshrl.u32 %v6826_v24, %v5583_v11  ;;  %v2581_v63 = vshll.u32 %v6829_v48, %v2578_v25  ;;  %v2584_v9 = vshll.u32 %v6825_v59, %v2578_v25 }
 0x256   : > { %v2588_v1 = vshrl.u32 %v6835_v34, %v5583_v11  ;;  %v2591_v33 = vshrl.u32 %v6828_v41, %v5583_v11  ;;  %vm2101_vm4 = vcmp.lt.s32.totalorder %v6896_v32, 0  ;;  %v2572_v51 = vor.u32 8388608, %v2571_v30 }
 0x257   : > { %v5601_v58 = vshrl.u32 %v2576_v55, 5  ;;  %v2590_v29 = vshll.u32 %v6835_v34, %v2578_v25  ;;  %v2594_v4 = vshrl.u32 %v6824_v26, %v5583_v11  ;;  %v5606_v12 = vor.u32 %v2582_v40, %v2581_v63 }
 0x258   : > { %v5608_v52 = vor.u32 %v2585_v28, %v2584_v9  ;;  %v2587_v22 = vshll.u32 %v6826_v24, %v2578_v25  ;;  %v2593_v54 = vshll.u32 %v6828_v41, %v2578_v25  ;;  %v2360_v31 = vclz %v2359_v35 }
 0x259   : > { %v2510_v39 = vshll.u32 %v5587_v27, 30  ;;  %v2592_v55 = vor.u32 %v2591_v33, %v2590_v29  ;;  %v1930_v53 = vadd.f32 1.0, %v1929_v36  ;;  %v2088_v20 = vadd.s32 3, %v2071_v49 }
 0x25a   : > { %v5614_v18 = vor.u32 %v2588_v1, %v2587_v22  ;;  %v2595_v30 = vor.u32 %v2594_v4, %v2593_v54  ;;  %v2082_v40 = vmul.f32 %v2081_v44, %v5541_v10  ;;  %v6897_v28 = vand.u32 2147483647, %v6896_v32  ;;  %v762_v44 = vpop.f32.mrf.mxu0 }
 0x25b   : > { %v2223_v25 = vsub.s32 4, %v5312_v57  ;;  %vm2596_vm5 = vcmp.lt.s32.totalorder %v5601_v58, 1  ;;  %v673_v35 = vadd.f32 %v672_v62, %v562_v3  ;;  %v2221_v63 = vxor.u32 2147483648, %v2220_v0 }
 0x25c   : > { %vm5619_vm3 = vcmp.le.f32.partialorder %v6897_v28, 0.7853982  ;;  %vm2599_vm8 = vcmp.lt.s32.totalorder %v5601_v58, 4  ;;  %v2604_v49 = vsel %vm2596_vm5, %v5606_v12, %v5608_v52  ;;  %v5630_v36 = vshll.u32 %v2572_v51, 8 }
 0x25d   : > { %v3514_v9 = vadd.s32 4294967294, %v2360_v31  ;;  %v5632_v1 = vsub.s32 %v2507_v42, %v2510_v39  ;;  %vm2598_vm10 = vcmp.lt.s32.totalorder %v5601_v58, 3  ;;  %v2605_v33 = vsel %vm2599_vm8, %v2592_v55, 920167782 }
 0x25e   : > { %vm2597_vm11 = vcmp.lt.s32.totalorder %v5601_v58, 2  ;;  %v2606_v3 = vsel %vm2598_vm10, %v5614_v18, %v2605_v33  ;;  %v2608_v51 = vsel %vm2596_vm5, %v5608_v52, %v5614_v18  ;;  %v2609_v42 = vsel %vm2599_vm8, %v2595_v30, 1326507024  ;;  %v844_v30 = vpop.f32.mrf.mxu1 }
 0x25f   : > { %v2083_v29 = vadd.f32 -0.16666654, %v2082_v40  ;;  %v2607_v4 = vsel %vm2597_vm11, %v2604_v49, %v2606_v3  ;;  %v2610_v22 = vsel %vm2598_vm10, %v2592_v55, %v2609_v42  ;;  %v763_v54 = vadd.f32 %v762_v44, %v673_v35 }
 0x260   : > { %v5654_v62 = vsel %vm2101_vm4, %v2223_v25, %v5312_v57  ;;  %v2611_v31 = vsel %vm2597_vm11, %v2608_v51, %v2610_v22  ;;  %v2613_v39 = vand.u32 65535, %v5630_v36  ;;  %v2638_v28 = vshrl.u32 %v2607_v4, 16 }
 0x261   : > { %vm3515_vm6 = vcmp.lt.s32.totalorder %v3514_v9, 0  ;;  %v2615_v40 = vand.u32 65535, %v2611_v31  ;;  %v2616_v33 = vshrl.u32 %v2611_v31, 16  ;;  %v2637_v49 = vand.u32 65535, %v2607_v4 }
 0x262   : > { %v2222_v55 = vsel %vm2101_vm4, %v2221_v63, %v2220_v0  ;;  %v2513_v35 = vsub.s32 0, %v5632_v1  ;;  %v2614_v44 = vshrl.u32 %v5630_v36, 16  ;;  %v2640_v57 = vmul.u32 %v2638_v28, %v2613_v39 }
 0x263   : > { %v5664_v25 = vmul.f32 %v1930_v53, %v5389_v19  ;;  %v5666_v3 = vand.u32 3, %v2088_v20  ;;  %vm2512_vm12 = vcmp.lt.s32.totalorder %v5632_v1, 0  ;;  %v5669_v51 = vadd.f32 %v844_v30, %v763_v54 }
 0x264   : > { %v5674_v4 = vsel %vm3515_vm6, 0, %v3514_v9  ;;  %v2618_v0 = vmul.u32 %v2616_v33, %v2613_v39  ;;  %v2619_v63 = vmul.u32 %v2615_v40, %v2614_v44  ;;  %v5677_v22 = vmul.f32 %v2083_v29, %v5541_v10 }
 0x265   : > { %6900 = vst [vmem:[#allocation6_spill] sm:$0xff] %v5664_v25  ;;  %v5682_v19 = vsel %vm5619_vm3, %v6896_v32, %v2222_v55  ;;  %v2641_v53 = vmul.u32 %v2637_v49, %v2614_v44  ;;  %v2643_v20 = vshll.u32 %v2640_v57, 16  ;;  %v2514_v54 = vsel %vm2512_vm12, %v2513_v35, %v5632_v1 }
 0x266   : > { %6901 = vst [vmem:[#allocation37_spill] sm:$0xff] %v5666_v3  ;;  %v2617_v31 = vmul.u32 %v2615_v40, %v2613_v39  ;;  %v2621_v30 = vshll.u32 %v2618_v0, 16  ;;  %v2639_v50 = vmul.u32 %v2637_v49, %v2613_v39  ;;  %v2368_v9 = vsub.s32 4294967266, %v5674_v4 }
 0x267   : > { %v2620_v7 = vmul.u32 %v2616_v33, %v2614_v44  ;;  %v2642_v38 = vmul.u32 %v2638_v28, %v2614_v44  ;;  %v2722_v2 = vand.u32 2139095040, %v5669_v51  ;;  %v2623_v29 = vshll.u32 %v2619_v63, 16 }
 0x268   : > { %vm2625_vm13 = vc.u32 %v2617_v31, %v2621_v30  ;;  %v2627_v42 = vadd.s32 %v2621_v30, %v2617_v31  ;;  %vm2647_vm14 = vc.u32 %v2639_v50, %v2643_v20  ;;  %v2515_v16 = vclz %v2514_v54 }
 0x269   : > { %v2626_v55 = vsel %vm2625_vm13, 1, %v6832_v21  ;;  %v2645_v3 = vshll.u32 %v2641_v53, 16  ;;  %v2648_v32 = vsel %vm2647_vm14, 1, %v6832_v21  ;;  %v2649_v40 = vadd.s32 %v2643_v20, %v2639_v50 }
 0x26a   : > { %v2628_v35 = vadd.s32 %v2626_v55, %v2620_v7  ;;  %vm2629_vm0 = vc.u32 %v2627_v42, %v2623_v29  ;;  %v2650_v39 = vadd.s32 %v2648_v32, %v2642_v38  ;;  %v2364_v49 = vsub.s32 32, %v5674_v4 }
 0x26b   : > { %v2369_v33 = vadd.s32 127, %v2368_v9  ;;  %v2630_v28 = vsel %vm2629_vm0, 1, %v6832_v21  ;;  %v2723_v44 = vshrl.u32 %v2722_v2, 23  ;;  %v2601_v31 = vsel %vm2599_vm8, %v5614_v18, 2102212464 }
 0x26c   : > { %v2622_v54 = vshrl.u32 %v2618_v0, 16  ;;  %v2632_v30 = vadd.s32 %v2630_v28, %v2628_v35  ;;  %vm2651_vm9 = vc.u32 %v2649_v40, %v2645_v3  ;;  %v3517_v60 = vadd.s32 4294967294, %v2515_v16 }
 0x26d   : > { %v2580_v7 = vshrl.u32 %v6829_v48, %v5583_v11  ;;  %v2652_v50 = vsel %vm2651_vm9, 1, %v6832_v21  ;;  %v3522_v38 = vadd.s32 4294967169, %v2723_v44  ;;  %v2624_v32 = vshrl.u32 %v2619_v63, 16  ;;  %v566_v44 = vpop.f32.mrf.mxu2 }
 0x26e   : > { %v2633_v42 = vadd.s32 %v2632_v30, %v2622_v54  ;;  %v2644_v20 = vshrl.u32 %v2640_v57, 16  ;;  %v2654_v9 = vadd.s32 %v2652_v50, %v2650_v39  ;;  %v2348_v2 = vadd.s32 %v5431_v23, %v5410_v5 }
 0x26f   : > { %v2600_v18 = vsel %vm2596_vm5, %v2580_v7, %v5606_v12  ;;  %v2602_v16 = vsel %vm2598_vm10, %v5608_v52, %v2601_v31  ;;  %v2729_v0 = vadd.s32 1, %v3522_v38  ;;  %v5707_v11 = vmul.f32 %v5682_v19, %v5682_v19 }
 0x270   : > { %v5709_v63 = vadd.s32 %v2633_v42, %v2624_v32  ;;  %v2646_v57 = vshrl.u32 %v2641_v53, 16  ;;  %v2655_v29 = vadd.s32 %v2654_v9, %v2644_v20  ;;  %v2366_v55 = vshrl.u32 %v2348_v2, %v2364_v49  ;;  %v6904_v32 = vld [vmem:[#allocation7_spill] sm:$0xff] }
 0x271   : > { %6902 = vst [vmem:[#allocation38_spill] sm:$0xff] %v5707_v11  ;;  %vm3518_vm1 = vcmp.lt.s32.totalorder %v3517_v60, 0  ;;  %v5711_v5 = vadd.s32 %v2649_v40, %v2645_v3  ;;  %vm2730_vm2 = vcmp.gt.s32.totalorder %v2729_v0, 0  ;;  %v2370_v23 = vshll.u32 %v2369_v33, 23 }
 0x272   : > { %v2603_v12 = vsel %vm2597_vm11, %v2600_v18, %v2602_v16  ;;  %v2656_v35 = vadd.s32 %v2655_v29, %v2646_v57  ;;  %v6779_v52 = vand.u32 2147483647, %v5669_v51  ;;  %v2365_v28 = vshll.u32 %v5548_v17, %v5674_v4 }
 0x273   : > { %vm2659_vm7 = vc.u32 %v5709_v63, %v5711_v5  ;;  %v2731_v53 = vsel %vm2730_vm2, %v2729_v0, 0  ;;  %v6903_v3 = vsel %vm5619_vm3, 0, %v5654_v62  ;;  %v5727_v58 = vsel %vm3518_vm1, 0, %v3517_v60 }
 0x274   : > { %v5725_v40 = vadd.s32 3, %v6903_v3  ;;  %v2660_v49 = vadd.s32 1, %v2656_v35  ;;  %v2733_v33 = vand.u32 31, %v2731_v53  ;;  %v5730_v31 = vadd.f32 1.0, %v5677_v22 }
 0x275   : > { %v2235_v17 = vmul.f32 -0.00019511016, %v5707_v11  ;;  %v2367_v4 = vor.u32 %v2366_v55, %v2365_v28  ;;  %v2657_v54 = vmul.u32 %v5630_v36, %v2603_v12  ;;  %v2371_v30 = vor.u32 4788187, %v2370_v23  ;;  %v678_v12 = vpop.f32.mrf.mxu3 }
 0x276   : > { %v2661_v7 = vsel %vm2659_vm7, %v2660_v49, %v2656_v35  ;;  %v2726_v13 = vand.u32 8388607, %v6779_v52  ;;  %v5736_v62 = vsub.s32 32, %v2733_v33  ;;  %v2523_v60 = vsub.s32 4294967266, %v5727_v58 }
 0x277   : > { %v2662_v50 = vadd.s32 %v2661_v7, %v2657_v54  ;;  %v5739_v38 = vshrl.u32 %v2731_v53, 5  ;;  %v567_v22 = vadd.f32 %v566_v44, %v6904_v32  ;;  %v2736_v42 = vshll.u32 %v6829_v48, %v2733_v33 }
 0x278   : > { %v2737_v20 = vshrl.u32 %v6825_v59, %v5736_v62  ;;  %v2740_v36 = vshrl.u32 %v6826_v24, %v5736_v62  ;;  %v2743_v9 = vshrl.u32 %v6835_v34, %v5736_v62  ;;  %v2739_v18 = vshll.u32 %v6825_v59, %v2733_v33 }
 0x279   : > { %v2663_v2 = vadd.s32 536870912, %v2662_v50  ;;  %v2745_v16 = vshll.u32 %v6835_v34, %v2733_v33  ;;  %v2746_v0 = vshrl.u32 %v6828_v41, %v5736_v62  ;;  %v2727_v57 = vor.u32 8388608, %v2726_v13 }
 0x27a   : > { %v2742_v29 = vshll.u32 %v6826_v24, %v2733_v33  ;;  %v2748_v55 = vshll.u32 %v6828_v41, %v2733_v33  ;;  %v2749_v23 = vshrl.u32 %v6824_v26, %v5736_v62  ;;  %v5759_v28 = vor.u32 %v2737_v20, %v2736_v42 }
 0x27b   : > { %v5757_v35 = vshrl.u32 %v2663_v2, 30  ;;  %v5761_v53 = vor.u32 %v2740_v36, %v2739_v18  ;;  %v2747_v3 = vor.u32 %v2746_v0, %v2745_v16  ;;  %v2374_v49 = vcvt.s32.f32 %v2367_v4 }
 0x27c   : > { %v2524_v44 = vadd.s32 127, %v2523_v60  ;;  %v5763_v54 = vor.u32 %v2743_v9, %v2742_v29  ;;  %v2750_v7 = vor.u32 %v2749_v23, %v2748_v55  ;;  %v2372_v13 = vand.u32 2147483647, %v2371_v30  ;;  %v766_v60 = vpop.f32.mrf.mxu0  ;;  %v848_v55 = vpop.f32.mrf.mxu1 }
 0x27d   : > { %v2665_v32 = vshll.u32 %v5757_v35, 30  ;;  %vm2754_vm15 = vcmp.lt.s32.totalorder %v5739_v38, 4  ;;  %v679_v33 = vadd.f32 %v678_v12, %v567_v22  ;;  %v2503_v2 = vadd.s32 %v5552_v56, %v5550_v47 }
 0x27e   : > { %v2519_v42 = vsub.s32 32, %v5727_v58  ;;  %vm2751_vm4 = vcmp.lt.s32.totalorder %v5739_v38, 1  ;;  %v2760_v4 = vsel %vm2754_vm15, %v2747_v3, 920167782  ;;  %vm2753_vm3 = vcmp.lt.s32.totalorder %v5739_v38, 3 }
 0x27f   : > { %v5773_v20 = vsub.s32 %v2662_v50, %v2665_v32  ;;  %v2759_v30 = vsel %vm2751_vm4, %v5759_v28, %v5761_v53  ;;  %v5780_v22 = vshll.u32 %v2727_v57, 8  ;;  %v2525_v47 = vshll.u32 %v2524_v44, 23 }
 0x280   : > { %v2761_v56 = vsel %vm2753_vm3, %v5763_v54, %v2760_v4  ;;  %v2763_v50 = vsel %vm2751_vm4, %v5761_v53, %v5763_v54  ;;  %v2764_v36 = vsel %vm2754_vm15, %v2750_v7, 1326507024  ;;  %vm2752_vm8 = vcmp.lt.s32.totalorder %v5739_v38, 2 }
 0x281   : > { %vm2667_vm5 = vcmp.lt.s32.totalorder %v5773_v20, 0  ;;  %v2668_v9 = vsub.s32 0, %v5773_v20  ;;  %v767_v18 = vadd.f32 %v766_v60, %v679_v33  ;;  %v2236_v16 = vadd.f32 0.008332121, %v2235_v17 }
 0x282   : > { %v5794_v0 = vmul.f32 %v2374_v49, %v2372_v13  ;;  %v2762_v57 = vsel %vm2752_vm8, %v2759_v30, %v2761_v56  ;;  %v2765_v29 = vsel %vm2753_vm3, %v2747_v3, %v2764_v36  ;;  %v2521_v23 = vshrl.u32 %v2503_v2, %v2519_v42 }
 0x283   : > { %v2669_v12 = vsel %vm2667_vm5, %v2668_v9, %v5773_v20  ;;  %v2766_v44 = vsel %vm2752_vm8, %v2763_v50, %v2765_v29  ;;  %v2768_v7 = vand.u32 65535, %v5780_v22  ;;  %v2792_v49 = vand.u32 65535, %v2762_v57 }
 0x284   : > { %v2670_v32 = vclz %v2669_v12  ;;  %v2770_v33 = vand.u32 65535, %v2766_v44  ;;  %v2771_v17 = vshrl.u32 %v2766_v44, 16  ;;  %v5804_v13 = vor.u32 4788187, %v2525_v47 }
 0x285   : > { %v2769_v4 = vshrl.u32 %v5780_v22, 16  ;;  %v2793_v60 = vshrl.u32 %v2762_v57, 16  ;;  %v5807_v30 = vadd.f32 %v848_v55, %v767_v18  ;;  %v5811_v3 = vmul.f32 %v5730_v31, %v5511_v37 }
 0x286   : > { %v2237_v2 = vmul.f32 %v2236_v16, %v5707_v11  ;;  %v2378_v42 = vsub.s32 4, %v5518_v46  ;;  %v2773_v56 = vmul.u32 %v2771_v17, %v2768_v7  ;;  %v2520_v50 = vshll.u32 %v5632_v1, %v5727_v58 }
 0x287   : > { %6905 = vst [vmem:[#allocation7_spill] sm:$0xff] %v5811_v3  ;;  %v3520_v36 = vadd.s32 4294967294, %v2670_v32  ;;  %v2774_v47 = vmul.u32 %v2770_v33, %v2769_v4  ;;  %v2795_v9 = vmul.u32 %v2793_v60, %v2768_v7  ;;  %v2376_v29 = vxor.u32 2147483648, %v5794_v0 }
 0x288   : > { %v2772_v57 = vmul.u32 %v2770_v33, %v2768_v7  ;;  %v2776_v18 = vshll.u32 %v2773_v56, 16  ;;  %v2796_v55 = vmul.u32 %v2792_v49, %v2769_v4  ;;  %vm2256_vm10 = vcmp.lt.s32.totalorder %v5192_v61, 0 }
 0x289   : > { %v2522_v37 = vor.u32 %v2521_v23, %v2520_v50  ;;  %v2527_v31 = vand.u32 2147483647, %v5804_v13  ;;  %v2798_v16 = vshll.u32 %v2795_v9, 16  ;;  %v2877_v12 = vand.u32 2139095040, %v5807_v30 }
 0x28a   : > { %v2735_v44 = vshrl.u32 %v6829_v48, %v5736_v62  ;;  %v2775_v1 = vmul.u32 %v2771_v17, %v2769_v4  ;;  %vm2780_vm11 = vc.u32 %v2772_v57, %v2776_v18  ;;  %v2794_v58 = vmul.u32 %v2792_v49, %v2768_v7 }
 0x28b   : > { %vm3521_vm6 = vcmp.lt.s32.totalorder %v3520_v36, 0  ;;  %v2778_v32 = vshll.u32 %v2774_v47, 16  ;;  %v2781_v33 = vsel %vm2780_vm11, 1, %v6832_v21  ;;  %v2782_v39 = vadd.s32 %v2776_v18, %v2772_v57 }
 0x28c   : > { %v2756_v23 = vsel %vm2754_vm15, %v5763_v54, 2102212464  ;;  %v2783_v50 = vadd.s32 %v2781_v33, %v2775_v1  ;;  %v2797_v13 = vmul.u32 %v2793_v60, %v2769_v4  ;;  %v2800_v52 = vshll.u32 %v2796_v55, 16 }
 0x28d   : > { %vm2784_vm12 = vc.u32 %v2782_v39, %v2778_v32  ;;  %vm2802_vm13 = vc.u32 %v2794_v58, %v2798_v16  ;;  %v2804_v25 = vadd.s32 %v2798_v16, %v2794_v58  ;;  %v2878_v45 = vshrl.u32 %v2877_v12, 23 }
 0x28e   : > { %v6906_v62 = vand.u32 2147483647, %v5192_v61  ;;  %v5833_v17 = vsel %vm3521_vm6, 0, %v3520_v36  ;;  %v2755_v49 = vsel %vm2751_vm4, %v2735_v44, %v5759_v28  ;;  %v2785_v54 = vsel %vm2784_vm12, 1, %v6832_v21 }
 0x28f   : > { %v2803_v4 = vsel %vm2802_vm13, 1, %v6832_v21  ;;  %v2777_v39 = vshrl.u32 %v2773_v56, 16  ;;  %v2787_v60 = vadd.s32 %v2785_v54, %v2783_v50  ;;  %vm2806_vm0 = vc.u32 %v2804_v25, %v2800_v52 }
 0x290   : > { %vm5829_vm14 = vcmp.le.f32.partialorder %v6906_v62, 0.7853982  ;;  %v2805_v57 = vadd.s32 %v2803_v4, %v2797_v13  ;;  %v2757_v18 = vsel %vm2753_vm3, %v5761_v53, %v2756_v23  ;;  %v2779_v16 = vshrl.u32 %v2774_v47, 16 }
 0x291   : > { %v2807_v36 = vsel %vm2806_vm0, 1, %v6832_v21  ;;  %v3525_v12 = vadd.s32 4294967169, %v2878_v45  ;;  %v2678_v1 = vsub.s32 4294967266, %v5833_v17  ;;  %v2788_v58 = vadd.s32 %v2787_v60, %v2777_v39 }
 0x292   : > { %v2799_v28 = vshrl.u32 %v2795_v9, 16  ;;  %v2809_v44 = vadd.s32 %v2807_v36, %v2805_v57  ;;  %v2238_v32 = vadd.f32 -0.16666654, %v2237_v2  ;;  %v5848_v56 = vsel %vm2256_vm10, %v2378_v42, %v5518_v46 }
 0x293   : > { %v2529_v33 = vcvt.s32.f32 %v2522_v37  ;;  %v2884_v50 = vadd.s32 1, %v3525_v12  ;;  %v2377_v53 = vsel %vm2256_vm10, %v2376_v29, %v5794_v0  ;;  %v5853_v47 = vadd.s32 %v2788_v58, %v2779_v16  ;;  %v6910_v29 = vld [vmem:[#allocation31_spill] sm:$0xff] }
 0x294   : > { %v2801_v45 = vshrl.u32 %v2796_v55, 16  ;;  %v2810_v23 = vadd.s32 %v2809_v44, %v2799_v28  ;;  %v2758_v9 = vsel %vm2752_vm8, %v2755_v49, %v2757_v18  ;;  %v5857_v2 = vadd.s32 %v2804_v25, %v2800_v52 }
 0x295   : > { %v2530_v13 = vmul.f32 %v2529_v33, %v2527_v31  ;;  %vm2885_vm9 = vcmp.gt.s32.totalorder %v2884_v50, 0  ;;  %v2679_v62 = vadd.s32 127, %v2678_v1  ;;  %v6784_v42 = vand.u32 2147483647, %v5807_v30 }
 0x296   : > { %v2811_v46 = vadd.s32 %v2810_v23, %v2801_v45  ;;  %v2886_v37 = vsel %vm2885_vm9, %v2884_v50, 0  ;;  %v5862_v0 = vand.u32 3, %v5725_v40  ;;  %vm2411_vm1 = vcmp.lt.s32.totalorder %v6910_v29, 0 }
 0x297   : > { %vm2814_vm2 = vc.u32 %v5853_v47, %v5857_v2  ;;  %v2888_v38 = vand.u32 31, %v2886_v37  ;;  %v2239_v25 = vmul.f32 %v2238_v32, %v5707_v11  ;;  %v5871_v52 = vsel %vm5829_vm14, %v5192_v61, %v2377_v53 }
 0x298   : > { %6909 = vst [vmem:[#allocation39_spill] sm:$0xff] %v5862_v0  ;;  %v2815_v31 = vadd.s32 1, %v2811_v46  ;;  %v2531_v40 = vxor.u32 2147483648, %v2530_v13  ;;  %v2674_v49 = vsub.s32 32, %v5833_v17  ;;  %v2812_v4 = vmul.u32 %v5780_v22, %v2758_v9 }
 0x299   : > { %6911 = vst [vmem:[#allocation40_spill] sm:$0xff] %v5871_v52  ;;  %v5878_v39 = vsub.s32 32, %v2888_v38  ;;  %v2680_v60 = vshll.u32 %v2679_v62, 23  ;;  %v2881_v18 = vand.u32 8388607, %v6784_v42  ;;  %v5882_v16 = vshrl.u32 %v2886_v37, 5 }
 0x29a   : > { %v2816_v57 = vsel %vm2814_vm2, %v2815_v31, %v2811_v46  ;;  %v2891_v12 = vshll.u32 %v6829_v48, %v2888_v38  ;;  %v2894_v58 = vshll.u32 %v6825_v59, %v2888_v38  ;;  %v2900_v44 = vshll.u32 %v6835_v34, %v2888_v38 }
 0x29b   : > { %v2817_v36 = vadd.s32 %v2816_v57, %v2812_v4  ;;  %v2892_v1 = vshrl.u32 %v6825_v59, %v5878_v39  ;;  %v2895_v22 = vshrl.u32 %v6826_v24, %v5878_v39  ;;  %v2898_v28 = vshrl.u32 %v6835_v34, %v5878_v39  ;;  %v571_v4 = vpop.f32.mrf.mxu2 }
 0x29c   : > { %v2901_v32 = vshrl.u32 %v6828_v41, %v5878_v39  ;;  %v2897_v50 = vshll.u32 %v6826_v24, %v2888_v38  ;;  %v2903_v53 = vshll.u32 %v6828_v41, %v2888_v38  ;;  %v2904_v45 = vshrl.u32 %v6824_v26, %v5878_v39 }
 0x29d   : > { %v2818_v33 = vadd.s32 536870912, %v2817_v36  ;;  %v5899_v23 = vadd.f32 1.0, %v2239_v25  ;;  %v6912_v9 = vand.u32 2147483647, %v6910_v29  ;;  %v2658_v46 = vadd.s32 %v5711_v5, %v5709_v63 }
 0x29e   : > { %v5909_v37 = vor.u32 %v2892_v1, %v2891_v12  ;;  %v2902_v31 = vor.u32 %v2901_v32, %v2900_v44  ;;  %v5913_v38 = vor.u32 %v2895_v22, %v2894_v58  ;;  %v5915_v54 = vor.u32 %v2898_v28, %v2897_v50  ;;  %v6916_v1 = vld [vmem:[#allocation8_spill] sm:$0xff] }
 0x29f   : > { %vm5903_vm7 = vcmp.le.f32.partialorder %v6912_v9, 0.7853982  ;;  %v5911_v57 = vshrl.u32 %v2818_v33, 30  ;;  %v2905_v25 = vor.u32 %v2904_v45, %v2903_v53  ;;  %v5919_v9 = vmul.f32 %v5871_v52, %v5871_v52 }
 0x2a0   : > { %v2532_v42 = vsel %vm2411_vm1, %v2531_v40, %v2530_v13  ;;  %v2676_v55 = vshrl.u32 %v2658_v46, %v2674_v49  ;;  %v2882_v63 = vor.u32 8388608, %v2881_v18  ;;  %v2681_v5 = vor.u32 4788187, %v2680_v60  ;;  %v684_v40 = vpop.f32.mrf.mxu3  ;;  %v770_v46 = vpop.f32.mrf.mxu0 }
 0x2a1   : > { %6915 = vst [vmem:[#allocation41_spill] sm:$0xff] %v5919_v9  ;;  %v2820_v12 = vshll.u32 %v5911_v57, 30  ;;  %vm2909_vm15 = vcmp.lt.s32.totalorder %v5882_v16, 4  ;;  %v572_v58 = vadd.f32 %v571_v4, %v6916_v1  ;;  %v2675_v22 = vshll.u32 %v5773_v20, %v5833_v17 }
 0x2a2   : > { %vm2906_vm4 = vcmp.lt.s32.totalorder %v5882_v16, 1  ;;  %v2915_v28 = vsel %vm2909_vm15, %v2902_v31, 920167782  ;;  %v2919_v13 = vsel %vm2909_vm15, %v2905_v25, 1326507024  ;;  %vm2908_vm3 = vcmp.lt.s32.totalorder %v5882_v16, 3 }
 0x2a3   : > { %v5933_v49 = vsub.s32 %v2817_v36, %v2820_v12  ;;  %v2914_v60 = vsel %vm2906_vm4, %v5909_v37, %v5913_v38  ;;  %v2918_v20 = vsel %vm2906_vm4, %v5913_v38, %v5915_v54  ;;  %v2677_v17 = vor.u32 %v2676_v55, %v2675_v22 }
 0x2a4   : > { %v2916_v18 = vsel %vm2908_vm3, %v5915_v54, %v2915_v28  ;;  %v2920_v36 = vsel %vm2908_vm3, %v2902_v31, %v2919_v13  ;;  %v5949_v44 = vshll.u32 %v2882_v63, 8  ;;  %vm2907_vm8 = vcmp.lt.s32.totalorder %v5882_v16, 2 }
 0x2a5   : > { %vm2822_vm5 = vcmp.lt.s32.totalorder %v5933_v49, 0  ;;  %v2823_v32 = vsub.s32 0, %v5933_v49  ;;  %v685_v33 = vadd.f32 %v684_v40, %v572_v58  ;;  %v2390_v50 = vmul.f32 -0.00019511016, %v5919_v9 }
 0x2a6   : > { %v2917_v53 = vsel %vm2907_vm8, %v2914_v60, %v2916_v18  ;;  %v2921_v45 = vsel %vm2907_vm8, %v2918_v20, %v2920_v36  ;;  %v5963_v31 = vsel %vm5903_vm7, %v6910_v29, %v2532_v42  ;;  %v2682_v4 = vand.u32 2147483647, %v2681_v5  ;;  %v852_v36 = vpop.f32.mrf.mxu1 }
 0x2a7   : > { %6917 = vst [vmem:[#allocation8_spill] sm:$0xff] %v5963_v31  ;;  %v2824_v25 = vsel %vm2822_vm5, %v2823_v32, %v5933_v49  ;;  %v2925_v63 = vand.u32 65535, %v2921_v45  ;;  %v2923_v1 = vand.u32 65535, %v5949_v44  ;;  %v2926_v58 = vshrl.u32 %v2921_v45, 16  ;;  %v6919_v45 = vld [vmem:[#allocation16_spill] sm:$0xff] }
 0x2a8   : > { %v2825_v12 = vclz %v2824_v25  ;;  %v2948_v22 = vshrl.u32 %v2917_v53, 16  ;;  %v2684_v28 = vcvt.s32.f32 %v2677_v17  ;;  %v2924_v13 = vshrl.u32 %v5949_v44, 16  ;;  %v774_v7 = vpop.f32.mrf.mxu0 }
 0x2a9   : > { %v2947_v40 = vand.u32 65535, %v2917_v53  ;;  %v771_v60 = vadd.f32 %v770_v46, %v685_v33  ;;  %v5968_v20 = vadd.f32 0.008332121, %v2390_v50  ;;  %v5972_v42 = vmul.f32 %v5963_v31, %v5963_v31 }
 0x2aa   : > { %v3523_v5 = vadd.s32 4294967294, %v2825_v12  ;;  %v2928_v18 = vmul.u32 %v2926_v58, %v2923_v1  ;;  %v5974_v32 = vmul.f32 %v2684_v28, %v2682_v4  ;;  %v2929_v25 = vmul.u32 %v2925_v63, %v2924_v13 }
 0x2ab   : > { %6918 = vst [vmem:[#allocation42_spill] sm:$0xff] %v5972_v42  ;;  %v2950_v55 = vmul.u32 %v2948_v22, %v2923_v1  ;;  %v988_v61 = vmul.f32 -0.001358992, %v6919_v45  ;;  %v2813_v17 = vadd.s32 %v5857_v2, %v5853_v47  ;;  %v2927_v33 = vmul.u32 %v2925_v63, %v2923_v1 }
 0x2ac   : > { %vm3524_vm10 = vcmp.lt.s32.totalorder %v3523_v5, 0  ;;  %v2931_v50 = vshll.u32 %v2928_v18, 16  ;;  %v2951_v46 = vmul.u32 %v2947_v40, %v2924_v13  ;;  %v5979_v0 = vadd.f32 %v852_v36, %v771_v60 }
 0x2ad   : > { %v2828_v53 = vsel %vm3524_vm10, 0, %v3523_v5  ;;  %v2953_v3 = vshll.u32 %v2950_v55, 16  ;;  %v2930_v14 = vmul.u32 %v2926_v58, %v2924_v13  ;;  %v2949_v4 = vmul.u32 %v2947_v40, %v2923_v1 }
 0x2ae   : > { %v2833_v12 = vsub.s32 4294967266, %v2828_v53  ;;  %vm2935_vm11 = vc.u32 %v2927_v33, %v2931_v50  ;;  %v2933_v28 = vshll.u32 %v2929_v25, 16  ;;  %v2937_v11 = vadd.s32 %v2931_v50, %v2927_v33 }
 0x2af   : > { %v2936_v10 = vsel %vm2935_vm11, 1, %v6832_v21  ;;  %v2952_v43 = vmul.u32 %v2948_v22, %v2924_v13  ;;  %v2829_v15 = vsub.s32 32, %v2828_v53  ;;  %vm2957_vm6 = vc.u32 %v2949_v4, %v2953_v3 }
 0x2b0   : > { %v2834_v31 = vadd.s32 127, %v2833_v12  ;;  %v2938_v47 = vadd.s32 %v2936_v10, %v2930_v14  ;;  %vm2939_vm12 = vc.u32 %v2937_v11, %v2933_v28  ;;  %v2955_v2 = vshll.u32 %v2951_v46, 16 }
 0x2b1   : > { %v2958_v63 = vsel %vm2957_vm6, 1, %v6832_v21  ;;  %v2959_v5 = vadd.s32 %v2953_v3, %v2949_v4  ;;  %v2890_v58 = vshrl.u32 %v6829_v48, %v5878_v39  ;;  %v2940_v1 = vsel %vm2939_vm12, 1, %v6832_v21 }
 0x2b2   : > { %v2835_v60 = vshll.u32 %v2834_v31, 23  ;;  %v2960_v40 = vadd.s32 %v2958_v63, %v2952_v43  ;;  %v2911_v22 = vsel %vm2909_vm15, %v5915_v54, 2102212464  ;;  %v2932_v13 = vshrl.u32 %v2928_v18, 16 }
 0x2b3   : > { %v2942_v36 = vadd.s32 %v2940_v1, %v2938_v47  ;;  %vm2961_vm13 = vc.u32 %v2959_v5, %v2955_v2  ;;  %v2831_v10 = vshrl.u32 %v2813_v17, %v2829_v15  ;;  %v2910_v14 = vsel %vm2906_vm4, %v2890_v58, %v5909_v37 }
 0x2b4   : > { %v2934_v11 = vshrl.u32 %v2929_v25, 16  ;;  %v2962_v3 = vsel %vm2961_vm13, 1, %v6832_v21  ;;  %v2954_v39 = vshrl.u32 %v2950_v55, 16  ;;  %v3032_v43 = vand.u32 2139095040, %v5979_v0 }
 0x2b5   : > { %v2943_v31 = vadd.s32 %v2942_v36, %v2932_v13  ;;  %v2964_v33 = vadd.s32 %v2962_v3, %v2960_v40  ;;  %v2830_v50 = vshll.u32 %v5933_v49, %v2828_v53  ;;  %v2836_v12 = vor.u32 4788187, %v2835_v60  ;;  %v576_v49 = vpop.f32.mrf.mxu2  ;;  %v6921_v40 = vld [vmem:[#allocation9_spill] sm:$0xff] }
 0x2b6   : > { %v2912_v54 = vsel %vm2908_vm3, %v5913_v38, %v2911_v22  ;;  %v6799_v15 = vand.u32 2147483647, %v5979_v0  ;;  %v2956_v37 = vshrl.u32 %v2951_v46, 16  ;;  %v3033_v17 = vshrl.u32 %v3032_v43, 23 }
 0x2b7   : > { %v5999_v18 = vadd.s32 %v2943_v31, %v2934_v11  ;;  %v2965_v25 = vadd.s32 %v2964_v33, %v2954_v39  ;;  %v2545_v4 = vmul.f32 -0.00019511016, %v5972_v42  ;;  %v2686_v55 = vxor.u32 2147483648, %v5974_v32 }
 0x2b8   : > { %v2832_v28 = vor.u32 %v2831_v10, %v2830_v50  ;;  %v6003_v47 = vadd.s32 %v2959_v5, %v2955_v2  ;;  %v2913_v53 = vsel %vm2907_vm8, %v2910_v14, %v2912_v54  ;;  %v3528_v38 = vadd.s32 4294967169, %v3033_v17  ;;  %v690_v14 = vpop.f32.mrf.mxu3 }
 0x2b9   : > { %v2966_v63 = vadd.s32 %v2965_v25, %v2956_v37  ;;  %v989_v60 = vadd.f32 0.041655596, %v988_v61  ;;  %vm2566_vm0 = vcmp.lt.s32.totalorder %v5523_v6, 0  ;;  %v2837_v58 = vand.u32 2147483647, %v2836_v12 }
 0x2ba   : > { %vm2969_vm9 = vc.u32 %v5999_v18, %v6003_v47  ;;  %v3036_v46 = vand.u32 8388607, %v6799_v15  ;;  %v6920_v2 = vsub.s32 4, %v5587_v27  ;;  %v3039_v1 = vadd.s32 1, %v3528_v38 }
 0x2bb   : > { %v2970_v16 = vadd.s32 1, %v2966_v63  ;;  %v577_v61 = vadd.f32 %v576_v49, %v6921_v40  ;;  %v2392_v22 = vmul.f32 %v5968_v20, %v5919_v9  ;;  %v2546_v13 = vadd.f32 0.008332121, %v2545_v4 }
 0x2bc   : > { %v6017_v5 = vsel %vm2411_vm1, %v6920_v2, %v5587_v27  ;;  %v2839_v36 = vcvt.s32.f32 %v2832_v28  ;;  %v2967_v10 = vmul.u32 %v5949_v44, %v2913_v53  ;;  %v2687_v11 = vsel %vm2566_vm0, %v2686_v55, %v5974_v32 }
 0x2bd   : > { %v2971_v3 = vsel %vm2969_vm9, %v2970_v16, %v2966_v63  ;;  %vm3040_vm2 = vcmp.gt.s32.totalorder %v3039_v1, 0  ;;  %v990_v27 = vmul.f32 %v989_v60, %v6919_v45  ;;  %v3037_v33 = vor.u32 8388608, %v3036_v46 }
 0x2be   : > { %v2840_v31 = vmul.f32 %v2839_v36, %v2837_v58  ;;  %v2972_v39 = vadd.s32 %v2971_v3, %v2967_v10  ;;  %v3041_v43 = vsel %vm3040_vm2, %v3039_v1, 0  ;;  %v6029_v20 = vmul.f32 %v5899_v23, %v5682_v19 }
 0x2bf   : > { %v6923_v44 = vsel %vm5829_vm14, 0, %v5848_v56  ;;  %v3043_v12 = vand.u32 31, %v3041_v43  ;;  %v691_v32 = vadd.f32 %v690_v14, %v577_v61  ;;  %v6924_v37 = vand.u32 2147483647, %v5523_v6 }
 0x2c0   : > { %6922 = vst [vmem:[#allocation16_spill] sm:$0xff] %v6029_v20  ;;  %v6035_v50 = vadd.s32 3, %v6923_v44  ;;  %vm2721_vm15 = vcmp.lt.s32.totalorder %v5669_v51, 0  ;;  %v2973_v19 = vadd.s32 536870912, %v2972_v39  ;;  %v6047_v23 = vadd.f32 -0.16666654, %v2392_v22 }
 0x2c1   : > { %vm6042_vm1 = vcmp.le.f32.partialorder %v6924_v37, 0.7853982  ;;  %v2547_v56 = vmul.f32 %v2546_v13, %v5972_v42  ;;  %v3044_v4 = vsub.s32 32, %v3043_v12  ;;  %v2841_v55 = vxor.u32 2147483648, %v2840_v31  ;;  %v856_v37 = vpop.f32.mrf.mxu1 }
 0x2c2   : > { %v6053_v17 = vsel %vm6042_vm1, %v5523_v6, %v2687_v11  ;;  %v6055_v28 = vshrl.u32 %v2973_v19, 30  ;;  %v6057_v49 = vshll.u32 %v3037_v33, 8  ;;  %v991_v53 = vadd.f32 -0.4999988, %v990_v27 }
 0x2c3   : > { %6927 = vst [vmem:[#allocation9_spill] sm:$0xff] %v6053_v17  ;;  %v3047_v63 = vshrl.u32 %v6825_v59, %v3044_v4  ;;  %v3050_v38 = vshrl.u32 %v6826_v24, %v3044_v4  ;;  %v3053_v60 = vshrl.u32 %v6835_v34, %v3044_v4  ;;  %v775_v58 = vadd.f32 %v774_v7, %v691_v32 }
 0x2c4   : > { %v6928_v46 = vand.u32 2147483647, %v5669_v51  ;;  %v6929_v2 = vmov 0  ;;  %v2975_v16 = vshll.u32 %v6055_v28, 30  ;;  %v3046_v1 = vshll.u32 %v6829_v48, %v3043_v12 }
 0x2c5   : > { %v3049_v40 = vshll.u32 %v6825_v59, %v3043_v12  ;;  %v3056_v61 = vshrl.u32 %v6828_v41, %v3044_v4  ;;  %v6072_v22 = vshrl.u32 %v3041_v43, 5  ;;  %v3052_v13 = vshll.u32 %v6826_v24, %v3043_v12 }
 0x2c6   : > { %vm6064_vm14 = vcmp.le.f32.partialorder %v6928_v46, 0.7853982  ;;  %v3055_v36 = vshll.u32 %v6835_v34, %v3043_v12  ;;  %v3059_v10 = vshrl.u32 %v6824_v26, %v3044_v4  ;;  %v6077_v14 = vsub.s32 %v2972_v39, %v2975_v16 }
 0x2c7   : > { %v6930_v2 = vsel %vm6064_vm14, 4294967295, %v6929_v2  ;;  %v3048_v11 = vor.u32 %v3047_v63, %v3046_v1  ;;  %v3051_v3 = vor.u32 %v3050_v38, %v3049_v40  ;;  %v3058_v27 = vshll.u32 %v6828_v41, %v3043_v12 }
 0x2c8   : > { %6931 = vst [vmem:[#allocation43_spill] sm:$0xff] %v6930_v2  ;;  %v6080_v33 = vadd.f32 -0.16666654, %v2547_v56  ;;  %v6084_v44 = vmul.f32 %v6053_v17, %v6053_v17  ;;  %v3054_v43 = vor.u32 %v3053_v60, %v3052_v13  ;;  %v3057_v32 = vor.u32 %v3056_v61, %v3055_v36 }
 0x2c9   : > { %v2968_v19 = vadd.s32 %v6003_v47, %v5999_v18  ;;  %vm2977_vm4 = vcmp.lt.s32.totalorder %v6077_v14, 0  ;;  %v2978_v39 = vsub.s32 0, %v6077_v14  ;;  %v3060_v7 = vor.u32 %v3059_v10, %v3058_v27 }
 0x2ca   : > { %v2842_v12 = vsel %vm2721_vm15, %v2841_v55, %v2840_v31  ;;  %vm3061_vm3 = vcmp.lt.s32.totalorder %v6072_v22, 1  ;;  %v3078_v56 = vand.u32 65535, %v6057_v49  ;;  %v992_v63 = vmul.f32 %v991_v53, %v6919_v45 }
 0x2cb   : > { %v2979_v38 = vsel %vm2977_vm4, %v2978_v39, %v6077_v14  ;;  %vm3064_vm5 = vcmp.lt.s32.totalorder %v6072_v22, 4  ;;  %v3069_v18 = vsel %vm3061_vm3, %v3048_v11, %v3051_v3  ;;  %v6099_v47 = vadd.f32 %v856_v37, %v775_v58 }
 0x2cc   : > { %v2980_v60 = vclz %v2979_v38  ;;  %vm3063_vm8 = vcmp.lt.s32.totalorder %v6072_v22, 3  ;;  %v3070_v31 = vsel %vm3064_vm5, %v3057_v32, 920167782  ;;  %v3073_v55 = vsel %vm3061_vm3, %v3051_v3, %v3054_v43 }
 0x2cd   : > { %vm3062_vm10 = vcmp.lt.s32.totalorder %v6072_v22, 2  ;;  %v3071_v45 = vsel %vm3063_vm8, %v3054_v43, %v3070_v31  ;;  %v3074_v53 = vsel %vm3064_vm5, %v3060_v7, 1326507024  ;;  %v3079_v58 = vshrl.u32 %v6057_v49, 16 }
 0x2ce   : > { %v6115_v46 = vsel %vm6064_vm14, %v5669_v51, %v2842_v12  ;;  %v3526_v16 = vadd.s32 4294967294, %v2980_v60  ;;  %v3072_v1 = vsel %vm3062_vm10, %v3069_v18, %v3071_v45  ;;  %v3075_v40 = vsel %vm3063_vm8, %v3057_v32, %v3074_v53 }
 0x2cf   : > { %v3076_v61 = vsel %vm3062_vm10, %v3073_v55, %v3075_v40  ;;  %v3102_v13 = vand.u32 65535, %v3072_v1  ;;  %v3103_v36 = vshrl.u32 %v3072_v1, 16  ;;  %v3187_v10 = vand.u32 2139095040, %v6099_v47  ;;  %v6932_v40 = vld [vmem:[#allocation19_spill] sm:$0xff] }
 0x2d0   : > { %vm3527_vm11 = vcmp.lt.s32.totalorder %v3526_v16, 0  ;;  %v3066_v27 = vsel %vm3064_vm5, %v3054_v43, 2102212464  ;;  %v3080_v37 = vand.u32 65535, %v3076_v61  ;;  %v3081_v39 = vshrl.u32 %v3076_v61, 16 }
 0x2d1   : > { %v2983_v7 = vsel %vm3527_vm11, 0, %v3526_v16  ;;  %v3045_v12 = vshrl.u32 %v6829_v48, %v3044_v4  ;;  %v3105_v38 = vmul.u32 %v3103_v36, %v3078_v56  ;;  %v993_v18 = vadd.f32 1.0, %v992_v63 }
 0x2d2   : > { %v2984_v60 = vsub.s32 32, %v2983_v7  ;;  %v2988_v32 = vsub.s32 4294967266, %v2983_v7  ;;  %v3106_v31 = vmul.u32 %v3102_v13, %v3079_v58  ;;  %v3067_v53 = vsel %vm3063_vm8, %v3051_v3, %v3066_v27 }
 0x2d3   : > { %v3065_v45 = vsel %vm3061_vm3, %v3045_v12, %v3048_v11  ;;  %v3083_v1 = vmul.u32 %v3081_v39, %v3078_v56  ;;  %v3084_v43 = vmul.u32 %v3080_v37, %v3079_v58  ;;  %vm1006_vm6 = vcmp.eq.s32.totalorder %v6932_v40, 0  ;;  %v6933_v12 = vld [vmem:[#allocation10_spill] sm:$0xff] }
 0x2d4   : > { %v2989_v16 = vadd.s32 127, %v2988_v32  ;;  %v3104_v61 = vmul.u32 %v3102_v13, %v3078_v56  ;;  %v3108_v4 = vshll.u32 %v3105_v38, 16  ;;  %v3188_v54 = vshrl.u32 %v3187_v10, 23 }
 0x2d5   : > { %v3082_v63 = vmul.u32 %v3080_v37, %v3078_v56  ;;  %v3085_v15 = vmul.u32 %v3081_v39, %v3079_v58  ;;  %v3086_v29 = vshll.u32 %v3083_v1, 16  ;;  %v3107_v17 = vmul.u32 %v3103_v36, %v3079_v58 }
 0x2d6   : > { %v2986_v20 = vshrl.u32 %v2968_v19, %v2984_v60  ;;  %v2990_v55 = vshll.u32 %v2989_v16, 23  ;;  %v3088_v2 = vshll.u32 %v3084_v43, 16  ;;  %v3110_v52 = vshll.u32 %v3106_v31, 16 }
 0x2d7   : > { %vm1009_vm12 = vcmp.eq.s32.totalorder %v6932_v40, 2  ;;  %vm3090_vm13 = vc.u32 %v3082_v63, %v3086_v29  ;;  %v3092_v11 = vadd.s32 %v3086_v29, %v3082_v63  ;;  %vm3112_vm9 = vc.u32 %v3104_v61, %v3108_v4 }
 0x2d8   : > { %v3114_v3 = vadd.s32 %v3108_v4, %v3104_v61  ;;  %vm1005_vm2 = vcmp.lt.s32.totalorder %v6932_v40, 2  ;;  %v2985_v13 = vshll.u32 %v6077_v14, %v2983_v7  ;;  %v2991_v27 = vor.u32 4788187, %v2990_v55  ;;  %v6934_v61 = vld [vmem:[#allocation20_spill] sm:$0xff] }
 0x2d9   : > { %v3091_v56 = vsel %vm3090_vm13, 1, %v6832_v21  ;;  %v3113_v10 = vsel %vm3112_vm9, 1, %v6832_v21  ;;  %vm3094_vm4 = vc.u32 %v3092_v11, %v3088_v2  ;;  %v3109_v39 = vshrl.u32 %v3105_v38, 16 }
 0x2da   : > { %v3093_v58 = vadd.s32 %v3091_v56, %v3085_v15  ;;  %v3115_v19 = vadd.s32 %v3113_v10, %v3107_v17  ;;  %vm3116_vm3 = vc.u32 %v3114_v3, %v3110_v52  ;;  %v2987_v36 = vor.u32 %v2986_v20, %v2985_v13 }
 0x2db   : > { %v3095_v37 = vsel %vm3094_vm4, 1, %v6832_v21  ;;  %v3117_v29 = vsel %vm3116_vm3, 1, %v6832_v21  ;;  %vm1002_vm5 = vweird.f32 %v6933_v12  ;;  %v3087_v60 = vshrl.u32 %v3083_v1, 16 }
 0x2dc   : > { %v3097_v32 = vadd.s32 %v3095_v37, %v3093_v58  ;;  %v3119_v14 = vadd.s32 %v3117_v29, %v3115_v19  ;;  %v3531_v7 = vadd.s32 4294967169, %v3188_v54  ;;  %v3089_v55 = vshrl.u32 %v3084_v43, 16  ;;  %v6945_v37 = vld [vmem:[#allocation14_spill] sm:$0xff] }
 0x2dd   : > { %v3111_v16 = vshrl.u32 %v3106_v31, 16  ;;  %v6935_v4 = vxor.u32 2147483648, %v6934_v61  ;;  %v1010_v17 = vxor.u32 2147483648, %v993_v18  ;;  %v2992_v20 = vand.u32 2147483647, %v2991_v27 }
 0x2de   : > { %v3098_v2 = vadd.s32 %v3097_v32, %v3087_v60  ;;  %v3120_v38 = vadd.s32 %v3119_v14, %v3109_v39  ;;  %v3194_v63 = vadd.s32 1, %v3531_v7  ;;  %v2994_v11 = vcvt.s32.f32 %v2987_v36 }
 0x2df   : > { %v1008_v15 = vsel %vm1006_vm6, %v993_v18, %v6935_v4  ;;  %v3068_v1 = vsel %vm3062_vm10, %v3065_v45, %v3067_v53  ;;  %v6147_v13 = vadd.s32 %v3114_v3, %v3110_v52  ;;  %vm3339_vm8 = vcmask 392192   ;;  %v6936_v45 = vld [vmem:[#allocation3_spill] sm:$0xff] }
 0x2e0   : > { %v6149_v54 = vadd.s32 %v3098_v2, %v3089_v55  ;;  %v3121_v31 = vadd.s32 %v3120_v38, %v3111_v16  ;;  %vm3195_vm11 = vcmp.gt.s32.totalorder %v3194_v63, 0  ;;  %v1011_v18 = vsel %vm1009_vm12, %v1010_v17, %v6934_v61 }
 0x2e1   : > { %v6156_v43 = vmul.f32 %v6115_v46, %v6115_v46  ;;  %v3196_v27 = vsel %vm3195_vm11, %v3194_v63, 0  ;;  %v1012_v22 = vsel %vm1005_vm2, %v1008_v15, %v1011_v18  ;;  %v1608_v52 = vmul.f32 -0.001358992, %v6936_v45 }
 0x2e2   : > { %v2995_v53 = vmul.f32 %v2994_v11, %v2992_v20  ;;  %vm3124_vm10 = vc.u32 %v6149_v54, %v6147_v13  ;;  %v3125_v3 = vadd.s32 1, %v3121_v31  ;;  %v6937_v56 = vand.u32 2147483647, %v6099_v47 }
 0x2e3   : > { %v6174_v40 = vmul.f32 %v6047_v23, %v5919_v9  ;;  %v6178_v58 = vmul.f32 %v6080_v33, %v5972_v42  ;;  %v3122_v19 = vmul.u32 %v6057_v49, %v3068_v1  ;;  %v3198_v36 = vand.u32 31, %v3196_v27 }
 0x2e4   : > { %v3191_v10 = vand.u32 8388607, %v6937_v56  ;;  %vm6810_vm6 = vcmp.lt.s32.totalorder %v5807_v30, 0  ;;  %v3126_v39 = vsel %vm3124_vm10, %v3125_v3, %v3121_v31  ;;  %v1013_v29 = vsel %vm1002_vm5, nan, %v1012_v22 }
 0x2e5   : > { %v2700_v60 = vmul.f32 -0.00019511016, %v6084_v44  ;;  %v3127_v32 = vadd.s32 %v3126_v39, %v3122_v19  ;;  %v3199_v23 = vsub.s32 32, %v3198_v36  ;;  %3340 = vst.msk [vmem:[%s6166_s26] sm:$0xff] %vm3339_vm8, %v1013_v29  ;;  %v1609_v14 = vadd.f32 0.041655596, %v1608_v52 }
 0x2e6   : > { %v2855_v33 = vmul.f32 -0.00019511016, %v6156_v43  ;;  %v2996_v7 = vxor.u32 2147483648, %v2995_v53  ;;  %v3192_v49 = vor.u32 8388608, %v3191_v10  ;;  %v3201_v55 = vshll.u32 %v6829_v48, %v3198_v36  ;;  %v6941_v19 = vld [vmem:[#allocation22_spill] sm:$0xff] }
 0x2e7   : > { %v3128_v16 = vadd.s32 536870912, %v3127_v32  ;;  %v3202_v61 = vshrl.u32 %v6825_v59, %v3199_v23  ;;  %v3204_v4 = vshll.u32 %v6825_v59, %v3198_v36  ;;  %v3210_v12 = vshll.u32 %v6835_v34, %v3198_v36 }
 0x2e8   : > { %v3205_v15 = vshrl.u32 %v6826_v24, %v3199_v23  ;;  %v3208_v17 = vshrl.u32 %v6835_v34, %v3199_v23  ;;  %v3211_v20 = vshrl.u32 %v6828_v41, %v3199_v23  ;;  %v3214_v2 = vshrl.u32 %v6824_v26, %v3199_v23 }
 0x2e9   : > { %v6197_v38 = vshrl.u32 %v3128_v16, 30  ;;  %v6199_v63 = vshrl.u32 %v3196_v27, 5  ;;  %v3207_v11 = vshll.u32 %v6826_v24, %v3198_v36  ;;  %v1610_v1 = vmul.f32 %v1609_v14, %v6936_v45 }
 0x2ea   : > { %v3203_v31 = vor.u32 %v3202_v61, %v3201_v55  ;;  %v6203_v59 = vor.u32 %v3205_v15, %v3204_v4  ;;  %v3212_v18 = vor.u32 %v3211_v20, %v3210_v12  ;;  %v3213_v22 = vshll.u32 %v6828_v41, %v3198_v36 }
 0x2eb   : > { %v6206_v52 = vadd.f32 0.008332121, %v2700_v60  ;;  %v6938_v34 = vand.u32 2147483647, %v5807_v30  ;;  %v2997_v27 = vsel %vm6810_vm6, %v2996_v7, %v2995_v53  ;;  %v3130_v24 = vshll.u32 %v6197_v38, 30 }
 0x2ec   : > { %v6217_v3 = vadd.f32 0.008332121, %v2855_v33  ;;  %v3209_v56 = vor.u32 %v3208_v17, %v3207_v11  ;;  %v3215_v10 = vor.u32 %v3214_v2, %v3213_v22  ;;  %v6220_v39 = vmul.f32 -0.001358992, %v6941_v19 }
 0x2ed   : > { %vm6210_vm12 = vcmp.le.f32.partialorder %v6938_v34, 0.7853982  ;;  %v6222_v41 = vsub.s32 %v3127_v32, %v3130_v24  ;;  %vm3216_vm13 = vcmp.lt.s32.totalorder %v6199_v63, 1  ;;  %vm3219_vm9 = vcmp.lt.s32.totalorder %v6199_v63, 4  ;;  %v6943_v32 = vld [vmem:[#allocation4_spill] sm:$0xff] }
 0x2ee   : > { %v1611_v36 = vadd.f32 -0.4999988, %v1610_v1  ;;  %v6229_v53 = vsel %vm6210_vm12, %v5807_v30, %v2997_v27  ;;  %v3224_v29 = vsel %vm3216_vm13, %v3203_v31, %v6203_v59  ;;  %v3225_v60 = vsel %vm3219_vm9, %v3212_v18, 920167782 }
 0x2ef   : > { %6942 = vst [vmem:[#allocation19_spill] sm:$0xff] %v6229_v53  ;;  %v6236_v14 = vshll.u32 %v3192_v49, 8  ;;  %vm1626_vm2 = vcmp.eq.s32.totalorder %v6943_v32, 0  ;;  %v3123_v33 = vadd.s32 %v6147_v13, %v6149_v54  ;;  %vm3132_vm4 = vcmp.lt.s32.totalorder %v6222_v41, 0 }
 0x2f0   : > { %v3133_v7 = vsub.s32 0, %v6222_v41  ;;  %vm3218_vm3 = vcmp.lt.s32.totalorder %v6199_v63, 3  ;;  %vm3217_vm5 = vcmp.lt.s32.totalorder %v6199_v63, 2  ;;  %v3228_v49 = vsel %vm3216_vm13, %v6203_v59, %v3209_v56 }
 0x2f1   : > { %v3226_v55 = vsel %vm3218_vm3, %v3209_v56, %v3225_v60  ;;  %v3229_v16 = vsel %vm3219_vm9, %v3215_v10, 1326507024  ;;  %v3200_v54 = vshrl.u32 %v6829_v48, %v3199_v23  ;;  %v1612_v4 = vmul.f32 %v1611_v36, %v6936_v45 }
 0x2f2   : > { %v3134_v13 = vsel %vm3132_vm4, %v3133_v7, %v6222_v41  ;;  %v3227_v61 = vsel %vm3217_vm5, %v3224_v29, %v3226_v55  ;;  %v3230_v15 = vsel %vm3218_vm3, %v3212_v18, %v3229_v16  ;;  %v6261_v2 = vmul.f32 %v6229_v53, %v6229_v53 }
 0x2f3   : > { %v3135_v12 = vclz %v3134_v13  ;;  %v3257_v17 = vand.u32 65535, %v3227_v61  ;;  %v3258_v20 = vshrl.u32 %v3227_v61, 16  ;;  %v3231_v11 = vsel %vm3217_vm5, %v3228_v49, %v3230_v15 }
 0x2f4   : > { %v3233_v48 = vand.u32 65535, %v6236_v14  ;;  %v3234_v23 = vshrl.u32 %v6236_v14, 16  ;;  %v6269_v45 = vsel %vm3216_vm13, %v3200_v54, %v3203_v31  ;;  %v3235_v22 = vand.u32 65535, %v3231_v11 }
 0x2f5   : > { %v3529_v1 = vadd.s32 4294967294, %v3135_v12  ;;  %v3236_v18 = vshrl.u32 %v3231_v11, 16  ;;  %v3221_v34 = vsel %vm3219_vm9, %v3209_v56, 2102212464  ;;  %v1613_v10 = vadd.f32 1.0, %v1612_v4 }
 0x2f6   : > { %v3259_v27 = vmul.u32 %v3257_v17, %v3233_v48  ;;  %v3260_v24 = vmul.u32 %v3258_v20, %v3233_v48  ;;  %v3239_v29 = vmul.u32 %v3235_v22, %v3234_v23  ;;  %v3261_v60 = vmul.u32 %v3257_v17, %v3234_v23 }
 0x2f7   : > { %vm3530_vm11 = vcmp.lt.s32.totalorder %v3529_v1, 0  ;;  %v3238_v36 = vmul.u32 %v3236_v18, %v3233_v48  ;;  %v3262_v55 = vmul.u32 %v3258_v20, %v3234_v23  ;;  %v6944_v16 = vxor.u32 2147483648, %v5492_v8 }
 0x2f8   : > { %v3138_v7 = vsel %vm3530_vm11, 0, %v3529_v1  ;;  %v3263_v49 = vshll.u32 %v3260_v24, 16  ;;  %v3237_v61 = vmul.u32 %v3235_v22, %v3233_v48  ;;  %vm1629_vm10 = vcmp.eq.s32.totalorder %v6943_v32, 2 }
 0x2f9   : > { %v1628_v31 = vsel %vm1626_vm2, %v1613_v10, %v6944_v16  ;;  %v3139_v13 = vsub.s32 32, %v3138_v7  ;;  %v3143_v54 = vsub.s32 4294967266, %v3138_v7  ;;  %v3241_v12 = vshll.u32 %v3238_v36, 16 }
 0x2fa   : > { %v3140_v56 = vshll.u32 %v6222_v41, %v3138_v7  ;;  %v3240_v4 = vmul.u32 %v3236_v18, %v3234_v23  ;;  %v3243_v15 = vshll.u32 %v3239_v29, 16  ;;  %v3264_v11 = vshrl.u32 %v3260_v24, 16  ;;  %v3357_v18 = vpop.permute.xlu0 %3356 }
 0x2fb   : > { %vm1625_vm13 = vcmp.lt.s32.totalorder %v6943_v32, 2  ;;  %v3141_v17 = vshrl.u32 %v3123_v33, %v3139_v13  ;;  %v3144_v20 = vadd.s32 127, %v3143_v54  ;;  %vm3245_vm9 = vc.u32 %v3237_v61, %v3241_v12 }
 0x2fc   : > { %v3247_v1 = vadd.s32 %v3241_v12, %v3237_v61  ;;  %vm1622_vm4 = vweird.f32 %v6945_v37  ;;  %v3246_v16 = vsel %vm3245_vm9, 1, %v6832_v21  ;;  %v3265_v42 = vshll.u32 %v3261_v60, 16  ;;  %v6949_v37 = vld [vmem:[#allocation17_spill] sm:$0xff] }
 0x2fd   : > { %vm3267_vm2 = vc.u32 %v3259_v27, %v3263_v49  ;;  %v3269_v48 = vadd.s32 %v3263_v49, %v3259_v27  ;;  %v3142_v22 = vor.u32 %v3141_v17, %v3140_v56  ;;  %v3145_v9 = vshll.u32 %v3144_v20, 23 }
 0x2fe   : > { %v3248_v53 = vadd.s32 %v3246_v16, %v3240_v4  ;;  %vm3249_vm11 = vc.u32 %v3247_v1, %v3243_v15  ;;  %v3242_v41 = vshrl.u32 %v3238_v36, 16  ;;  %v3268_v33 = vsel %vm3267_vm2, 1, %v6832_v21 }
 0x2ff   : > { %v3250_v23 = vsel %vm3249_vm11, 1, %v6832_v21  ;;  %vm3271_vm6 = vc.u32 %v3269_v48, %v3265_v42  ;;  %v3146_v24 = vor.u32 4788187, %v3145_v9  ;;  %v3244_v7 = vshrl.u32 %v3239_v29, 16 }
 0x300   : > { %v3252_v13 = vadd.s32 %v3250_v23, %v3248_v53  ;;  %v3270_v54 = vadd.s32 %v3268_v33, %v3262_v55  ;;  %v3272_v61 = vsel %vm3271_vm6, 1, %v6832_v21  ;;  %vm3404_vm9 = vcmask 425344  }
 0x301   : > { %v1630_v27 = vxor.u32 2147483648, %v1613_v10  ;;  %v1299_v49 = vadd.f32 0.041655596, %v6220_v39  ;;  %v3147_v12 = vand.u32 2147483647, %v3146_v24  ;;  %v3149_v56 = vcvt.s32.f32 %v3142_v22  ;;  %3405 = vst.msk [vmem:[%s6166_s26] sm:$0xff] %vm3404_vm9, %v3357_v18 }
 0x302   : > { %v3253_v36 = vadd.s32 %v3252_v13, %v3242_v41  ;;  %v3274_v4 = vadd.s32 %v3272_v61, %v3270_v54  ;;  %v3222_v15 = vsel %vm3218_vm3, %v6203_v59, %v3221_v34  ;;  %v3266_v9 = vshrl.u32 %v3261_v60, 16  ;;  %v6950_v18 = vld [vmem:[#allocation25_spill] sm:$0xff] }
 0x303   : > { %v1631_v21 = vsel %vm1629_vm10, %v1630_v27, %v5492_v8  ;;  %v1300_v53 = vmul.f32 %v1299_v49, %v6941_v19  ;;  %v3150_v10 = vmul.f32 %v3149_v56, %v3147_v12  ;;  %v2702_v17 = vmul.f32 %v6206_v52, %v6084_v44 }
 0x304   : > { %v6295_v39 = vadd.s32 %v3253_v36, %v3244_v7  ;;  %v3275_v29 = vadd.s32 %v3274_v4, %v3264_v11  ;;  %v1632_v55 = vsel %vm1625_vm13, %v1628_v31, %v1631_v21  ;;  %v6301_v20 = vadd.s32 %v3269_v48, %v3265_v42  ;;  %v6951_v7 = vld [vmem:[#allocation28_spill] sm:$0xff] }
 0x305   : > { %v1633_v59 = vsel %vm1622_vm4, nan, %v1632_v55  ;;  %v1301_v34 = vadd.f32 -0.4999988, %v1300_v53  ;;  %v6946_v8 = vand.u32 2147483647, %v5979_v0  ;;  %v3151_v1 = vxor.u32 2147483648, %v3150_v10 }
 0x306   : > { %v3223_v32 = vsel %vm3217_vm5, %v6269_v45, %v3222_v15  ;;  %v3276_v31 = vadd.s32 %v3275_v29, %v3266_v9  ;;  %3344 = vst.msk [vmem:[%s6166_s26 + $0x20] sm:$0xff] %vm3339_vm8, %v1633_v59  ;;  %vm3031_vm3 = vcmp.lt.s32.totalorder %v5979_v0, 0  ;;  %vm3279_vm10 = vc.u32 %v6295_v39, %v6301_v20  ;;  %v6953_v21 = vld [vmem:[#allocation12_spill] sm:$0xff] }
 0x307   : > { %vm6307_vm6 = vcmp.le.f32.partialorder %v6946_v8, 0.7853982  ;;  %v1302_v42 = vmul.f32 %v1301_v34, %v6941_v19  ;;  %v1143_v52 = vmul.f32 -0.001358992, %v6949_v37  ;;  %v2857_v11 = vmul.f32 %v6217_v3, %v6156_v43 }
 0x308   : > { %v3010_v16 = vmul.f32 -0.00019511016, %v6261_v2  ;;  %v3152_v63 = vsel %vm3031_vm3, %v3151_v1, %v3150_v10  ;;  %v3280_v45 = vadd.s32 1, %v3276_v31  ;;  %v2843_v48 = vsub.s32 4, %v5911_v57 }
 0x309   : > { %v6330_v22 = vsel %vm6307_vm6, %v5979_v0, %v3152_v63  ;;  %v3277_v19 = vmul.u32 %v6236_v14, %v3223_v32  ;;  %v1303_v41 = vadd.f32 1.0, %v1302_v42  ;;  %v2703_v23 = vadd.f32 -0.16666654, %v2702_v17 }
 0x30a   : > { %v6335_v3 = vmul.f32 %v6330_v22, %v6330_v22  ;;  %v3281_v33 = vsel %vm3279_vm10, %v3280_v45, %v3276_v31  ;;  %vm1316_vm5 = vcmp.eq.s32.totalorder %v6950_v18, 0  ;;  %v6952_v13 = vxor.u32 2147483648, %v6951_v7  ;;  %v3361_v45 = vpop.permute.xlu1 %3360 }
 0x30b   : > { %v3282_v24 = vadd.s32 %v3281_v33, %v3277_v19  ;;  %v1320_v61 = vxor.u32 2147483648, %v1303_v41  ;;  %v1144_v27 = vadd.f32 0.041655596, %v1143_v52  ;;  %v2858_v49 = vadd.f32 -0.16666654, %v2857_v11 }
 0x30c   : > { %v1318_v54 = vsel %vm1316_vm5, %v1303_v41, %v6952_v13  ;;  %v2998_v12 = vsub.s32 4, %v6055_v28  ;;  %v3011_v56 = vadd.f32 0.008332121, %v3010_v16  ;;  %vm1319_vm13 = vcmp.eq.s32.totalorder %v6950_v18, 2  ;;  %v6959_v41 = vld [vmem:[#allocation8_spill] sm:$0xff] }
 0x30d   : > { %v3165_v14 = vmul.f32 -0.00019511016, %v6335_v3  ;;  %v3283_v36 = vadd.s32 536870912, %v3282_v24  ;;  %vm1315_vm4 = vcmp.lt.s32.totalorder %v6950_v18, 2  ;;  %v1321_v4 = vsel %vm1319_vm13, %v1320_v61, %v6951_v7  ;;  %v6960_v13 = vld [vmem:[#allocation16_spill] sm:$0xff] }
 0x30e   : > { %v2395_v15 = vadd.f32 1.0, %v6174_v40  ;;  %v2704_v9 = vmul.f32 %v2703_v23, %v6084_v44  ;;  %vm1312_vm2 = vweird.f32 %v6953_v21  ;;  %v1322_v53 = vsel %vm1315_vm4, %v1318_v54, %v1321_v4 }
 0x30f   : > { %v6954_v10 = vsub.s32 4, %v5757_v35  ;;  %v6353_v55 = vshrl.u32 %v3283_v36, 30  ;;  %v1323_v17 = vsel %vm1312_vm2, nan, %v1322_v53  ;;  %v1145_v59 = vmul.f32 %v1144_v27, %v6949_v37 }
 0x310   : > { %v2550_v34 = vadd.f32 1.0, %v6178_v58  ;;  %v2844_v40 = vsel %vm2721_vm15, %v2843_v48, %v5911_v57  ;;  %v2859_v8 = vmul.f32 %v2858_v49, %v6156_v43  ;;  %v3012_v1 = vmul.f32 %v3011_v56, %v6261_v2  ;;  %3342 = vst.msk [vmem:[%s6166_s26 + $0x10] sm:$0xff] %vm3339_vm8, %v1323_v17 }
 0x311   : > { %v2689_v29 = vsel %vm2566_vm0, %v6954_v10, %v5757_v35  ;;  %v6365_v32 = vand.u32 3, %v6035_v50  ;;  %vm6955_vm0 = vcmp.lt.s32.totalorder %v5807_v30, 0  ;;  %v3166_v31 = vadd.f32 0.008332121, %v3165_v14  ;;  %v6957_v50 = vld [vmem:[#allocation40_spill] sm:$0xff]  ;;  %3407 = vst.msk [vmem:[%s6166_s26 + $0x10] sm:$0xff] %vm3404_vm9, %v3361_v45 }
 0x312   : > { %v2999_v35 = vsel %vm6955_vm0, %v2998_v12, %v6055_v28  ;;  %v3285_v58 = vshll.u32 %v6353_v55, 30  ;;  %v6956_v57 = vsel %vm5903_vm7, 0, %v6017_v5  ;;  %v2691_v52 = vsel %vm6042_vm1, 0, %v2689_v29  ;;  %v6974_v45 = vld [vmem:[#allocation15_spill] sm:$0xff] }
 0x313   : > { %v2553_v42 = vadd.s32 3, %v6956_v57  ;;  %v2705_v11 = vadd.f32 1.0, %v2704_v9  ;;  %v3153_v16 = vsub.s32 4, %v6197_v38  ;;  %v6379_v63 = vmul.f32 %v2395_v15, %v6957_v50  ;;  %v3365_v50 = vpop.permute.xlu2 %3364 }
 0x314   : > { %v2846_v28 = vsel %vm6064_vm14, 0, %v2844_v40  ;;  %v6383_v48 = vsub.s32 %v3282_v24, %v3285_v58  ;;  %v1146_v19 = vadd.f32 -0.4999988, %v1145_v59  ;;  %v6386_v62 = vmul.f32 %v2550_v34, %v6959_v41  ;;  %v6961_v24 = vld [vmem:[#allocation9_spill] sm:$0xff]  ;;  %3409 = vst.msk [vmem:[%s6166_s26 + $0x20] sm:$0xff] %vm3404_vm9, %v3365_v50 }
 0x315   : > { %v2860_v5 = vadd.f32 1.0, %v2859_v8  ;;  %v3001_v25 = vsel %vm6210_vm12, 0, %v2999_v35  ;;  %v3013_v23 = vadd.f32 -0.16666654, %v3012_v1  ;;  %v2708_v33 = vadd.s32 3, %v2691_v52 }
 0x316   : > { %v3167_v18 = vmul.f32 %v3166_v31, %v6335_v3  ;;  %vm3287_vm7 = vcmp.lt.s32.totalorder %v6383_v48, 0  ;;  %v3288_v7 = vsub.s32 0, %v6383_v48  ;;  %v2247_v54 = vxor.u32 2147483648, %v6960_v13 }
 0x317   : > { %v6395_v61 = vmul.f32 %v2705_v11, %v6961_v24  ;;  %v2863_v27 = vadd.s32 3, %v2846_v28  ;;  %v3154_v49 = vsel %vm3031_vm3, %v3153_v16, %v6197_v38  ;;  %v6400_v26 = vand.u32 3, %v2553_v42  ;;  %v6965_v42 = vld [vmem:[#allocation11_spill] sm:$0xff]  ;;  %v6966_v28 = vld [vmem:[#allocation24_spill] sm:$0xff] }
 0x318   : > { %v3018_v12 = vadd.s32 3, %v3001_v25  ;;  %v3289_v56 = vsel %vm3287_vm7, %v3288_v7, %v6383_v48  ;;  %v1147_v14 = vmul.f32 %v1146_v19, %v6949_v37  ;;  %v2402_v36 = vxor.u32 2147483648, %v6379_v63  ;;  %v6967_v19 = vld [vmem:[#allocation23_spill] sm:$0xff] }
 0x319   : > { %v6406_v4 = vmul.f32 %v2860_v5, %v6115_v46  ;;  %v3014_v15 = vmul.f32 %v3013_v23, %v6261_v2  ;;  %v3290_v9 = vclz %v3289_v56  ;;  %v2557_v21 = vxor.u32 2147483648, %v6386_v62  ;;  %v6969_v5 = vld [vmem:[#allocation30_spill] sm:$0xff] }
 0x31a   : > { %v6410_v53 = vand.u32 3, %v2708_v33  ;;  %v3156_v38 = vsel %vm6307_vm6, 0, %v3154_v49  ;;  %v3168_v10 = vadd.f32 -0.16666654, %v3167_v18  ;;  %v2712_v29 = vxor.u32 2147483648, %v6395_v61 }
 0x31b   : > { %v6415_v17 = vand.u32 3, %v2863_v27  ;;  %v3532_v37 = vadd.s32 4294967294, %v3290_v9  ;;  %v3308_v59 = vsub.s32 4, %v6353_v55  ;;  %v6418_v46 = vand.u32 3, %v3018_v12 }
 0x31c   : > { %v6962_v34 = vand.u32 2147483647, %v6099_v47  ;;  %vm3186_vm15 = vcmp.lt.s32.totalorder %v6099_v47, 0  ;;  %v1148_v60 = vadd.f32 1.0, %v1147_v14  ;;  %v2867_v8 = vxor.u32 2147483648, %v6406_v4  ;;  %v3359_v14 = vpop.permute.xlu0 %3358 }
 0x31d   : > { %v3015_v1 = vadd.f32 1.0, %v3014_v15  ;;  %v6428_v35 = vadd.s32 3, %v3156_v38  ;;  %vm3533_vm14 = vcmp.lt.s32.totalorder %v3532_v37, 0  ;;  %v3169_v31 = vmul.f32 %v3168_v10, %v6335_v3 }
 0x31e   : > { %vm6422_vm1 = vcmp.le.f32.partialorder %v6962_v34, 0.7853982  ;;  %v3278_v58 = vadd.s32 %v6301_v20, %v6295_v39  ;;  %v3293_v57 = vsel %vm3533_vm14, 0, %v3532_v37  ;;  %vm1157_vm12 = vweird.f32 %v6965_v42 }
 0x31f   : > { %v3294_v52 = vsub.s32 32, %v3293_v57  ;;  %v3298_v11 = vsub.s32 4294967266, %v3293_v57  ;;  %v6437_v16 = vsel %vm3186_vm15, %v3308_v59, %v6353_v55  ;;  %vm1161_vm11 = vcmp.eq.s32.totalorder %v6966_v28, 0  ;;  %v6970_v55 = vld [vmem:[#allocation26_spill] sm:$0xff]  ;;  %v6972_v59 = vld [vmem:[#allocation33_spill] sm:$0xff] }
 0x320   : > { %v6968_v41 = vxor.u32 2147483648, %v6967_v19  ;;  %vm1164_vm6 = vcmp.eq.s32.totalorder %v6966_v28, 2  ;;  %v1165_v20 = vxor.u32 2147483648, %v1148_v60  ;;  %v1763_v25 = vmul.f32 -0.001358992, %v6969_v5 }
 0x321   : > { %v3295_v23 = vshll.u32 %v6383_v48, %v3293_v57  ;;  %v3296_v33 = vshrl.u32 %v3278_v58, %v3294_v52  ;;  %v3299_v18 = vadd.s32 127, %v3298_v11  ;;  %v1453_v7 = vmul.f32 -0.001358992, %v6970_v55  ;;  %v6971_v48 = vld [vmem:[#allocation19_spill] sm:$0xff]  ;;  %v6973_v58 = vld [vmem:[#allocation34_spill] sm:$0xff] }
 0x322   : > { %v1163_v39 = vsel %vm1161_vm11, %v1148_v60, %v6968_v41  ;;  %v3170_v24 = vadd.f32 1.0, %v3169_v31  ;;  %vm1160_vm3 = vcmp.lt.s32.totalorder %v6966_v28, 2  ;;  %v1166_v27 = vsel %vm1164_vm6, %v1165_v20, %v6967_v19  ;;  %v6975_v19 = vld [vmem:[#allocation27_spill] sm:$0xff]  ;;  %v6977_v20 = vld [vmem:[#allocation38_spill] sm:$0xff] }
 0x323   : > { %v1764_v49 = vadd.f32 0.041655596, %v1763_v25  ;;  %v3297_v12 = vor.u32 %v3296_v33, %v3295_v23  ;;  %v3300_v56 = vshll.u32 %v3299_v18, 23  ;;  %v1167_v15 = vsel %vm1160_vm3, %v1163_v39, %v1166_v27  ;;  %v6976_v39 = vld [vmem:[#allocation13_spill] sm:$0xff] }
 0x324   : > { %v1454_v9 = vadd.f32 0.041655596, %v1453_v7  ;;  %v6453_v38 = vmul.f32 %v3015_v1, %v6971_v48  ;;  %v1168_v10 = vsel %vm1157_vm12, nan, %v1167_v15  ;;  %v1918_v34 = vmul.f32 -0.001358992, %v6972_v59  ;;  %v6978_v18 = vld [vmem:[#allocation5_spill] sm:$0xff] }
 0x325   : > { %v1765_v37 = vmul.f32 %v1764_v49, %v6969_v5  ;;  %v3301_v60 = vor.u32 4788187, %v3300_v56  ;;  %v3311_v31 = vsel %vm6422_vm1, 0, %v6437_v16  ;;  %3341 = vst.msk [vmem:[%s6166_s26 + $0x8] sm:$0xff] %vm3339_vm8, %v1168_v10  ;;  %vm1781_vm10 = vcmp.eq.s32.totalorder %v6973_v58, 0  ;;  %v6979_v49 = vld [vmem:[#allocation35_spill] sm:$0xff] }
 0x326   : > { %v1455_v57 = vmul.f32 %v1454_v9, %v6970_v55  ;;  %v6467_v1 = vmul.f32 %v3170_v24, %v6330_v22  ;;  %3406 = vst.msk [vmem:[%s6166_s26 + $0x8] sm:$0xff] %vm3404_vm9, %v3359_v14  ;;  %vm1780_vm5 = vcmp.lt.s32.totalorder %v6973_v58, 2  ;;  %vm1784_vm13 = vcmp.eq.s32.totalorder %v6973_v58, 2  ;;  %v6980_v14 = vld [vmem:[#allocation18_spill] sm:$0xff]  ;;  %v6981_v9 = vld [vmem:[#allocation36_spill] sm:$0xff] }
 0x327   : > { %v1766_v42 = vadd.f32 -0.4999988, %v1765_v37  ;;  %v1919_v52 = vadd.f32 0.041655596, %v1918_v34  ;;  %v3302_v11 = vand.u32 2147483647, %v3301_v60  ;;  %v3304_v50 = vcvt.s32.f32 %v3297_v12 }
 0x328   : > { %vm1777_vm4 = vweird.f32 %v6974_v45  ;;  %v1456_v28 = vadd.f32 -0.4999988, %v1455_v57  ;;  %vm1470_vm2 = vcmp.lt.s32.totalorder %v6975_v19, 2  ;;  %vm1467_vm0 = vweird.f32 %v6976_v39  ;;  %v6983_v57 = vld [vmem:[#allocation32_spill] sm:$0xff]  ;;  %v3369_v39 = vpop.permute.xlu0 %3368 }
 0x329   : > { %v1767_v41 = vmul.f32 %v1766_v42, %v6969_v5  ;;  %vm1471_vm7 = vcmp.eq.s32.totalorder %v6975_v19, 0  ;;  %v1920_v22 = vmul.f32 %v1919_v52, %v6972_v59  ;;  %v2228_v25 = vmul.f32 -0.001358992, %v6977_v20 }
 0x32a   : > { %v3305_v23 = vmul.f32 %v3304_v50, %v3302_v11  ;;  %v1457_v33 = vmul.f32 %v1456_v28, %v6970_v55  ;;  %vm1474_vm14 = vcmp.eq.s32.totalorder %v6975_v19, 2  ;;  %v2073_v7 = vmul.f32 -0.001358992, %v6978_v18 }
 0x32b   : > { %v1768_v24 = vadd.f32 1.0, %v1767_v41  ;;  %v1921_v27 = vadd.f32 -0.4999988, %v1920_v22  ;;  %vm1936_vm12 = vcmp.eq.s32.totalorder %v6979_v49, 0  ;;  %v2229_v5 = vadd.f32 0.041655596, %v2228_v25 }
 0x32c   : > { %v3306_v12 = vxor.u32 2147483648, %v3305_v23  ;;  %v1458_v56 = vadd.f32 1.0, %v1457_v33  ;;  %vm1932_vm11 = vweird.f32 %v6980_v14  ;;  %vm1939_vm6 = vcmp.eq.s32.totalorder %v6979_v49, 2 }
 0x32d   : > { %v2074_v15 = vadd.f32 0.041655596, %v2073_v7  ;;  %v6982_v48 = vxor.u32 2147483648, %v6981_v9  ;;  %v1785_v10 = vxor.u32 2147483648, %v1768_v24  ;;  %v1922_v37 = vmul.f32 %v1921_v27, %v6972_v59  ;;  %v3367_v59 = vpop.permute.xlu2 %3366 }
 0x32e   : > { %v2230_v34 = vmul.f32 %v2229_v5, %v6977_v20  ;;  %v3307_v60 = vsel %vm3186_vm15, %v3306_v12, %v3305_v23  ;;  %v6984_v42 = vxor.u32 2147483648, %v6983_v57  ;;  %v1475_v11 = vxor.u32 2147483648, %v1458_v56  ;;  %v3363_v5 = vpop.permute.xlu1 %3362 }
 0x32f   : > { %v1783_v55 = vsel %vm1781_vm10, %v1768_v24, %v6982_v48  ;;  %v2075_v50 = vmul.f32 %v2074_v15, %v6978_v18  ;;  %v6502_v28 = vsel %vm6422_vm1, %v6099_v47, %v3307_v60  ;;  %v1786_v41 = vsel %vm1784_vm13, %v1785_v10, %v6981_v9 }
 0x330   : > { %v1473_v52 = vsel %vm1471_vm7, %v1458_v56, %v6984_v42  ;;  %v1923_v22 = vadd.f32 1.0, %v1922_v37  ;;  %v2231_v25 = vadd.f32 -0.4999988, %v2230_v34  ;;  %v6509_v23 = vmul.f32 %v6502_v28, %v6502_v28  ;;  %v6985_v56 = vld [vmem:[#allocation6_spill] sm:$0xff]  ;;  %v6988_v34 = vld [vmem:[#allocation41_spill] sm:$0xff] }
 0x331   : > { %v1787_v33 = vsel %vm1780_vm5, %v1783_v55, %v1786_v41  ;;  %v1476_v7 = vsel %vm1474_vm14, %v1475_v11, %v6983_v57  ;;  %v2076_v24 = vadd.f32 -0.4999988, %v2075_v50  ;;  %v6986_v15 = vxor.u32 2147483648, %v6985_v56  ;;  %v6987_v37 = vld [vmem:[#allocation2_spill] sm:$0xff]  ;;  %v6989_v11 = vld [vmem:[#allocation39_spill] sm:$0xff]  ;;  %v6990_v41 = vld [vmem:[#allocation37_spill] sm:$0xff] }
 0x332   : > { %v1788_v27 = vsel %vm1777_vm4, nan, %v1787_v33  ;;  %v1477_v12 = vsel %vm1470_vm2, %v1473_v52, %v1476_v7  ;;  %v1940_v58 = vxor.u32 2147483648, %v1923_v22  ;;  %v3320_v48 = vmul.f32 -0.00019511016, %v6509_v23 }
 0x333   : > { %v1938_v9 = vsel %vm1936_vm12, %v1923_v22, %v6986_v15  ;;  %3345 = vst.msk [vmem:[%s6166_s26 + $0x28] sm:$0xff] %vm3339_vm8, %v1788_v27  ;;  %v1478_v45 = vsel %vm1467_vm0, nan, %v1477_v12  ;;  %v2232_v55 = vmul.f32 %v2231_v25, %v6977_v20  ;;  %v2077_v10 = vmul.f32 %v2076_v24, %v6978_v18  ;;  %v6991_v22 = vld [vmem:[#allocation7_spill] sm:$0xff] }
 0x334   : > { %3410 = vst.msk [vmem:[%s6166_s26 + $0x28] sm:$0xff] %vm3404_vm9, %v3367_v59  ;;  %vm1935_vm15 = vcmp.lt.s32.totalorder %v6979_v49, 2  ;;  %v1941_v19 = vsel %vm1939_vm6, %v1940_v58, %v6985_v56  ;;  %vm2242_vm3 = vweird.f32 %v6987_v37  ;;  %v2383_v60 = vmul.f32 -0.001358992, %v6988_v34 }
 0x335   : > { %v3321_v57 = vadd.f32 0.008332121, %v3320_v48  ;;  %3343 = vst.msk [vmem:[%s6166_s26 + $0x18] sm:$0xff] %vm3339_vm8, %v1478_v45  ;;  %v1942_v20 = vsel %vm1935_vm15, %v1938_v9, %v1941_v19  ;;  %v2233_v18 = vadd.f32 1.0, %v2232_v55  ;;  %v2078_v42 = vadd.f32 1.0, %v2077_v10  ;;  %v6993_v48 = vld [vmem:[#allocation21_spill] sm:$0xff] }
 0x336   : > { %3408 = vst.msk [vmem:[%s6166_s26 + $0x18] sm:$0xff] %vm3404_vm9, %v3363_v5  ;;  %v1943_v52 = vsel %vm1932_vm11, nan, %v1942_v20  ;;  %vm2245_vm10 = vcmp.lt.s32.totalorder %v6989_v11, 2  ;;  %vm2246_vm5 = vcmp.eq.s32.totalorder %v6989_v11, 0  ;;  %v2384_v49 = vadd.f32 0.041655596, %v2383_v60  ;;  %v3373_v5 = vpop.permute.xlu2 %3372  ;;  %v3371_v55 = vpop.permute.xlu1 %3370 }
 0x337   : > { %3346 = vst.msk [vmem:[%s6166_s26 + $0x30] sm:$0xff] %vm3339_vm8, %v1943_v52  ;;  %v2248_v50 = vsel %vm2246_vm5, %v2233_v18, %v2247_v54  ;;  %vm2249_vm13 = vcmp.eq.s32.totalorder %v6989_v11, 2  ;;  %v2250_v59 = vxor.u32 2147483648, %v2233_v18  ;;  %vm2091_vm4 = vcmp.eq.s32.totalorder %v6990_v41, 0 }
 0x338   : > { %3411 = vst.msk [vmem:[%s6166_s26 + $0x30] sm:$0xff] %vm3404_vm9, %v3369_v39  ;;  %v6992_v14 = vxor.u32 2147483648, %v6991_v22  ;;  %v2095_v33 = vxor.u32 2147483648, %v2078_v42  ;;  %v2385_v7 = vmul.f32 %v2384_v49, %v6988_v34  ;;  %v2693_v24 = vmul.f32 -0.001358992, %v6084_v44 }
 0x339   : > { %v3322_v27 = vmul.f32 %v3321_v57, %v6509_v23  ;;  %v2251_v54 = vsel %vm2249_vm13, %v2250_v59, %v6960_v13  ;;  %vm2090_vm2 = vcmp.lt.s32.totalorder %v6990_v41, 2  ;;  %vm2094_vm0 = vcmp.eq.s32.totalorder %v6990_v41, 2  ;;  %v6994_v57 = vld [vmem:[#allocation42_spill] sm:$0xff] }
 0x33a   : > { %v2093_v25 = vsel %vm2091_vm4, %v2078_v42, %v6992_v14  ;;  %v2252_v12 = vsel %vm2245_vm10, %v2248_v50, %v2251_v54  ;;  %v2096_v56 = vsel %vm2094_vm0, %v2095_v33, %v6991_v22  ;;  %v2386_v15 = vadd.f32 -0.4999988, %v2385_v7  ;;  %v6995_v42 = vld [vmem:[#allocation29_spill] sm:$0xff]  ;;  %v3375_v33 = vpop.permute.xlu0 %3374 }
 0x33b   : > { %v2694_v9 = vadd.f32 0.041655596, %v2693_v24  ;;  %v6567_v58 = vand.u32 3, %v6428_v35  ;;  %v2253_v13 = vsel %vm2242_vm3, nan, %v2252_v12  ;;  %vm2087_vm7 = vweird.f32 %v6993_v48 }
 0x33c   : > { %v2097_v45 = vsel %vm2090_vm2, %v2093_v25, %v2096_v56  ;;  %3348 = vst.msk [vmem:[%s6166_s26 + $0x40] sm:$0xff] %vm3339_vm8, %v2253_v13  ;;  %v2387_v19 = vmul.f32 %v2386_v15, %v6988_v34  ;;  %v2538_v39 = vmul.f32 -0.001358992, %v6994_v57  ;;  %v3022_v35 = vxor.u32 2147483648, %v6453_v38 }
 0x33d   : > { %v2098_v10 = vsel %vm2087_vm7, nan, %v2097_v45  ;;  %v2695_v60 = vmul.f32 %v2694_v9, %v6084_v44  ;;  %v3177_v20 = vxor.u32 2147483648, %v6467_v1  ;;  %v3323_v37 = vadd.f32 -0.16666654, %v3322_v27  ;;  %3413 = vst.msk [vmem:[%s6166_s26 + $0x40] sm:$0xff] %vm3404_vm9, %v3373_v5 }
 0x33e   : > { %v6583_v18 = vadd.s32 3, %v3311_v31  ;;  %3347 = vst.msk [vmem:[%s6166_s26 + $0x38] sm:$0xff] %vm3339_vm8, %v2098_v10  ;;  %v2388_v34 = vadd.f32 1.0, %v2387_v19  ;;  %vm2397_vm14 = vweird.f32 %v6995_v42  ;;  %v2539_v11 = vadd.f32 0.041655596, %v2538_v39  ;;  %v3379_v13 = vpop.permute.xlu2 %3378 }
 0x33f   : > { %v2696_v52 = vadd.f32 -0.4999988, %v2695_v60  ;;  %3412 = vst.msk [vmem:[%s6166_s26 + $0x38] sm:$0xff] %vm3404_vm9, %v3371_v55  ;;  %vm2400_vm12 = vcmp.lt.s32.totalorder %v6365_v32, 2  ;;  %vm2401_vm11 = vcmp.eq.s32.totalorder %v6365_v32, 0  ;;  %vm2404_vm6 = vcmp.eq.s32.totalorder %v6365_v32, 2 }
 0x340   : > { %v2848_v40 = vmul.f32 -0.001358992, %v6156_v43  ;;  %v2403_v16 = vsel %vm2401_vm11, %v2388_v34, %v2402_v36  ;;  %v2405_v31 = vxor.u32 2147483648, %v2388_v34  ;;  %v2540_v50 = vmul.f32 %v2539_v11, %v6994_v57  ;;  %v6996_v32 = vld [vmem:[#allocation31_spill] sm:$0xff] }
 0x341   : > { %v2697_v49 = vmul.f32 %v2696_v52, %v6084_v44  ;;  %v3324_v59 = vmul.f32 %v3323_v37, %v6509_v23  ;;  %vm2707_vm1 = vweird.f32 %v5523_v6  ;;  %vm2710_vm15 = vcmp.lt.s32.totalorder %v6410_v53, 2 }
 0x342   : > { %v2849_v41 = vadd.f32 0.041655596, %v2848_v40  ;;  %v2406_v22 = vsel %vm2404_vm6, %v2405_v31, %v6379_v63  ;;  %v2541_v25 = vadd.f32 -0.4999988, %v2540_v50  ;;  %v3158_v36 = vmul.f32 -0.001358992, %v6335_v3 }
 0x343   : > { %v2698_v14 = vadd.f32 1.0, %v2697_v49  ;;  %v2407_v44 = vsel %vm2400_vm12, %v2403_v16, %v2406_v22  ;;  %vm2711_vm3 = vcmp.eq.s32.totalorder %v6410_v53, 0  ;;  %vm2714_vm10 = vcmp.eq.s32.totalorder %v6410_v53, 2 }
 0x344   : > { %v2850_v7 = vmul.f32 %v2849_v41, %v6156_v43  ;;  %v2408_v24 = vsel %vm2397_vm14, nan, %v2407_v44  ;;  %v2542_v54 = vmul.f32 %v2541_v25, %v6994_v57  ;;  %v3325_v5 = vadd.f32 1.0, %v3324_v59 }
 0x345   : > { %v2713_v63 = vsel %vm2711_vm3, %v2698_v14, %v2712_v29  ;;  %v2715_v27 = vxor.u32 2147483648, %v2698_v14  ;;  %3349 = vst.msk [vmem:[%s6166_s26 + $0x48] sm:$0xff] %vm3339_vm8, %v2408_v24  ;;  %vm2552_vm5 = vweird.f32 %v6996_v32  ;;  %v3159_v56 = vadd.f32 0.041655596, %v3158_v36 }
 0x346   : > { %v2851_v12 = vadd.f32 -0.4999988, %v2850_v7  ;;  %3414 = vst.msk [vmem:[%s6166_s26 + $0x48] sm:$0xff] %vm3404_vm9, %v3375_v33  ;;  %v2543_v9 = vadd.f32 1.0, %v2542_v54  ;;  %vm2555_vm13 = vcmp.lt.s32.totalorder %v6400_v26, 2  ;;  %vm2556_vm4 = vcmp.eq.s32.totalorder %v6400_v26, 0 }
 0x347   : > { %v2716_v15 = vsel %vm2714_vm10, %v2715_v27, %v6395_v61  ;;  %v3003_v29 = vmul.f32 -0.001358992, %v6261_v2  ;;  %v3160_v55 = vmul.f32 %v3159_v56, %v6335_v3  ;;  %v6633_v57 = vmul.f32 %v3325_v5, %v6502_v28  ;;  %v3377_v28 = vpop.permute.xlu1 %3376 }
 0x348   : > { %v2717_v48 = vsel %vm2710_vm15, %v2713_v63, %v2716_v15  ;;  %v2852_v45 = vmul.f32 %v2851_v12, %v6156_v43  ;;  %v2558_v61 = vsel %vm2556_vm4, %v2543_v9, %v2557_v21  ;;  %v2560_v19 = vxor.u32 2147483648, %v2543_v9 }
 0x349   : > { %v2718_v10 = vsel %vm2707_vm1, nan, %v2717_v48  ;;  %v3004_v60 = vadd.f32 0.041655596, %v3003_v29  ;;  %vm2559_vm2 = vcmp.eq.s32.totalorder %v6400_v26, 2  ;;  %v3161_v43 = vadd.f32 -0.4999988, %v3160_v55 }
 0x34a   : > { %3351 = vst.msk [vmem:[%s6166_s26 + $0x58] sm:$0xff] %vm3339_vm8, %v2718_v10  ;;  %v2853_v53 = vadd.f32 1.0, %v2852_v45  ;;  %v2561_v6 = vsel %vm2559_vm2, %v2560_v19, %v6386_v62  ;;  %vm2866_vm0 = vcmp.eq.s32.totalorder %v6415_v17, 0  ;;  %v3313_v39 = vmul.f32 -0.001358992, %v6509_v23 }
 0x34b   : > { %3416 = vst.msk [vmem:[%s6166_s26 + $0x58] sm:$0xff] %vm3404_vm9, %v3379_v13  ;;  %v3005_v21 = vmul.f32 %v3004_v60, %v6261_v2  ;;  %v2562_v37 = vsel %vm2555_vm13, %v2558_v61, %v2561_v6  ;;  %v3162_v52 = vmul.f32 %v3161_v43, %v6335_v3  ;;  %vm2869_vm7 = vcmp.eq.s32.totalorder %v6415_v17, 2  ;;  %v3381_v3 = vpop.permute.xlu0 %3380 }
 0x34c   : > { %v2868_v34 = vsel %vm2866_vm0, %v2853_v53, %v2867_v8  ;;  %v2870_v42 = vxor.u32 2147483648, %v2853_v53  ;;  %v2563_v62 = vsel %vm2552_vm5, nan, %v2562_v37  ;;  %v3314_v40 = vadd.f32 0.041655596, %v3313_v39 }
 0x34d   : > { %v3006_v11 = vadd.f32 -0.4999988, %v3005_v21  ;;  %3350 = vst.msk [vmem:[%s6166_s26 + $0x50] sm:$0xff] %vm3339_vm8, %v2563_v62  ;;  %vm2862_vm14 = vweird.f32 %v5669_v51  ;;  %vm2865_vm12 = vcmp.lt.s32.totalorder %v6415_v17, 2  ;;  %v3163_v8 = vadd.f32 1.0, %v3162_v52 }
 0x34e   : > { %v2871_v26 = vsel %vm2869_vm7, %v2870_v42, %v6406_v4  ;;  %3415 = vst.msk [vmem:[%s6166_s26 + $0x50] sm:$0xff] %vm3404_vm9, %v3377_v28  ;;  %vm3176_vm11 = vcmp.eq.s32.totalorder %v6567_v58, 0  ;;  %v3315_v49 = vmul.f32 %v3314_v40, %v6509_v23  ;;  %v3329_v50 = vand.u32 3, %v6583_v18 }
 0x34f   : > { %v2872_v16 = vsel %vm2865_vm12, %v2868_v34, %v2871_v26  ;;  %v3007_v31 = vmul.f32 %v3006_v11, %v6261_v2  ;;  %v3178_v51 = vsel %vm3176_vm11, %v3163_v8, %v3177_v20  ;;  %v3180_v17 = vxor.u32 2147483648, %v3163_v8  ;;  %v3385_v20 = vpop.permute.xlu2 %3384 }
 0x350   : > { %v2873_v59 = vsel %vm2862_vm14, nan, %v2872_v16  ;;  %v3332_v4 = vxor.u32 2147483648, %v6633_v57  ;;  %vm3179_vm6 = vcmp.eq.s32.totalorder %v6567_v58, 2  ;;  %v3316_v22 = vadd.f32 -0.4999988, %v3315_v49 }
 0x351   : > { %3352 = vst.msk [vmem:[%s6166_s26 + $0x60] sm:$0xff] %vm3339_vm8, %v2873_v59  ;;  %v3008_v41 = vadd.f32 1.0, %v3007_v31  ;;  %vm3172_vm1 = vweird.f32 %v5979_v0  ;;  %vm3175_vm15 = vcmp.lt.s32.totalorder %v6567_v58, 2  ;;  %v3181_v2 = vsel %vm3179_vm6, %v3180_v17, %v6467_v1  ;;  %v3383_v58 = vpop.permute.xlu1 %3382 }
 0x352   : > { %3417 = vst.msk [vmem:[%s6166_s26 + $0x60] sm:$0xff] %vm3404_vm9, %v3381_v3  ;;  %vm3021_vm3 = vcmp.eq.s32.totalorder %v6418_v46, 0  ;;  %v3182_v18 = vsel %vm3175_vm15, %v3178_v51, %v3181_v2  ;;  %v3317_v36 = vmul.f32 %v3316_v22, %v6509_v23  ;;  %vm3024_vm10 = vcmp.eq.s32.totalorder %v6418_v46, 2 }
 0x353   : > { %v3023_v14 = vsel %vm3021_vm3, %v3008_v41, %v3022_v35  ;;  %v3025_v25 = vxor.u32 2147483648, %v3008_v41  ;;  %v3183_v33 = vsel %vm3172_vm1, nan, %v3182_v18  ;;  %vm3020_vm5 = vcmp.lt.s32.totalorder %v6418_v46, 2 }
 0x354   : > { %3354 = vst.msk [vmem:[%s6166_s26 + $0x70] sm:$0xff] %vm3339_vm8, %v3183_v33  ;;  %v3318_v1 = vadd.f32 1.0, %v3317_v36  ;;  %vm3017_vm13 = vweird.f32 %v5807_v30  ;;  %vm3331_vm4 = vcmp.eq.s32.totalorder %v3329_v50, 0  ;;  %vm3334_vm2 = vcmp.eq.s32.totalorder %v3329_v50, 2 }
 0x355   : > { %v3026_v0 = vsel %vm3024_vm10, %v3025_v25, %v6453_v38  ;;  %3419 = vst.msk [vmem:[%s6166_s26 + $0x70] sm:$0xff] %vm3404_vm9, %v3385_v20  ;;  %vm3330_vm0 = vcmp.lt.s32.totalorder %v3329_v50, 2  ;;  %v3387_v38 = vpop.permute.xlu0 %3386  ;;  %vm3327_vm7 = vweird.f32 %v6099_v47 }
 0x356   : > { %v3027_v35 = vsel %vm3020_vm5, %v3023_v14, %v3026_v0  ;;  %v3333_v44 = vsel %vm3331_vm4, %v3318_v1, %v3332_v4  ;;  %v3335_v7 = vxor.u32 2147483648, %v3318_v1 }
 0x357   : > { %v3028_v23 = vsel %vm3017_vm13, nan, %v3027_v35 }
 0x358   : > { %3353 = vst.msk [vmem:[%s6166_s26 + $0x68] sm:$0xff] %vm3339_vm8, %v3028_v23  ;;  %v3336_v46 = vsel %vm3334_vm2, %v3335_v7, %v6633_v57 }
 0x359   : > { %3418 = vst.msk [vmem:[%s6166_s26 + $0x68] sm:$0xff] %vm3404_vm9, %v3383_v58  ;;  %v3337_v24 = vsel %vm3330_vm0, %v3333_v44, %v3336_v46 }
 0x35a   : > { %v3338_v63 = vsel %vm3327_vm7, nan, %v3337_v24 }
 0x35b   : > { %3355 = vst.msk [vmem:[%s6166_s26 + $0x78] sm:$0xff] %vm3339_vm8, %v3338_v63 }
 0x35c   : > { %3420 = vst.msk [vmem:[%s6166_s26 + $0x78] sm:$0xff] %vm3404_vm9, %v3387_v38 }
 0x35d PF: > { %s13_s12 = sadd.s32 1, %s3577_s12  }
 0x35e   : > { %p10_p4 = scmp.ge.s32.totalorder %s13_s12, 4  }
 0x360   :  { %12 = sbr.rel (!%p10_p4) target bundleno = 1 (0x1), region = 62 }

</bundles_post_ra>
